<compile_context>
chip_gen: v7x
topology: tpu7x:2x2x1
jax: 0.10.0
libtpu: 0.0.40
codegen_flags: <defaults>
</compile_context>

<pallas_src>
import functools

import jax
import jax.numpy as jnp
from jax.experimental import pallas as pl
from jax.experimental.pallas import tpu as pltpu


# ----------------------------------------------------------------------------
# Compiler params (generation-aware VMEM limit)
# ----------------------------------------------------------------------------
@functools.lru_cache(maxsize=None)
def _vmem_limit_bytes():
    # ~75% of physical VMEM: 96 MiB on v5e/v6e (128 MiB), 48 MiB on v7x (64 MiB).
    try:
        cap = int(pltpu.get_tpu_info().vmem_capacity_bytes)
    except Exception:
        cap = 64 * 1024 * 1024  # conservative fallback (safe on every generation)
    return int(min(cap * 3 // 4, 96 * 1024 * 1024))


def _cparams(*sems):
    return pltpu.CompilerParams(dimension_semantics=sems,
                                vmem_limit_bytes=_vmem_limit_bytes())


def _stem_k_pad(cin):
    return max(((9 * cin + 7) // 8) * 8, 8)


# ----------------------------------------------------------------------------
# Pallas kernels
# ----------------------------------------------------------------------------
def stem_fused_kernel(p_ref, w0_ref, s0_ref, b0_ref, w1_ref, s1_ref, b1_ref,
                      h_ref, c1_ref):
    """Stem 3x3 conv as one K=27 matmul + BN + ReLU, fused with the 1x1 b_conv1.

    p_ref:  (TM, Kpad) bf16 im2col patches (Cin=3 -> 27, lane-padded)
    w0_ref: (Kpad, Cstem) bf16   s0/b0: (1, Cstem) f32
    w1_ref: (Cstem, Cmid) bf16   s1/b1: (1, Cmid) f32
    h_ref:  (TM, Cstem) bf16     c1_ref: (TM, Cmid) bf16
    """
    h = jnp.dot(p_ref[...], w0_ref[...], preferred_element_type=jnp.float32)
    h = jnp.maximum(h * s0_ref[...] + b0_ref[...], 0.0)
    hb = h.astype(h_ref.dtype)
    h_ref[...] = hb
    c1 = jnp.dot(hb, w1_ref[...], preferred_element_type=jnp.float32)
    c1 = jnp.maximum(c1 * s1_ref[...] + b1_ref[...], 0.0)
    c1_ref[...] = c1.astype(c1_ref.dtype)


def conv3x3_bn_relu_kernel(x_ref, w_ref, s_ref, b_ref, o_ref,
                           slab_ref, acc_ref, *, H, W):
    """3x3 "same" conv + folded BN + ReLU for one image; halo handled in-kernel.

    x_ref:    (1, H*W, Cin) bf16 (unpadded NHWC image flattened to rows)
    w_ref:    (9, Cin, Cout) bf16   s_ref/b_ref: (1, Cout) f32
    o_ref:    (1, H*W, Cout) bf16
    slab_ref: VMEM (3, (H+2)*W, Cin) bf16 — one column-shifted slab per dj
    acc_ref:  VMEM (H*W, Cout) f32 — 9-tap accumulator
    """
    # Build the three column-shifted, row-padded slabs (zero halo) with
    # sublane-contiguous copies only; avoids 9 slice+reshape materializations.
    slab_ref[...] = jnp.zeros_like(slab_ref)
    for h in range(H):
        hp = h + 1
        # dj = 0 : slab_0[hp, w] = xpad[hp, w]     = x[h, w-1]  (w >= 1)
        slab_ref[0, hp * W + 1: hp * W + W, :] = x_ref[0, h * W: h * W + W - 1, :]
        # dj = 1 : slab_1[hp, w] = xpad[hp, w+1]   = x[h, w]
        slab_ref[1, hp * W: hp * W + W, :] = x_ref[0, h * W: h * W + W, :]
        # dj = 2 : slab_2[hp, w] = xpad[hp, w+2]   = x[h, w+1]  (w <= W-2)
        slab_ref[2, hp * W: hp * W + W - 1, :] = x_ref[0, h * W + 1: h * W + W, :]

    # 9-tap accumulation into a VMEM f32 scratch (streams, no giant live vregs).
    acc_ref[...] = jnp.zeros_like(acc_ref)
    for t in range(9):
        di, dj = t // 3, t % 3
        xt = slab_ref[dj, di * W: di * W + H * W, :]
        acc_ref[...] += jnp.dot(xt, w_ref[t], preferred_element_type=jnp.float32)
    # TODO(synk): pair taps along K (K=256 pushes) for v6e/v7x MXU depth.

    y = acc_ref[...] * s_ref[...] + b_ref[...]
    o_ref[0] = jnp.maximum(y, 0.0).astype(o_ref.dtype)


def residual_tail_gap_kernel(c2_ref, h_ref, w_ref, b_ref, o_ref, acc_ref,
                             *, spatial, masked):
    """Fused conv3(1x1) + projection(1x1) + add + ReLU + global-avg-pool.

    BN scales are folded into w_ref host-side and the two 1x1 matmuls are fused
    into one K=(Cmid+Cstem) push via an in-VMEM lane concat.

    c2_ref: (1, TS, Cmid) bf16   h_ref: (1, TS, Cstem) bf16
    w_ref:  (Cmid+Cstem, Cfeat) bf16   b_ref: (1, Cfeat) f32
    o_ref:  (1, 1, Cfeat) f32 (per-image GAP)   acc_ref: VMEM (1, Cfeat) f32
    """
    s_idx = pl.program_id(1)

    @pl.when(s_idx == 0)
    def _():
        acc_ref[...] = jnp.zeros_like(acc_ref)

    xcat = jnp.concatenate([c2_ref[0], h_ref[0]], axis=-1)           # (TS, K)
    r = jnp.dot(xcat, w_ref[...], preferred_element_type=jnp.float32) + b_ref[...]
    r = jnp.maximum(r, 0.0)

    if masked:  # only emitted when the spatial tiling is actually ragged
        ts = r.shape[0]
        row = jax.lax.broadcasted_iota(jnp.int32, (ts, 1), 0) + s_idx * ts
        r = jnp.where(row < spatial, r, 0.0)

    acc_ref[...] += jnp.sum(r, axis=0, keepdims=True)

    @pl.when(s_idx == pl.num_programs(1) - 1)
    def _():
        o_ref[0] = acc_ref[...] * (1.0 / float(spatial))


def linear_bn1d_kernel(f_ref, w_ref, b_ref, g_ref, beta_ref, o_ref, *, eps):
    """features @ W + b, then BatchNorm1d with batch statistics (f32 throughout)."""
    z = jnp.dot(f_ref[...], w_ref[...], preferred_element_type=jnp.float32)
    z = z + b_ref[...]
    mu = jnp.mean(z, axis=0, keepdims=True)
    var = jnp.mean((z - mu) ** 2, axis=0, keepdims=True)   # biased var (BN semantics)
    o_ref[...] = (z - mu) * jax.lax.rsqrt(var + eps) * g_ref[...] + beta_ref[...]


# ----------------------------------------------------------------------------
# pallas_call wrappers
# ----------------------------------------------------------------------------
def _stem_patches(x_nhwc, k_pad):
    """(B,H,W,3) f32 -> (B*H*W, k_pad) bf16 im2col patches.

    Cin=3 only, so the 3->27 channel blow-up is negligible HBM traffic (review
    explicitly recommends this to turn 9 K=3 MXU pushes into one K=27 push).
    """
    B, H, W, C = x_nhwc.shape
    xp = jnp.pad(x_nhwc, ((0, 0), (1, 1), (1, 1), (0, 0)))
    cols = [xp[:, di:di + H, dj:dj + W, :] for di in range(3) for dj in range(3)]
    patches = jnp.concatenate(cols, axis=-1)                    # (B,H,W,27)
    patches = jnp.pad(patches, ((0, 0), (0, 0), (0, 0), (0, k_pad - 9 * C)))
    return patches.reshape(B * H * W, k_pad).astype(jnp.bfloat16)


def stem_fused(patches, p_stem, p_conv1, *, tile_m=1024):
    """(M, Kpad) patches -> (h, c1) bf16 slabs, row-tiled, weights resident."""
    M, K = patches.shape
    C0 = p_stem["w"].shape[-1]
    C1 = p_conv1["w"].shape[-1]
    tm = min(tile_m, M)
    return pl.pallas_call(
        stem_fused_kernel,
        out_shape=(jax.ShapeDtypeStruct((M, C0), jnp.bfloat16),
                   jax.ShapeDtypeStruct((M, C1), jnp.bfloat16)),
        grid=(pl.cdiv(M, tm),),
        in_specs=[
            pl.BlockSpec((tm, K), lambda i: (i, 0)),
            pl.BlockSpec((K, C0), lambda i: (0, 0)),
            pl.BlockSpec((1, C0), lambda i: (0, 0)),
            pl.BlockSpec((1, C0), lambda i: (0, 0)),
            pl.BlockSpec((C0, C1), lambda i: (0, 0)),
            pl.BlockSpec((1, C1), lambda i: (0, 0)),
            pl.BlockSpec((1, C1), lambda i: (0, 0)),
        ],
        out_specs=[pl.BlockSpec((tm, C0), lambda i: (i, 0)),
                   pl.BlockSpec((tm, C1), lambda i: (i, 0))],
        compiler_params=_cparams("parallel"),
    )(patches, p_stem["w"], p_stem["scale"].reshape(1, C0),
      p_stem["bias"].reshape(1, C0), p_conv1["w"],
      p_conv1["scale"].reshape(1, C1), p_conv1["bias"].reshape(1, C1))


def conv3x3_bn_relu(x_slab, p, *, H, W):
    """x_slab: (B, H*W, Cin) bf16 -> (B, H*W, Cout) bf16. Halo handled in-kernel."""
    B, S, Cin = x_slab.shape
    Cout = p["w"].shape[-1]
    Hp = H + 2
    # TODO(synk): add 1-row-halo row tiling (grid=(B, n_row_tiles)) so the per-step
    # VMEM stays bounded at large resolutions on v7x; per-image blocks are fine at
    # the small shapes exercised here.
    return pl.pallas_call(
        functools.partial(conv3x3_bn_relu_kernel, H=H, W=W),
        out_shape=jax.ShapeDtypeStruct((B, S, Cout), jnp.bfloat16),
        grid=(B,),
        in_specs=[
            pl.BlockSpec((1, S, Cin), lambda b: (b, 0, 0)),
            pl.BlockSpec((9, Cin, Cout), lambda b: (0, 0, 0)),
            pl.BlockSpec((1, Cout), lambda b: (0, 0)),
            pl.BlockSpec((1, Cout), lambda b: (0, 0)),
        ],
        out_specs=pl.BlockSpec((1, S, Cout), lambda b: (b, 0, 0)),
        scratch_shapes=[pltpu.VMEM((3, Hp * W, Cin), jnp.bfloat16),
                        pltpu.VMEM((S, Cout), jnp.float32)],
        compiler_params=_cparams("parallel"),
    )(x_slab, p["w"], p["scale"].reshape(1, Cout), p["bias"].reshape(1, Cout))


def residual_tail_gap(c2, h, tail_w, tail_b, *, tile_s=1024):
    """Fused conv3 + proj + add + ReLU + GAP. Returns (B, Cfeat) f32 features."""
    B, S, Cmid = c2.shape
    Cstem = h.shape[-1]
    Cfeat = tail_w.shape[-1]
    ts = min(tile_s, S)
    n_s = pl.cdiv(S, ts)
    masked = (S % ts) != 0
    out = pl.pallas_call(
        functools.partial(residual_tail_gap_kernel, spatial=S, masked=masked),
        out_shape=jax.ShapeDtypeStruct((B, 1, Cfeat), jnp.float32),
        grid=(B, n_s),
        in_specs=[
            pl.BlockSpec((1, ts, Cmid), lambda b, s: (b, s, 0)),
            pl.BlockSpec((1, ts, Cstem), lambda b, s: (b, s, 0)),
            pl.BlockSpec((Cmid + Cstem, Cfeat), lambda b, s: (0, 0)),
            pl.BlockSpec((1, Cfeat), lambda b, s: (0, 0)),
        ],
        out_specs=pl.BlockSpec((1, 1, Cfeat), lambda b, s: (b, 0, 0)),
        scratch_shapes=[pltpu.VMEM((1, Cfeat), jnp.float32)],
        compiler_params=_cparams("parallel", "arbitrary"),
    )(c2, h, tail_w, tail_b.reshape(1, Cfeat))
    return out.reshape(B, Cfeat)


def linear_batchnorm1d(feats, w, b, gamma, beta, *, eps=1e-5):
    """Tiny head: (B, Cfeat) @ (Cfeat, E_pad) + BatchNorm1d (batch statistics)."""
    B, C = feats.shape
    E = w.shape[-1]
    return pl.pallas_call(
        functools.partial(linear_bn1d_kernel, eps=eps),
        out_shape=jax.ShapeDtypeStruct((B, E), jnp.float32),
        grid=(1,),
        in_specs=[
            pl.BlockSpec((B, C), lambda i: (0, 0)),
            pl.BlockSpec((C, E), lambda i: (0, 0)),
            pl.BlockSpec((1, E), lambda i: (0, 0)),
            pl.BlockSpec((1, E), lambda i: (0, 0)),
            pl.BlockSpec((1, E), lambda i: (0, 0)),
        ],
        out_specs=pl.BlockSpec((B, E), lambda i: (0, 0)),
        compiler_params=_cparams("arbitrary"),
    )(feats, w, b.reshape(1, E), gamma.reshape(1, E), beta.reshape(1, E))


# ----------------------------------------------------------------------------
# Parameter init (deterministic, synthetic; BN2d inference-folded into scale/bias)
# ----------------------------------------------------------------------------
def init_params(key, *, cin=3, c_stem=128, c_mid=128, feat_dim=256,
                embed_size=32, lane_pad=128):
    ks = jax.random.split(key, 12)

    def bn(k, cout):
        k1, k2 = jax.random.split(k)
        return (1.0 + 0.1 * jax.random.normal(k1, (cout,), jnp.float32),
                0.1 * jax.random.normal(k2, (cout,), jnp.float32))

    # stem 3x3 conv (Cin=3) reshaped to one K=27 matmul, K padded to 32 rows
    k_pad = _stem_k_pad(cin)
    w_stem = (jax.random.normal(ks[0], (9, cin, c_stem), jnp.float32)
              / jnp.sqrt(9.0 * cin)).reshape(9 * cin, c_stem)
    w_stem = jnp.pad(w_stem, ((0, k_pad - 9 * cin), (0, 0))).astype(jnp.bfloat16)
    s0, b0 = bn(ks[1], c_stem)

    # bottleneck 1x1 (fused into stem kernel epilogue)
    w1 = (jax.random.normal(ks[2], (c_stem, c_mid), jnp.float32)
          / jnp.sqrt(float(c_stem))).astype(jnp.bfloat16)
    s1, b1 = bn(ks[3], c_mid)

    # bottleneck 3x3
    w2 = (jax.random.normal(ks[4], (9, c_mid, c_mid), jnp.float32)
          / jnp.sqrt(9.0 * c_mid)).astype(jnp.bfloat16)
    s2, b2 = bn(ks[5], c_mid)

    # conv3 (1x1 expand) + projection shortcut: fold BN scales into the weights and
    # concatenate along K so the tail kernel issues a single K=256 MXU push.
    w3 = jax.random.normal(ks[6], (c_mid, feat_dim), jnp.float32) / jnp.sqrt(float(c_mid))
    s3, b3 = bn(ks[7], feat_dim)
    wp = jax.random.normal(ks[8], (c_stem, feat_dim), jnp.float32) / jnp.sqrt(float(c_stem))
    sp, bp = bn(ks[9], feat_dim)
    tail_w = jnp.concatenate([w3 * s3[None, :], wp * sp[None, :]], axis=0).astype(jnp.bfloat16)
    tail_b = b3 + bp

    # head: Linear(feat_dim, embed_size) + BatchNorm1d, f32, lanes padded to 128
    e_pad = max(lane_pad, ((embed_size + lane_pad - 1) // lane_pad) * lane_pad)
    lin_w = jax.random.normal(ks[10], (feat_dim, embed_size), jnp.float32) \
        / jnp.sqrt(float(feat_dim))
    lin_w = jnp.pad(lin_w, ((0, 0), (0, e_pad - embed_size)))
    lin_b = jnp.pad(0.1 * jax.random.normal(ks[11], (embed_size,), jnp.float32),
                    (0, e_pad - embed_size))
    bn_g = jnp.pad(jnp.ones((embed_size,), jnp.float32), (0, e_pad - embed_size),
                   constant_values=1.0)
    bn_b = jnp.zeros((e_pad,), jnp.float32)

    return {
        "stem":    {"w": w_stem, "scale": s0, "bias": b0},
        "b_conv1": {"w": w1, "scale": s1, "bias": b1},
        "b_conv2": {"w": w2, "scale": s2, "bias": b2},
        "tail_w": tail_w, "tail_b": tail_b,
        "lin_w": lin_w, "lin_b": lin_b, "bn_g": bn_g, "bn_b": bn_b,
    }


# ----------------------------------------------------------------------------
# Forward pass (mirrors EncoderCNN.forward)
# ----------------------------------------------------------------------------
def encoder_cnn_forward(images_nchw, params, *, embed_size):
    # PyTorch conv inputs are NCHW; kernels use lane-dense (rows x channels) slabs.
    x = jnp.transpose(images_nchw, (0, 2, 3, 1))                       # (B,H,W,3) f32
    B, H, W, cin = x.shape
    S = H * W

    # --- backbone stand-in for self.cnn (torch.no_grad in torch; pure fwd here)
    patches = _stem_patches(x, _stem_k_pad(cin))                       # (B*S, 32) bf16
    h, c1 = stem_fused(patches, params["stem"], params["b_conv1"])     # (B*S, 128) x2
    c2 = conv3x3_bn_relu(c1.reshape(B, S, -1), params["b_conv2"], H=H, W=W)

    # conv3 + projection shortcut + add + ReLU + AdaptiveAvgPool2d((1,1)).squeeze()
    feats = residual_tail_gap(c2, h.reshape(B, S, -1),
                              params["tail_w"], params["tail_b"])      # (B, 256) f32

    # self.linear(features); self.bn(features)  (f32, matching the torch head)
    # TODO(synk): BatchNorm1d uses batch statistics (train-mode default); eval-mode
    # running mean/var is not implemented.
    out_pad = linear_batchnorm1d(feats, params["lin_w"], params["lin_b"],
                                 params["bn_g"], params["bn_b"])
    return out_pad[:, :embed_size]


# ----------------------------------------------------------------------------
if __name__ == "__main__":
    embed_size = 32
    images = jax.random.normal(jax.random.PRNGKey(0), (2, 3, 16, 16), jnp.float32)
    params = init_params(jax.random.PRNGKey(1), embed_size=embed_size)

    fwd = jax.jit(functools.partial(encoder_cnn_forward, embed_size=embed_size))
    out = jax.block_until_ready(fwd(images, params))

    assert out.shape == (2, embed_size), out.shape
    assert bool(jnp.all(jnp.isfinite(out)))
    print("KERNEL_OK")
</pallas_src>

<mosaic_0001>
module attributes {stable_mosaic.version = 11 : i64} {
  func.func @stem_fused_kernel(%arg0: i32, %arg1: memref<512x32xbf16, #tpu.memory_space<vmem>>, %arg2: memref<32x128xbf16, #tpu.memory_space<vmem>>, %arg3: memref<1x128xf32, #tpu.memory_space<vmem>>, %arg4: memref<1x128xf32, #tpu.memory_space<vmem>>, %arg5: memref<128x128xbf16, #tpu.memory_space<vmem>>, %arg6: memref<1x128xf32, #tpu.memory_space<vmem>>, %arg7: memref<1x128xf32, #tpu.memory_space<vmem>>, %arg8: memref<512x128xbf16, #tpu.memory_space<vmem>>, %arg9: memref<512x128xbf16, #tpu.memory_space<vmem>>) attributes {dimension_semantics = [#tpu.dimension_semantics<parallel>], iteration_bounds = array<i64: 1>, scalar_prefetch = 0 : i64, scratch_operands = 0 : i64, tpu.core_type = #tpu.core_type<tc>, window_params = [{transform_indices = @transform_0, window_bounds = array<i64: 512, 32>}, {pipeline_mode = #tpu.pipeline_mode<synchronous>, transform_indices = @transform_1, window_bounds = array<i64: 32, 128>}, {pipeline_mode = #tpu.pipeline_mode<synchronous>, transform_indices = @transform_2, window_bounds = array<i64: 1, 128>}, {pipeline_mode = #tpu.pipeline_mode<synchronous>, transform_indices = @transform_3, window_bounds = array<i64: 1, 128>}, {pipeline_mode = #tpu.pipeline_mode<synchronous>, transform_indices = @transform_4, window_bounds = array<i64: 128, 128>}, {pipeline_mode = #tpu.pipeline_mode<synchronous>, transform_indices = @transform_5, window_bounds = array<i64: 1, 128>}, {pipeline_mode = #tpu.pipeline_mode<synchronous>, transform_indices = @transform_6, window_bounds = array<i64: 1, 128>}, {transform_indices = @transform_7, window_bounds = array<i64: 512, 128>}, {transform_indices = @transform_8, window_bounds = array<i64: 512, 128>}]} {
    %c0 = arith.constant 0 : index
    %c0_0 = arith.constant 0 : index
    %0 = vector.load %arg1[%c0, %c0_0] : memref<512x32xbf16, #tpu.memory_space<vmem>>, vector<512x32xbf16>
    %c0_1 = arith.constant 0 : index
    %c0_2 = arith.constant 0 : index
    %1 = vector.load %arg2[%c0_1, %c0_2] : memref<32x128xbf16, #tpu.memory_space<vmem>>, vector<32x128xbf16>
    %cst = arith.constant dense<0.000000e+00> : vector<512x128xf32>
    %2 = tpu.matmul %0, %1, %cst {dimension_numbers = #tpu.dot_dimension_numbers<[1], [0], [0], [1], [0, 0, 1, 1], [], []>} : vector<512x32xbf16>, vector<32x128xbf16>, vector<512x128xf32> -> vector<512x128xf32>
    %c0_3 = arith.constant 0 : index
    %c0_4 = arith.constant 0 : index
    %3 = vector.load %arg3[%c0_3, %c0_4] : memref<1x128xf32, #tpu.memory_space<vmem>>, vector<1x128xf32>
    %4 = vector.broadcast %3 : vector<1x128xf32> to vector<512x128xf32>
    %5 = arith.mulf %2, %4 : vector<512x128xf32>
    %c0_5 = arith.constant 0 : index
    %c0_6 = arith.constant 0 : index
    %6 = vector.load %arg4[%c0_5, %c0_6] : memref<1x128xf32, #tpu.memory_space<vmem>>, vector<1x128xf32>
    %7 = vector.broadcast %6 : vector<1x128xf32> to vector<512x128xf32>
    %8 = arith.addf %5, %7 : vector<512x128xf32>
    %cst_7 = arith.constant 0.000000e+00 : f32
    %9 = vector.broadcast %cst_7 : f32 to vector<512x128xf32>
    %10 = arith.maximumf %8, %9 : vector<512x128xf32>
    %11 = arith.truncf %10 : vector<512x128xf32> to vector<512x128xbf16>
    %c0_8 = arith.constant 0 : index
    %c0_9 = arith.constant 0 : index
    %12 = vector.load %arg8[%c0_8, %c0_9] : memref<512x128xbf16, #tpu.memory_space<vmem>>, vector<512x128xbf16>
    tpu.vector_store %arg8[%c0_8, %c0_9], %11 {strides = array<i32>} : memref<512x128xbf16, #tpu.memory_space<vmem>>, vector<512x128xbf16>,
    %c0_10 = arith.constant 0 : index
    %c0_11 = arith.constant 0 : index
    %13 = vector.load %arg5[%c0_10, %c0_11] : memref<128x128xbf16, #tpu.memory_space<vmem>>, vector<128x128xbf16>
    %cst_12 = arith.constant dense<0.000000e+00> : vector<512x128xf32>
    %14 = tpu.matmul %11, %13, %cst_12 {dimension_numbers = #tpu.dot_dimension_numbers<[1], [0], [0], [1], [0, 0, 1, 1], [], []>} : vector<512x128xbf16>, vector<128x128xbf16>, vector<512x128xf32> -> vector<512x128xf32>
    %c0_13 = arith.constant 0 : index
    %c0_14 = arith.constant 0 : index
    %15 = vector.load %arg6[%c0_13, %c0_14] : memref<1x128xf32, #tpu.memory_space<vmem>>, vector<1x128xf32>
    %16 = vector.broadcast %15 : vector<1x128xf32> to vector<512x128xf32>
    %17 = arith.mulf %14, %16 : vector<512x128xf32>
    %c0_15 = arith.constant 0 : index
    %c0_16 = arith.constant 0 : index
    %18 = vector.load %arg7[%c0_15, %c0_16] : memref<1x128xf32, #tpu.memory_space<vmem>>, vector<1x128xf32>
    %19 = vector.broadcast %18 : vector<1x128xf32> to vector<512x128xf32>
    %20 = arith.addf %17, %19 : vector<512x128xf32>
    %cst_17 = arith.constant 0.000000e+00 : f32
    %21 = vector.broadcast %cst_17 : f32 to vector<512x128xf32>
    %22 = arith.maximumf %20, %21 : vector<512x128xf32>
    %23 = arith.truncf %22 : vector<512x128xf32> to vector<512x128xbf16>
    %c0_18 = arith.constant 0 : index
    %c0_19 = arith.constant 0 : index
    %24 = vector.load %arg9[%c0_18, %c0_19] : memref<512x128xbf16, #tpu.memory_space<vmem>>, vector<512x128xbf16>
    tpu.vector_store %arg9[%c0_18, %c0_19], %23 {strides = array<i32>} : memref<512x128xbf16, #tpu.memory_space<vmem>>, vector<512x128xbf16>,
    return
  }
  func.func @transform_0(%arg0: i32) -> (i32, i32) {
    %c0_i32 = arith.constant 0 : i32
    %c0_i32_0 = arith.constant 0 : i32
    return %arg0, %c0_i32 : i32, i32
  }
  func.func @transform_1(%arg0: i32) -> (i32, i32) {
    %c0_i32 = arith.constant 0 : i32
    %c0_i32_0 = arith.constant 0 : i32
    %c0_i32_1 = arith.constant 0 : i32
    return %c0_i32, %c0_i32_0 : i32, i32
  }
  func.func @transform_2(%arg0: i32) -> (i32, i32) {
    %c0_i32 = arith.constant 0 : i32
    %c0_i32_0 = arith.constant 0 : i32
    %c0_i32_1 = arith.constant 0 : i32
    return %c0_i32, %c0_i32_0 : i32, i32
  }
  func.func @transform_3(%arg0: i32) -> (i32, i32) {
    %c0_i32 = arith.constant 0 : i32
    %c0_i32_0 = arith.constant 0 : i32
    %c0_i32_1 = arith.constant 0 : i32
    return %c0_i32, %c0_i32_0 : i32, i32
  }
  func.func @transform_4(%arg0: i32) -> (i32, i32) {
    %c0_i32 = arith.constant 0 : i32
    %c0_i32_0 = arith.constant 0 : i32
    %c0_i32_1 = arith.constant 0 : i32
    return %c0_i32, %c0_i32_0 : i32, i32
  }
  func.func @transform_5(%arg0: i32) -> (i32, i32) {
    %c0_i32 = arith.constant 0 : i32
    %c0_i32_0 = arith.constant 0 : i32
    %c0_i32_1 = arith.constant 0 : i32
    return %c0_i32, %c0_i32_0 : i32, i32
  }
  func.func @transform_6(%arg0: i32) -> (i32, i32) {
    %c0_i32 = arith.constant 0 : i32
    %c0_i32_0 = arith.constant 0 : i32
    %c0_i32_1 = arith.constant 0 : i32
    return %c0_i32, %c0_i32_0 : i32, i32
  }
  func.func @transform_7(%arg0: i32) -> (i32, i32) {
    %c0_i32 = arith.constant 0 : i32
    %c0_i32_0 = arith.constant 0 : i32
    return %arg0, %c0_i32 : i32, i32
  }
  func.func @transform_8(%arg0: i32) -> (i32, i32) {
    %c0_i32 = arith.constant 0 : i32
    %c0_i32_0 = arith.constant 0 : i32
    return %arg0, %c0_i32 : i32, i32
  }
}

module attributes {stable_mosaic.version = 11 : i64} {
  func.func @conv3x3_bn_relu_kernel(%arg0: i32, %arg1: memref<1x256x128xbf16, #tpu.memory_space<vmem>>, %arg2: memref<9x128x128xbf16, #tpu.memory_space<vmem>>, %arg3: memref<1x128xf32, #tpu.memory_space<vmem>>, %arg4: memref<1x128xf32, #tpu.memory_space<vmem>>, %arg5: memref<1x256x128xbf16, #tpu.memory_space<vmem>>, %arg6: memref<3x288x128xbf16, #tpu.memory_space<vmem>>, %arg7: memref<256x128xf32, #tpu.memory_space<vmem>>) attributes {dimension_semantics = [#tpu.dimension_semantics<parallel>], iteration_bounds = array<i64: 2>, scalar_prefetch = 0 : i64, scratch_operands = 2 : i64, tpu.core_type = #tpu.core_type<tc>, window_params = [{transform_indices = @transform_0, window_bounds = array<i64: 1, 256, 128>}, {pipeline_mode = #tpu.pipeline_mode<synchronous>, transform_indices = @transform_1, window_bounds = array<i64: 9, 128, 128>}, {pipeline_mode = #tpu.pipeline_mode<synchronous>, transform_indices = @transform_2, window_bounds = array<i64: 1, 128>}, {pipeline_mode = #tpu.pipeline_mode<synchronous>, transform_indices = @transform_3, window_bounds = array<i64: 1, 128>}, {transform_indices = @transform_4, window_bounds = array<i64: 1, 256, 128>}]} {
    %cst = arith.constant 0.000000e+00 : bf16
    %0 = vector.broadcast %cst : bf16 to vector<3x288x128xbf16>
    %c0 = arith.constant 0 : index
    %c0_0 = arith.constant 0 : index
    %c0_1 = arith.constant 0 : index
    %1 = vector.load %arg6[%c0, %c0_0, %c0_1] : memref<3x288x128xbf16, #tpu.memory_space<vmem>>, vector<3x288x128xbf16>
    tpu.vector_store %arg6[%c0, %c0_0, %c0_1], %0 {strides = array<i32>} : memref<3x288x128xbf16, #tpu.memory_space<vmem>>, vector<3x288x128xbf16>,
    %c0_2 = arith.constant 0 : index
    %c0_3 = arith.constant 0 : index
    %c0_4 = arith.constant 0 : index
    %2 = vector.load %arg1[%c0_2, %c0_3, %c0_4] : memref<1x256x128xbf16, #tpu.memory_space<vmem>>, vector<1x15x128xbf16>
    %3 = vector.shape_cast %2 : vector<1x15x128xbf16> to vector<15x128xbf16>
    %c0_5 = arith.constant 0 : index
    %c17 = arith.constant 17 : index
    %c0_6 = arith.constant 0 : index
    %4 = vector.load %arg6[%c0_5, %c17, %c0_6] : memref<3x288x128xbf16, #tpu.memory_space<vmem>>, vector<1x15x128xbf16>
    %5 = vector.shape_cast %4 : vector<1x15x128xbf16> to vector<15x128xbf16>
    %6 = vector.shape_cast %3 : vector<15x128xbf16> to vector<1x15x128xbf16>
    tpu.vector_store %arg6[%c0_5, %c17, %c0_6], %6 {strides = array<i32>} : memref<3x288x128xbf16, #tpu.memory_space<vmem>>, vector<1x15x128xbf16>,
    %c0_7 = arith.constant 0 : index
    %c0_8 = arith.constant 0 : index
    %c0_9 = arith.constant 0 : index
    %7 = vector.load %arg1[%c0_7, %c0_8, %c0_9] : memref<1x256x128xbf16, #tpu.memory_space<vmem>>, vector<1x16x128xbf16>
    %8 = vector.shape_cast %7 : vector<1x16x128xbf16> to vector<16x128xbf16>
    %c1 = arith.constant 1 : index
    %c16 = arith.constant 16 : index
    %c0_10 = arith.constant 0 : index
    %9 = vector.load %arg6[%c1, %c16, %c0_10] : memref<3x288x128xbf16, #tpu.memory_space<vmem>>, vector<1x16x128xbf16>
    %10 = vector.shape_cast %9 : vector<1x16x128xbf16> to vector<16x128xbf16>
    %11 = vector.shape_cast %8 : vector<16x128xbf16> to vector<1x16x128xbf16>
    tpu.vector_store %arg6[%c1, %c16, %c0_10], %11 {strides = array<i32>} : memref<3x288x128xbf16, #tpu.memory_space<vmem>>, vector<1x16x128xbf16>,
    %c0_11 = arith.constant 0 : index
    %c1_12 = arith.constant 1 : index
    %c0_13 = arith.constant 0 : index
    %12 = vector.load %arg1[%c0_11, %c1_12, %c0_13] : memref<1x256x128xbf16, #tpu.memory_space<vmem>>, vector<1x15x128xbf16>
    %13 = vector.shape_cast %12 : vector<1x15x128xbf16> to vector<15x128xbf16>
    %c2 = arith.constant 2 : index
    %c16_14 = arith.constant 16 : index
    %c0_15 = arith.constant 0 : index
    %14 = vector.load %arg6[%c2, %c16_14, %c0_15] : memref<3x288x128xbf16, #tpu.memory_space<vmem>>, vector<1x15x128xbf16>
    %15 = vector.shape_cast %14 : vector<1x15x128xbf16> to vector<15x128xbf16>
    %16 = vector.shape_cast %13 : vector<15x128xbf16> to vector<1x15x128xbf16>
    tpu.vector_store %arg6[%c2, %c16_14, %c0_15], %16 {strides = array<i32>} : memref<3x288x128xbf16, #tpu.memory_space<vmem>>, vector<1x15x128xbf16>,
    %c0_16 = arith.constant 0 : index
    %c16_17 = arith.constant 16 : index
    %c0_18 = arith.constant 0 : index
    %17 = vector.load %arg1[%c0_16, %c16_17, %c0_18] : memref<1x256x128xbf16, #tpu.memory_space<vmem>>, vector<1x15x128xbf16>
    %18 = vector.shape_cast %17 : vector<1x15x128xbf16> to vector<15x128xbf16>
    %c0_19 = arith.constant 0 : index
    %c33 = arith.constant 33 : index
    %c0_20 = arith.constant 0 : index
    %19 = vector.load %arg6[%c0_19, %c33, %c0_20] : memref<3x288x128xbf16, #tpu.memory_space<vmem>>, vector<1x15x128xbf16>
    %20 = vector.shape_cast %19 : vector<1x15x128xbf16> to vector<15x128xbf16>
    %21 = vector.shape_cast %18 : vector<15x128xbf16> to vector<1x15x128xbf16>
    tpu.vector_store %arg6[%c0_19, %c33, %c0_20], %21 {strides = array<i32>} : memref<3x288x128xbf16, #tpu.memory_space<vmem>>, vector<1x15x128xbf16>,
    %c0_21 = arith.constant 0 : index
    %c16_22 = arith.constant 16 : index
    %c0_23 = arith.constant 0 : index
    %22 = vector.load %arg1[%c0_21, %c16_22, %c0_23] : memref<1x256x128xbf16, #tpu.memory_space<vmem>>, vector<1x16x128xbf16>
    %23 = vector.shape_cast %22 : vector<1x16x128xbf16> to vector<16x128xbf16>
    %c1_24 = arith.constant 1 : index
    %c32 = arith.constant 32 : index
    %c0_25 = arith.constant 0 : index
    %24 = vector.load %arg6[%c1_24, %c32, %c0_25] : memref<3x288x128xbf16, #tpu.memory_space<vmem>>, vector<1x16x128xbf16>
    %25 = vector.shape_cast %24 : vector<1x16x128xbf16> to vector<16x128xbf16>
    %26 = vector.shape_cast %23 : vector<16x128xbf16> to vector<1x16x128xbf16>
    tpu.vector_store %arg6[%c1_24, %c32, %c0_25], %26 {strides = array<i32>} : memref<3x288x128xbf16, #tpu.memory_space<vmem>>, vector<1x16x128xbf16>,
    %c0_26 = arith.constant 0 : index
    %c17_27 = arith.constant 17 : index
    %c0_28 = arith.constant 0 : index
    %27 = vector.load %arg1[%c0_26, %c17_27, %c0_28] : memref<1x256x128xbf16, #tpu.memory_space<vmem>>, vector<1x15x128xbf16>
    %28 = vector.shape_cast %27 : vector<1x15x128xbf16> to vector<15x128xbf16>
    %c2_29 = arith.constant 2 : index
    %c32_30 = arith.constant 32 : index
    %c0_31 = arith.constant 0 : index
    %29 = vector.load %arg6[%c2_29, %c32_30, %c0_31] : memref<3x288x128xbf16, #tpu.memory_space<vmem>>, vector<1x15x128xbf16>
    %30 = vector.shape_cast %29 : vector<1x15x128xbf16> to vector<15x128xbf16>
    %31 = vector.shape_cast %28 : vector<15x128xbf16> to vector<1x15x128xbf16>
    tpu.vector_store %arg6[%c2_29, %c32_30, %c0_31], %31 {strides = array<i32>} : memref<3x288x128xbf16, #tpu.memory_space<vmem>>, vector<1x15x128xbf16>,
    %c0_32 = arith.constant 0 : index
    %c32_33 = arith.constant 32 : index
    %c0_34 = arith.constant 0 : index
    %32 = vector.load %arg1[%c0_32, %c32_33, %c0_34] : memref<1x256x128xbf16, #tpu.memory_space<vmem>>, vector<1x15x128xbf16>
    %33 = vector.shape_cast %32 : vector<1x15x128xbf16> to vector<15x128xbf16>
    %c0_35 = arith.constant 0 : index
    %c49 = arith.constant 49 : index
    %c0_36 = arith.constant 0 : index
    %34 = vector.load %arg6[%c0_35, %c49, %c0_36] : memref<3x288x128xbf16, #tpu.memory_space<vmem>>, vector<1x15x128xbf16>
    %35 = vector.shape_cast %34 : vector<1x15x128xbf16> to vector<15x128xbf16>
    %36 = vector.shape_cast %33 : vector<15x128xbf16> to vector<1x15x128xbf16>
    tpu.vector_store %arg6[%c0_35, %c49, %c0_36], %36 {strides = array<i32>} : memref<3x288x128xbf16, #tpu.memory_space<vmem>>, vector<1x15x128xbf16>,
    %c0_37 = arith.constant 0 : index
    %c32_38 = arith.constant 32 : index
    %c0_39 = arith.constant 0 : index
    %37 = vector.load %arg1[%c0_37, %c32_38, %c0_39] : memref<1x256x128xbf16, #tpu.memory_space<vmem>>, vector<1x16x128xbf16>
    %38 = vector.shape_cast %37 : vector<1x16x128xbf16> to vector<16x128xbf16>
    %c1_40 = arith.constant 1 : index
    %c48 = arith.constant 48 : index
    %c0_41 = arith.constant 0 : index
    %39 = vector.load %arg6[%c1_40, %c48, %c0_41] : memref<3x288x128xbf16, #tpu.memory_space<vmem>>, vector<1x16x128xbf16>
    %40 = vector.shape_cast %39 : vector<1x16x128xbf16> to vector<16x128xbf16>
    %41 = vector.shape_cast %38 : vector<16x128xbf16> to vector<1x16x128xbf16>
    tpu.vector_store %arg6[%c1_40, %c48, %c0_41], %41 {strides = array<i32>} : memref<3x288x128xbf16, #tpu.memory_space<vmem>>, vector<1x16x128xbf16>,
    %c0_42 = arith.constant 0 : index
    %c33_43 = arith.constant 33 : index
    %c0_44 = arith.constant 0 : index
    %42 = vector.load %arg1[%c0_42, %c33_43, %c0_44] : memref<1x256x128xbf16, #tpu.memory_space<vmem>>, vector<1x15x128xbf16>
    %43 = vector.shape_cast %42 : vector<1x15x128xbf16> to vector<15x128xbf16>
    %c2_45 = arith.constant 2 : index
    %c48_46 = arith.constant 48 : index
    %c0_47 = arith.constant 0 : index
    %44 = vector.load %arg6[%c2_45, %c48_46, %c0_47] : memref<3x288x128xbf16, #tpu.memory_space<vmem>>, vector<1x15x128xbf16>
    %45 = vector.shape_cast %44 : vector<1x15x128xbf16> to vector<15x128xbf16>
    %46 = vector.shape_cast %43 : vector<15x128xbf16> to vector<1x15x128xbf16>
    tpu.vector_store %arg6[%c2_45, %c48_46, %c0_47], %46 {strides = array<i32>} : memref<3x288x128xbf16, #tpu.memory_space<vmem>>, vector<1x15x128xbf16>,
    %c0_48 = arith.constant 0 : index
    %c48_49 = arith.constant 48 : index
    %c0_50 = arith.constant 0 : index
    %47 = vector.load %arg1[%c0_48, %c48_49, %c0_50] : memref<1x256x128xbf16, #tpu.memory_space<vmem>>, vector<1x15x128xbf16>
    %48 = vector.shape_cast %47 : vector<1x15x128xbf16> to vector<15x128xbf16>
    %c0_51 = arith.constant 0 : index
    %c65 = arith.constant 65 : index
    %c0_52 = arith.constant 0 : index
    %49 = vector.load %arg6[%c0_51, %c65, %c0_52] : memref<3x288x128xbf16, #tpu.memory_space<vmem>>, vector<1x15x128xbf16>
    %50 = vector.shape_cast %49 : vector<1x15x128xbf16> to vector<15x128xbf16>
    %51 = vector.shape_cast %48 : vector<15x128xbf16> to vector<1x15x128xbf16>
    tpu.vector_store %arg6[%c0_51, %c65, %c0_52], %51 {strides = array<i32>} : memref<3x288x128xbf16, #tpu.memory_space<vmem>>, vector<1x15x128xbf16>,
    %c0_53 = arith.constant 0 : index
    %c48_54 = arith.constant 48 : index
    %c0_55 = arith.constant 0 : index
    %52 = vector.load %arg1[%c0_53, %c48_54, %c0_55] : memref<1x256x128xbf16, #tpu.memory_space<vmem>>, vector<1x16x128xbf16>
    %53 = vector.shape_cast %52 : vector<1x16x128xbf16> to vector<16x128xbf16>
    %c1_56 = arith.constant 1 : index
    %c64 = arith.constant 64 : index
    %c0_57 = arith.constant 0 : index
    %54 = vector.load %arg6[%c1_56, %c64, %c0_57] : memref<3x288x128xbf16, #tpu.memory_space<vmem>>, vector<1x16x128xbf16>
    %55 = vector.shape_cast %54 : vector<1x16x128xbf16> to vector<16x128xbf16>
    %56 = vector.shape_cast %53 : vector<16x128xbf16> to vector<1x16x128xbf16>
    tpu.vector_store %arg6[%c1_56, %c64, %c0_57], %56 {strides = array<i32>} : memref<3x288x128xbf16, #tpu.memory_space<vmem>>, vector<1x16x128xbf16>,
    %c0_58 = arith.constant 0 : index
    %c49_59 = arith.constant 49 : index
    %c0_60 = arith.constant 0 : index
    %57 = vector.load %arg1[%c0_58, %c49_59, %c0_60] : memref<1x256x128xbf16, #tpu.memory_space<vmem>>, vector<1x15x128xbf16>
    %58 = vector.shape_cast %57 : vector<1x15x128xbf16> to vector<15x128xbf16>
    %c2_61 = arith.constant 2 : index
    %c64_62 = arith.constant 64 : index
    %c0_63 = arith.constant 0 : index
    %59 = vector.load %arg6[%c2_61, %c64_62, %c0_63] : memref<3x288x128xbf16, #tpu.memory_space<vmem>>, vector<1x15x128xbf16>
    %60 = vector.shape_cast %59 : vector<1x15x128xbf16> to vector<15x128xbf16>
    %61 = vector.shape_cast %58 : vector<15x128xbf16> to vector<1x15x128xbf16>
    tpu.vector_store %arg6[%c2_61, %c64_62, %c0_63], %61 {strides = array<i32>} : memref<3x288x128xbf16, #tpu.memory_space<vmem>>, vector<1x15x128xbf16>,
    %c0_64 = arith.constant 0 : index
    %c64_65 = arith.constant 64 : index
    %c0_66 = arith.constant 0 : index
    %62 = vector.load %arg1[%c0_64, %c64_65, %c0_66] : memref<1x256x128xbf16, #tpu.memory_space<vmem>>, vector<1x15x128xbf16>
    %63 = vector.shape_cast %62 : vector<1x15x128xbf16> to vector<15x128xbf16>
    %c0_67 = arith.constant 0 : index
    %c81 = arith.constant 81 : index
    %c0_68 = arith.constant 0 : index
    %64 = vector.load %arg6[%c0_67, %c81, %c0_68] : memref<3x288x128xbf16, #tpu.memory_space<vmem>>, vector<1x15x128xbf16>
    %65 = vector.shape_cast %64 : vector<1x15x128xbf16> to vector<15x128xbf16>
    %66 = vector.shape_cast %63 : vector<15x128xbf16> to vector<1x15x128xbf16>
    tpu.vector_store %arg6[%c0_67, %c81, %c0_68], %66 {strides = array<i32>} : memref<3x288x128xbf16, #tpu.memory_space<vmem>>, vector<1x15x128xbf16>,
    %c0_69 = arith.constant 0 : index
    %c64_70 = arith.constant 64 : index
    %c0_71 = arith.constant 0 : index
    %67 = vector.load %arg1[%c0_69, %c64_70, %c0_71] : memref<1x256x128xbf16, #tpu.memory_space<vmem>>, vector<1x16x128xbf16>
    %68 = vector.shape_cast %67 : vector<1x16x128xbf16> to vector<16x128xbf16>
    %c1_72 = arith.constant 1 : index
    %c80 = arith.constant 80 : index
    %c0_73 = arith.constant 0 : index
    %69 = vector.load %arg6[%c1_72, %c80, %c0_73] : memref<3x288x128xbf16, #tpu.memory_space<vmem>>, vector<1x16x128xbf16>
    %70 = vector.shape_cast %69 : vector<1x16x128xbf16> to vector<16x128xbf16>
    %71 = vector.shape_cast %68 : vector<16x128xbf16> to vector<1x16x128xbf16>
    tpu.vector_store %arg6[%c1_72, %c80, %c0_73], %71 {strides = array<i32>} : memref<3x288x128xbf16, #tpu.memory_space<vmem>>, vector<1x16x128xbf16>,
    %c0_74 = arith.constant 0 : index
    %c65_75 = arith.constant 65 : index
    %c0_76 = arith.constant 0 : index
    %72 = vector.load %arg1[%c0_74, %c65_75, %c0_76] : memref<1x256x128xbf16, #tpu.memory_space<vmem>>, vector<1x15x128xbf16>
    %73 = vector.shape_cast %72 : vector<1x15x128xbf16> to vector<15x128xbf16>
    %c2_77 = arith.constant 2 : index
    %c80_78 = arith.constant 80 : index
    %c0_79 = arith.constant 0 : index
    %74 = vector.load %arg6[%c2_77, %c80_78, %c0_79] : memref<3x288x128xbf16, #tpu.memory_space<vmem>>, vector<1x15x128xbf16>
    %75 = vector.shape_cast %74 : vector<1x15x128xbf16> to vector<15x128xbf16>
    %76 = vector.shape_cast %73 : vector<15x128xbf16> to vector<1x15x128xbf16>
    tpu.vector_store %arg6[%c2_77, %c80_78, %c0_79], %76 {strides = array<i32>} : memref<3x288x128xbf16, #tpu.memory_space<vmem>>, vector<1x15x128xbf16>,
    %c0_80 = arith.constant 0 : index
    %c80_81 = arith.constant 80 : index
    %c0_82 = arith.constant 0 : index
    %77 = vector.load %arg1[%c0_80, %c80_81, %c0_82] : memref<1x256x128xbf16, #tpu.memory_space<vmem>>, vector<1x15x128xbf16>
    %78 = vector.shape_cast %77 : vector<1x15x128xbf16> to vector<15x128xbf16>
    %c0_83 = arith.constant 0 : index
    %c97 = arith.constant 97 : index
    %c0_84 = arith.constant 0 : index
    %79 = vector.load %arg6[%c0_83, %c97, %c0_84] : memref<3x288x128xbf16, #tpu.memory_space<vmem>>, vector<1x15x128xbf16>
    %80 = vector.shape_cast %79 : vector<1x15x128xbf16> to vector<15x128xbf16>
    %81 = vector.shape_cast %78 : vector<15x128xbf16> to vector<1x15x128xbf16>
    tpu.vector_store %arg6[%c0_83, %c97, %c0_84], %81 {strides = array<i32>} : memref<3x288x128xbf16, #tpu.memory_space<vmem>>, vector<1x15x128xbf16>,
    %c0_85 = arith.constant 0 : index
    %c80_86 = arith.constant 80 : index
    %c0_87 = arith.constant 0 : index
    %82 = vector.load %arg1[%c0_85, %c80_86, %c0_87] : memref<1x256x128xbf16, #tpu.memory_space<vmem>>, vector<1x16x128xbf16>
    %83 = vector.shape_cast %82 : vector<1x16x128xbf16> to vector<16x128xbf16>
    %c1_88 = arith.constant 1 : index
    %c96 = arith.constant 96 : index
    %c0_89 = arith.constant 0 : index
    %84 = vector.load %arg6[%c1_88, %c96, %c0_89] : memref<3x288x128xbf16, #tpu.memory_space<vmem>>, vector<1x16x128xbf16>
    %85 = vector.shape_cast %84 : vector<1x16x128xbf16> to vector<16x128xbf16>
    %86 = vector.shape_cast %83 : vector<16x128xbf16> to vector<1x16x128xbf16>
    tpu.vector_store %arg6[%c1_88, %c96, %c0_89], %86 {strides = array<i32>} : memref<3x288x128xbf16, #tpu.memory_space<vmem>>, vector<1x16x128xbf16>,
    %c0_90 = arith.constant 0 : index
    %c81_91 = arith.constant 81 : index
    %c0_92 = arith.constant 0 : index
    %87 = vector.load %arg1[%c0_90, %c81_91, %c0_92] : memref<1x256x128xbf16, #tpu.memory_space<vmem>>, vector<1x15x128xbf16>
    %88 = vector.shape_cast %87 : vector<1x15x128xbf16> to vector<15x128xbf16>
    %c2_93 = arith.constant 2 : index
    %c96_94 = arith.constant 96 : index
    %c0_95 = arith.constant 0 : index
    %89 = vector.load %arg6[%c2_93, %c96_94, %c0_95] : memref<3x288x128xbf16, #tpu.memory_space<vmem>>, vector<1x15x128xbf16>
    %90 = vector.shape_cast %89 : vector<1x15x128xbf16> to vector<15x128xbf16>
    %91 = vector.shape_cast %88 : vector<15x128xbf16> to vector<1x15x128xbf16>
    tpu.vector_store %arg6[%c2_93, %c96_94, %c0_95], %91 {strides = array<i32>} : memref<3x288x128xbf16, #tpu.memory_space<vmem>>, vector<1x15x128xbf16>,
    %c0_96 = arith.constant 0 : index
    %c96_97 = arith.constant 96 : index
    %c0_98 = arith.constant 0 : index
    %92 = vector.load %arg1[%c0_96, %c96_97, %c0_98] : memref<1x256x128xbf16, #tpu.memory_space<vmem>>, vector<1x15x128xbf16>
    %93 = vector.shape_cast %92 : vector<1x15x128xbf16> to vector<15x128xbf16>
    %c0_99 = arith.constant 0 : index
    %c113 = arith.constant 113 : index
    %c0_100 = arith.constant 0 : index
    %94 = vector.load %arg6[%c0_99, %c113, %c0_100] : memref<3x288x128xbf16, #tpu.memory_space<vmem>>, vector<1x15x128xbf16>
    %95 = vector.shape_cast %94 : vector<1x15x128xbf16> to vector<15x128xbf16>
    %96 = vector.shape_cast %93 : vector<15x128xbf16> to vector<1x15x128xbf16>
    tpu.vector_store %arg6[%c0_99, %c113, %c0_100], %96 {strides = array<i32>} : memref<3x288x128xbf16, #tpu.memory_space<vmem>>, vector<1x15x128xbf16>,
    %c0_101 = arith.constant 0 : index
    %c96_102 = arith.constant 96 : index
    %c0_103 = arith.constant 0 : index
    %97 = vector.load %arg1[%c0_101, %c96_102, %c0_103] : memref<1x256x128xbf16, #tpu.memory_space<vmem>>, vector<1x16x128xbf16>
    %98 = vector.shape_cast %97 : vector<1x16x128xbf16> to vector<16x128xbf16>
    %c1_104 = arith.constant 1 : index
    %c112 = arith.constant 112 : index
    %c0_105 = arith.constant 0 : index
    %99 = vector.load %arg6[%c1_104, %c112, %c0_105] : memref<3x288x128xbf16, #tpu.memory_space<vmem>>, vector<1x16x128xbf16>
    %100 = vector.shape_cast %99 : vector<1x16x128xbf16> to vector<16x128xbf16>
    %101 = vector.shape_cast %98 : vector<16x128xbf16> to vector<1x16x128xbf16>
    tpu.vector_store %arg6[%c1_104, %c112, %c0_105], %101 {strides = array<i32>} : memref<3x288x128xbf16, #tpu.memory_space<vmem>>, vector<1x16x128xbf16>,
    %c0_106 = arith.constant 0 : index
    %c97_107 = arith.constant 97 : index
    %c0_108 = arith.constant 0 : index
    %102 = vector.load %arg1[%c0_106, %c97_107, %c0_108] : memref<1x256x128xbf16, #tpu.memory_space<vmem>>, vector<1x15x128xbf16>
    %103 = vector.shape_cast %102 : vector<1x15x128xbf16> to vector<15x128xbf16>
    %c2_109 = arith.constant 2 : index
    %c112_110 = arith.constant 112 : index
    %c0_111 = arith.constant 0 : index
    %104 = vector.load %arg6[%c2_109, %c112_110, %c0_111] : memref<3x288x128xbf16, #tpu.memory_space<vmem>>, vector<1x15x128xbf16>
    %105 = vector.shape_cast %104 : vector<1x15x128xbf16> to vector<15x128xbf16>
    %106 = vector.shape_cast %103 : vector<15x128xbf16> to vector<1x15x128xbf16>
    tpu.vector_store %arg6[%c2_109, %c112_110, %c0_111], %106 {strides = array<i32>} : memref<3x288x128xbf16, #tpu.memory_space<vmem>>, vector<1x15x128xbf16>,
    %c0_112 = arith.constant 0 : index
    %c112_113 = arith.constant 112 : index
    %c0_114 = arith.constant 0 : index
    %107 = vector.load %arg1[%c0_112, %c112_113, %c0_114] : memref<1x256x128xbf16, #tpu.memory_space<vmem>>, vector<1x15x128xbf16>
    %108 = vector.shape_cast %107 : vector<1x15x128xbf16> to vector<15x128xbf16>
    %c0_115 = arith.constant 0 : index
    %c129 = arith.constant 129 : index
    %c0_116 = arith.constant 0 : index
    %109 = vector.load %arg6[%c0_115, %c129, %c0_116] : memref<3x288x128xbf16, #tpu.memory_space<vmem>>, vector<1x15x128xbf16>
    %110 = vector.shape_cast %109 : vector<1x15x128xbf16> to vector<15x128xbf16>
    %111 = vector.shape_cast %108 : vector<15x128xbf16> to vector<1x15x128xbf16>
    tpu.vector_store %arg6[%c0_115, %c129, %c0_116], %111 {strides = array<i32>} : memref<3x288x128xbf16, #tpu.memory_space<vmem>>, vector<1x15x128xbf16>,
    %c0_117 = arith.constant 0 : index
    %c112_118 = arith.constant 112 : index
    %c0_119 = arith.constant 0 : index
    %112 = vector.load %arg1[%c0_117, %c112_118, %c0_119] : memref<1x256x128xbf16, #tpu.memory_space<vmem>>, vector<1x16x128xbf16>
    %113 = vector.shape_cast %112 : vector<1x16x128xbf16> to vector<16x128xbf16>
    %c1_120 = arith.constant 1 : index
    %c128 = arith.constant 128 : index
    %c0_121 = arith.constant 0 : index
    %114 = vector.load %arg6[%c1_120, %c128, %c0_121] : memref<3x288x128xbf16, #tpu.memory_space<vmem>>, vector<1x16x128xbf16>
    %115 = vector.shape_cast %114 : vector<1x16x128xbf16> to vector<16x128xbf16>
    %116 = vector.shape_cast %113 : vector<16x128xbf16> to vector<1x16x128xbf16>
    tpu.vector_store %arg6[%c1_120, %c128, %c0_121], %116 {strides = array<i32>} : memref<3x288x128xbf16, #tpu.memory_space<vmem>>, vector<1x16x128xbf16>,
    %c0_122 = arith.constant 0 : index
    %c113_123 = arith.constant 113 : index
    %c0_124 = arith.constant 0 : index
    %117 = vector.load %arg1[%c0_122, %c113_123, %c0_124] : memref<1x256x128xbf16, #tpu.memory_space<vmem>>, vector<1x15x128xbf16>
    %118 = vector.shape_cast %117 : vector<1x15x128xbf16> to vector<15x128xbf16>
    %c2_125 = arith.constant 2 : index
    %c128_126 = arith.constant 128 : index
    %c0_127 = arith.constant 0 : index
    %119 = vector.load %arg6[%c2_125, %c128_126, %c0_127] : memref<3x288x128xbf16, #tpu.memory_space<vmem>>, vector<1x15x128xbf16>
    %120 = vector.shape_cast %119 : vector<1x15x128xbf16> to vector<15x128xbf16>
    %121 = vector.shape_cast %118 : vector<15x128xbf16> to vector<1x15x128xbf16>
    tpu.vector_store %arg6[%c2_125, %c128_126, %c0_127], %121 {strides = array<i32>} : memref<3x288x128xbf16, #tpu.memory_space<vmem>>, vector<1x15x128xbf16>,
    %c0_128 = arith.constant 0 : index
    %c128_129 = arith.constant 128 : index
    %c0_130 = arith.constant 0 : index
    %122 = vector.load %arg1[%c0_128, %c128_129, %c0_130] : memref<1x256x128xbf16, #tpu.memory_space<vmem>>, vector<1x15x128xbf16>
    %123 = vector.shape_cast %122 : vector<1x15x128xbf16> to vector<15x128xbf16>
    %c0_131 = arith.constant 0 : index
    %c145 = arith.constant 145 : index
    %c0_132 = arith.constant 0 : index
    %124 = vector.load %arg6[%c0_131, %c145, %c0_132] : memref<3x288x128xbf16, #tpu.memory_space<vmem>>, vector<1x15x128xbf16>
    %125 = vector.shape_cast %124 : vector<1x15x128xbf16> to vector<15x128xbf16>
    %126 = vector.shape_cast %123 : vector<15x128xbf16> to vector<1x15x128xbf16>
    tpu.vector_store %arg6[%c0_131, %c145, %c0_132], %126 {strides = array<i32>} : memref<3x288x128xbf16, #tpu.memory_space<vmem>>, vector<1x15x128xbf16>,
    %c0_133 = arith.constant 0 : index
    %c128_134 = arith.constant 128 : index
    %c0_135 = arith.constant 0 : index
    %127 = vector.load %arg1[%c0_133, %c128_134, %c0_135] : memref<1x256x128xbf16, #tpu.memory_space<vmem>>, vector<1x16x128xbf16>
    %128 = vector.shape_cast %127 : vector<1x16x128xbf16> to vector<16x128xbf16>
    %c1_136 = arith.constant 1 : index
    %c144 = arith.constant 144 : index
    %c0_137 = arith.constant 0 : index
    %129 = vector.load %arg6[%c1_136, %c144, %c0_137] : memref<3x288x128xbf16, #tpu.memory_space<vmem>>, vector<1x16x128xbf16>
    %130 = vector.shape_cast %129 : vector<1x16x128xbf16> to vector<16x128xbf16>
    %131 = vector.shape_cast %128 : vector<16x128xbf16> to vector<1x16x128xbf16>
    tpu.vector_store %arg6[%c1_136, %c144, %c0_137], %131 {strides = array<i32>} : memref<3x288x128xbf16, #tpu.memory_space<vmem>>, vector<1x16x128xbf16>,
    %c0_138 = arith.constant 0 : index
    %c129_139 = arith.constant 129 : index
    %c0_140 = arith.constant 0 : index
    %132 = vector.load %arg1[%c0_138, %c129_139, %c0_140] : memref<1x256x128xbf16, #tpu.memory_space<vmem>>, vector<1x15x128xbf16>
    %133 = vector.shape_cast %132 : vector<1x15x128xbf16> to vector<15x128xbf16>
    %c2_141 = arith.constant 2 : index
    %c144_142 = arith.constant 144 : index
    %c0_143 = arith.constant 0 : index
    %134 = vector.load %arg6[%c2_141, %c144_142, %c0_143] : memref<3x288x128xbf16, #tpu.memory_space<vmem>>, vector<1x15x128xbf16>
    %135 = vector.shape_cast %134 : vector<1x15x128xbf16> to vector<15x128xbf16>
    %136 = vector.shape_cast %133 : vector<15x128xbf16> to vector<1x15x128xbf16>
    tpu.vector_store %arg6[%c2_141, %c144_142, %c0_143], %136 {strides = array<i32>} : memref<3x288x128xbf16, #tpu.memory_space<vmem>>, vector<1x15x128xbf16>,
    %c0_144 = arith.constant 0 : index
    %c144_145 = arith.constant 144 : index
    %c0_146 = arith.constant 0 : index
    %137 = vector.load %arg1[%c0_144, %c144_145, %c0_146] : memref<1x256x128xbf16, #tpu.memory_space<vmem>>, vector<1x15x128xbf16>
    %138 = vector.shape_cast %137 : vector<1x15x128xbf16> to vector<15x128xbf16>
    %c0_147 = arith.constant 0 : index
    %c161 = arith.constant 161 : index
    %c0_148 = arith.constant 0 : index
    %139 = vector.load %arg6[%c0_147, %c161, %c0_148] : memref<3x288x128xbf16, #tpu.memory_space<vmem>>, vector<1x15x128xbf16>
    %140 = vector.shape_cast %139 : vector<1x15x128xbf16> to vector<15x128xbf16>
    %141 = vector.shape_cast %138 : vector<15x128xbf16> to vector<1x15x128xbf16>
    tpu.vector_store %arg6[%c0_147, %c161, %c0_148], %141 {strides = array<i32>} : memref<3x288x128xbf16, #tpu.memory_space<vmem>>, vector<1x15x128xbf16>,
    %c0_149 = arith.constant 0 : index
    %c144_150 = arith.constant 144 : index
    %c0_151 = arith.constant 0 : index
    %142 = vector.load %arg1[%c0_149, %c144_150, %c0_151] : memref<1x256x128xbf16, #tpu.memory_space<vmem>>, vector<1x16x128xbf16>
    %143 = vector.shape_cast %142 : vector<1x16x128xbf16> to vector<16x128xbf16>
    %c1_152 = arith.constant 1 : index
    %c160 = arith.constant 160 : index
    %c0_153 = arith.constant 0 : index
    %144 = vector.load %arg6[%c1_152, %c160, %c0_153] : memref<3x288x128xbf16, #tpu.memory_space<vmem>>, vector<1x16x128xbf16>
    %145 = vector.shape_cast %144 : vector<1x16x128xbf16> to vector<16x128xbf16>
    %146 = vector.shape_cast %143 : vector<16x128xbf16> to vector<1x16x128xbf16>
    tpu.vector_store %arg6[%c1_152, %c160, %c0_153], %146 {strides = array<i32>} : memref<3x288x128xbf16, #tpu.memory_space<vmem>>, vector<1x16x128xbf16>,
    %c0_154 = arith.constant 0 : index
    %c145_155 = arith.constant 145 : index
    %c0_156 = arith.constant 0 : index
    %147 = vector.load %arg1[%c0_154, %c145_155, %c0_156] : memref<1x256x128xbf16, #tpu.memory_space<vmem>>, vector<1x15x128xbf16>
    %148 = vector.shape_cast %147 : vector<1x15x128xbf16> to vector<15x128xbf16>
    %c2_157 = arith.constant 2 : index
    %c160_158 = arith.constant 160 : index
    %c0_159 = arith.constant 0 : index
    %149 = vector.load %arg6[%c2_157, %c160_158, %c0_159] : memref<3x288x128xbf16, #tpu.memory_space<vmem>>, vector<1x15x128xbf16>
    %150 = vector.shape_cast %149 : vector<1x15x128xbf16> to vector<15x128xbf16>
    %151 = vector.shape_cast %148 : vector<15x128xbf16> to vector<1x15x128xbf16>
    tpu.vector_store %arg6[%c2_157, %c160_158, %c0_159], %151 {strides = array<i32>} : memref<3x288x128xbf16, #tpu.memory_space<vmem>>, vector<1x15x128xbf16>,
    %c0_160 = arith.constant 0 : index
    %c160_161 = arith.constant 160 : index
    %c0_162 = arith.constant 0 : index
    %152 = vector.load %arg1[%c0_160, %c160_161, %c0_162] : memref<1x256x128xbf16, #tpu.memory_space<vmem>>, vector<1x15x128xbf16>
    %153 = vector.shape_cast %152 : vector<1x15x128xbf16> to vector<15x128xbf16>
    %c0_163 = arith.constant 0 : index
    %c177 = arith.constant 177 : index
    %c0_164 = arith.constant 0 : index
    %154 = vector.load %arg6[%c0_163, %c177, %c0_164] : memref<3x288x128xbf16, #tpu.memory_space<vmem>>, vector<1x15x128xbf16>
    %155 = vector.shape_cast %154 : vector<1x15x128xbf16> to vector<15x128xbf16>
    %156 = vector.shape_cast %153 : vector<15x128xbf16> to vector<1x15x128xbf16>
    tpu.vector_store %arg6[%c0_163, %c177, %c0_164], %156 {strides = array<i32>} : memref<3x288x128xbf16, #tpu.memory_space<vmem>>, vector<1x15x128xbf16>,
    %c0_165 = arith.constant 0 : index
    %c160_166 = arith.constant 160 : index
    %c0_167 = arith.constant 0 : index
    %157 = vector.load %arg1[%c0_165, %c160_166, %c0_167] : memref<1x256x128xbf16, #tpu.memory_space<vmem>>, vector<1x16x128xbf16>
    %158 = vector.shape_cast %157 : vector<1x16x128xbf16> to vector<16x128xbf16>
    %c1_168 = arith.constant 1 : index
    %c176 = arith.constant 176 : index
    %c0_169 = arith.constant 0 : index
    %159 = vector.load %arg6[%c1_168, %c176, %c0_169] : memref<3x288x128xbf16, #tpu.memory_space<vmem>>, vector<1x16x128xbf16>
    %160 = vector.shape_cast %159 : vector<1x16x128xbf16> to vector<16x128xbf16>
    %161 = vector.shape_cast %158 : vector<16x128xbf16> to vector<1x16x128xbf16>
    tpu.vector_store %arg6[%c1_168, %c176, %c0_169], %161 {strides = array<i32>} : memref<3x288x128xbf16, #tpu.memory_space<vmem>>, vector<1x16x128xbf16>,
    %c0_170 = arith.constant 0 : index
    %c161_171 = arith.constant 161 : index
    %c0_172 = arith.constant 0 : index
    %162 = vector.load %arg1[%c0_170, %c161_171, %c0_172] : memref<1x256x128xbf16, #tpu.memory_space<vmem>>, vector<1x15x128xbf16>
    %163 = vector.shape_cast %162 : vector<1x15x128xbf16> to vector<15x128xbf16>
    %c2_173 = arith.constant 2 : index
    %c176_174 = arith.constant 176 : index
    %c0_175 = arith.constant 0 : index
    %164 = vector.load %arg6[%c2_173, %c176_174, %c0_175] : memref<3x288x128xbf16, #tpu.memory_space<vmem>>, vector<1x15x128xbf16>
    %165 = vector.shape_cast %164 : vector<1x15x128xbf16> to vector<15x128xbf16>
    %166 = vector.shape_cast %163 : vector<15x128xbf16> to vector<1x15x128xbf16>
    tpu.vector_store %arg6[%c2_173, %c176_174, %c0_175], %166 {strides = array<i32>} : memref<3x288x128xbf16, #tpu.memory_space<vmem>>, vector<1x15x128xbf16>,
    %c0_176 = arith.constant 0 : index
    %c176_177 = arith.constant 176 : index
    %c0_178 = arith.constant 0 : index
    %167 = vector.load %arg1[%c0_176, %c176_177, %c0_178] : memref<1x256x128xbf16, #tpu.memory_space<vmem>>, vector<1x15x128xbf16>
    %168 = vector.shape_cast %167 : vector<1x15x128xbf16> to vector<15x128xbf16>
    %c0_179 = arith.constant 0 : index
    %c193 = arith.constant 193 : index
    %c0_180 = arith.constant 0 : index
    %169 = vector.load %arg6[%c0_179, %c193, %c0_180] : memref<3x288x128xbf16, #tpu.memory_space<vmem>>, vector<1x15x128xbf16>
    %170 = vector.shape_cast %169 : vector<1x15x128xbf16> to vector<15x128xbf16>
    %171 = vector.shape_cast %168 : vector<15x128xbf16> to vector<1x15x128xbf16>
    tpu.vector_store %arg6[%c0_179, %c193, %c0_180], %171 {strides = array<i32>} : memref<3x288x128xbf16, #tpu.memory_space<vmem>>, vector<1x15x128xbf16>,
    %c0_181 = arith.constant 0 : index
    %c176_182 = arith.constant 176 : index
    %c0_183 = arith.constant 0 : index
    %172 = vector.load %arg1[%c0_181, %c176_182, %c0_183] : memref<1x256x128xbf16, #tpu.memory_space<vmem>>, vector<1x16x128xbf16>
    %173 = vector.shape_cast %172 : vector<1x16x128xbf16> to vector<16x128xbf16>
    %c1_184 = arith.constant 1 : index
    %c192 = arith.constant 192 : index
    %c0_185 = arith.constant 0 : index
    %174 = vector.load %arg6[%c1_184, %c192, %c0_185] : memref<3x288x128xbf16, #tpu.memory_space<vmem>>, vector<1x16x128xbf16>
    %175 = vector.shape_cast %174 : vector<1x16x128xbf16> to vector<16x128xbf16>
    %176 = vector.shape_cast %173 : vector<16x128xbf16> to vector<1x16x128xbf16>
    tpu.vector_store %arg6[%c1_184, %c192, %c0_185], %176 {strides = array<i32>} : memref<3x288x128xbf16, #tpu.memory_space<vmem>>, vector<1x16x128xbf16>,
    %c0_186 = arith.constant 0 : index
    %c177_187 = arith.constant 177 : index
    %c0_188 = arith.constant 0 : index
    %177 = vector.load %arg1[%c0_186, %c177_187, %c0_188] : memref<1x256x128xbf16, #tpu.memory_space<vmem>>, vector<1x15x128xbf16>
    %178 = vector.shape_cast %177 : vector<1x15x128xbf16> to vector<15x128xbf16>
    %c2_189 = arith.constant 2 : index
    %c192_190 = arith.constant 192 : index
    %c0_191 = arith.constant 0 : index
    %179 = vector.load %arg6[%c2_189, %c192_190, %c0_191] : memref<3x288x128xbf16, #tpu.memory_space<vmem>>, vector<1x15x128xbf16>
    %180 = vector.shape_cast %179 : vector<1x15x128xbf16> to vector<15x128xbf16>
    %181 = vector.shape_cast %178 : vector<15x128xbf16> to vector<1x15x128xbf16>
    tpu.vector_store %arg6[%c2_189, %c192_190, %c0_191], %181 {strides = array<i32>} : memref<3x288x128xbf16, #tpu.memory_space<vmem>>, vector<1x15x128xbf16>,
    %c0_192 = arith.constant 0 : index
    %c192_193 = arith.constant 192 : index
    %c0_194 = arith.constant 0 : index
    %182 = vector.load %arg1[%c0_192, %c192_193, %c0_194] : memref<1x256x128xbf16, #tpu.memory_space<vmem>>, vector<1x15x128xbf16>
    %183 = vector.shape_cast %182 : vector<1x15x128xbf16> to vector<15x128xbf16>
    %c0_195 = arith.constant 0 : index
    %c209 = arith.constant 209 : index
    %c0_196 = arith.constant 0 : index
    %184 = vector.load %arg6[%c0_195, %c209, %c0_196] : memref<3x288x128xbf16, #tpu.memory_space<vmem>>, vector<1x15x128xbf16>
    %185 = vector.shape_cast %184 : vector<1x15x128xbf16> to vector<15x128xbf16>
    %186 = vector.shape_cast %183 : vector<15x128xbf16> to vector<1x15x128xbf16>
    tpu.vector_store %arg6[%c0_195, %c209, %c0_196], %186 {strides = array<i32>} : memref<3x288x128xbf16, #tpu.memory_space<vmem>>, vector<1x15x128xbf16>,
    %c0_197 = arith.constant 0 : index
    %c192_198 = arith.constant 192 : index
    %c0_199 = arith.constant 0 : index
    %187 = vector.load %arg1[%c0_197, %c192_198, %c0_199] : memref<1x256x128xbf16, #tpu.memory_space<vmem>>, vector<1x16x128xbf16>
    %188 = vector.shape_cast %187 : vector<1x16x128xbf16> to vector<16x128xbf16>
    %c1_200 = arith.constant 1 : index
    %c208 = arith.constant 208 : index
    %c0_201 = arith.constant 0 : index
    %189 = vector.load %arg6[%c1_200, %c208, %c0_201] : memref<3x288x128xbf16, #tpu.memory_space<vmem>>, vector<1x16x128xbf16>
    %190 = vector.shape_cast %189 : vector<1x16x128xbf16> to vector<16x128xbf16>
    %191 = vector.shape_cast %188 : vector<16x128xbf16> to vector<1x16x128xbf16>
    tpu.vector_store %arg6[%c1_200, %c208, %c0_201], %191 {strides = array<i32>} : memref<3x288x128xbf16, #tpu.memory_space<vmem>>, vector<1x16x128xbf16>,
    %c0_202 = arith.constant 0 : index
    %c193_203 = arith.constant 193 : index
    %c0_204 = arith.constant 0 : index
    %192 = vector.load %arg1[%c0_202, %c193_203, %c0_204] : memref<1x256x128xbf16, #tpu.memory_space<vmem>>, vector<1x15x128xbf16>
    %193 = vector.shape_cast %192 : vector<1x15x128xbf16> to vector<15x128xbf16>
    %c2_205 = arith.constant 2 : index
    %c208_206 = arith.constant 208 : index
    %c0_207 = arith.constant 0 : index
    %194 = vector.load %arg6[%c2_205, %c208_206, %c0_207] : memref<3x288x128xbf16, #tpu.memory_space<vmem>>, vector<1x15x128xbf16>
    %195 = vector.shape_cast %194 : vector<1x15x128xbf16> to vector<15x128xbf16>
    %196 = vector.shape_cast %193 : vector<15x128xbf16> to vector<1x15x128xbf16>
    tpu.vector_store %arg6[%c2_205, %c208_206, %c0_207], %196 {strides = array<i32>} : memref<3x288x128xbf16, #tpu.memory_space<vmem>>, vector<1x15x128xbf16>,
    %c0_208 = arith.constant 0 : index
    %c208_209 = arith.constant 208 : index
    %c0_210 = arith.constant 0 : index
    %197 = vector.load %arg1[%c0_208, %c208_209, %c0_210] : memref<1x256x128xbf16, #tpu.memory_space<vmem>>, vector<1x15x128xbf16>
    %198 = vector.shape_cast %197 : vector<1x15x128xbf16> to vector<15x128xbf16>
    %c0_211 = arith.constant 0 : index
    %c225 = arith.constant 225 : index
    %c0_212 = arith.constant 0 : index
    %199 = vector.load %arg6[%c0_211, %c225, %c0_212] : memref<3x288x128xbf16, #tpu.memory_space<vmem>>, vector<1x15x128xbf16>
    %200 = vector.shape_cast %199 : vector<1x15x128xbf16> to vector<15x128xbf16>
    %201 = vector.shape_cast %198 : vector<15x128xbf16> to vector<1x15x128xbf16>
    tpu.vector_store %arg6[%c0_211, %c225, %c0_212], %201 {strides = array<i32>} : memref<3x288x128xbf16, #tpu.memory_space<vmem>>, vector<1x15x128xbf16>,
    %c0_213 = arith.constant 0 : index
    %c208_214 = arith.constant 208 : index
    %c0_215 = arith.constant 0 : index
    %202 = vector.load %arg1[%c0_213, %c208_214, %c0_215] : memref<1x256x128xbf16, #tpu.memory_space<vmem>>, vector<1x16x128xbf16>
    %203 = vector.shape_cast %202 : vector<1x16x128xbf16> to vector<16x128xbf16>
    %c1_216 = arith.constant 1 : index
    %c224 = arith.constant 224 : index
    %c0_217 = arith.constant 0 : index
    %204 = vector.load %arg6[%c1_216, %c224, %c0_217] : memref<3x288x128xbf16, #tpu.memory_space<vmem>>, vector<1x16x128xbf16>
    %205 = vector.shape_cast %204 : vector<1x16x128xbf16> to vector<16x128xbf16>
    %206 = vector.shape_cast %203 : vector<16x128xbf16> to vector<1x16x128xbf16>
    tpu.vector_store %arg6[%c1_216, %c224, %c0_217], %206 {strides = array<i32>} : memref<3x288x128xbf16, #tpu.memory_space<vmem>>, vector<1x16x128xbf16>,
    %c0_218 = arith.constant 0 : index
    %c209_219 = arith.constant 209 : index
    %c0_220 = arith.constant 0 : index
    %207 = vector.load %arg1[%c0_218, %c209_219, %c0_220] : memref<1x256x128xbf16, #tpu.memory_space<vmem>>, vector<1x15x128xbf16>
    %208 = vector.shape_cast %207 : vector<1x15x128xbf16> to vector<15x128xbf16>
    %c2_221 = arith.constant 2 : index
    %c224_222 = arith.constant 224 : index
    %c0_223 = arith.constant 0 : index
    %209 = vector.load %arg6[%c2_221, %c224_222, %c0_223] : memref<3x288x128xbf16, #tpu.memory_space<vmem>>, vector<1x15x128xbf16>
    %210 = vector.shape_cast %209 : vector<1x15x128xbf16> to vector<15x128xbf16>
    %211 = vector.shape_cast %208 : vector<15x128xbf16> to vector<1x15x128xbf16>
    tpu.vector_store %arg6[%c2_221, %c224_222, %c0_223], %211 {strides = array<i32>} : memref<3x288x128xbf16, #tpu.memory_space<vmem>>, vector<1x15x128xbf16>,
    %c0_224 = arith.constant 0 : index
    %c224_225 = arith.constant 224 : index
    %c0_226 = arith.constant 0 : index
    %212 = vector.load %arg1[%c0_224, %c224_225, %c0_226] : memref<1x256x128xbf16, #tpu.memory_space<vmem>>, vector<1x15x128xbf16>
    %213 = vector.shape_cast %212 : vector<1x15x128xbf16> to vector<15x128xbf16>
    %c0_227 = arith.constant 0 : index
    %c241 = arith.constant 241 : index
    %c0_228 = arith.constant 0 : index
    %214 = vector.load %arg6[%c0_227, %c241, %c0_228] : memref<3x288x128xbf16, #tpu.memory_space<vmem>>, vector<1x15x128xbf16>
    %215 = vector.shape_cast %214 : vector<1x15x128xbf16> to vector<15x128xbf16>
    %216 = vector.shape_cast %213 : vector<15x128xbf16> to vector<1x15x128xbf16>
    tpu.vector_store %arg6[%c0_227, %c241, %c0_228], %216 {strides = array<i32>} : memref<3x288x128xbf16, #tpu.memory_space<vmem>>, vector<1x15x128xbf16>,
    %c0_229 = arith.constant 0 : index
    %c224_230 = arith.constant 224 : index
    %c0_231 = arith.constant 0 : index
    %217 = vector.load %arg1[%c0_229, %c224_230, %c0_231] : memref<1x256x128xbf16, #tpu.memory_space<vmem>>, vector<1x16x128xbf16>
    %218 = vector.shape_cast %217 : vector<1x16x128xbf16> to vector<16x128xbf16>
    %c1_232 = arith.constant 1 : index
    %c240 = arith.constant 240 : index
    %c0_233 = arith.constant 0 : index
    %219 = vector.load %arg6[%c1_232, %c240, %c0_233] : memref<3x288x128xbf16, #tpu.memory_space<vmem>>, vector<1x16x128xbf16>
    %220 = vector.shape_cast %219 : vector<1x16x128xbf16> to vector<16x128xbf16>
    %221 = vector.shape_cast %218 : vector<16x128xbf16> to vector<1x16x128xbf16>
    tpu.vector_store %arg6[%c1_232, %c240, %c0_233], %221 {strides = array<i32>} : memref<3x288x128xbf16, #tpu.memory_space<vmem>>, vector<1x16x128xbf16>,
    %c0_234 = arith.constant 0 : index
    %c225_235 = arith.constant 225 : index
    %c0_236 = arith.constant 0 : index
    %222 = vector.load %arg1[%c0_234, %c225_235, %c0_236] : memref<1x256x128xbf16, #tpu.memory_space<vmem>>, vector<1x15x128xbf16>
    %223 = vector.shape_cast %222 : vector<1x15x128xbf16> to vector<15x128xbf16>
    %c2_237 = arith.constant 2 : index
    %c240_238 = arith.constant 240 : index
    %c0_239 = arith.constant 0 : index
    %224 = vector.load %arg6[%c2_237, %c240_238, %c0_239] : memref<3x288x128xbf16, #tpu.memory_space<vmem>>, vector<1x15x128xbf16>
    %225 = vector.shape_cast %224 : vector<1x15x128xbf16> to vector<15x128xbf16>
    %226 = vector.shape_cast %223 : vector<15x128xbf16> to vector<1x15x128xbf16>
    tpu.vector_store %arg6[%c2_237, %c240_238, %c0_239], %226 {strides = array<i32>} : memref<3x288x128xbf16, #tpu.memory_space<vmem>>, vector<1x15x128xbf16>,
    %c0_240 = arith.constant 0 : index
    %c240_241 = arith.constant 240 : index
    %c0_242 = arith.constant 0 : index
    %227 = vector.load %arg1[%c0_240, %c240_241, %c0_242] : memref<1x256x128xbf16, #tpu.memory_space<vmem>>, vector<1x15x128xbf16>
    %228 = vector.shape_cast %227 : vector<1x15x128xbf16> to vector<15x128xbf16>
    %c0_243 = arith.constant 0 : index
    %c257 = arith.constant 257 : index
    %c0_244 = arith.constant 0 : index
    %229 = vector.load %arg6[%c0_243, %c257, %c0_244] : memref<3x288x128xbf16, #tpu.memory_space<vmem>>, vector<1x15x128xbf16>
    %230 = vector.shape_cast %229 : vector<1x15x128xbf16> to vector<15x128xbf16>
    %231 = vector.shape_cast %228 : vector<15x128xbf16> to vector<1x15x128xbf16>
    tpu.vector_store %arg6[%c0_243, %c257, %c0_244], %231 {strides = array<i32>} : memref<3x288x128xbf16, #tpu.memory_space<vmem>>, vector<1x15x128xbf16>,
    %c0_245 = arith.constant 0 : index
    %c240_246 = arith.constant 240 : index
    %c0_247 = arith.constant 0 : index
    %232 = vector.load %arg1[%c0_245, %c240_246, %c0_247] : memref<1x256x128xbf16, #tpu.memory_space<vmem>>, vector<1x16x128xbf16>
    %233 = vector.shape_cast %232 : vector<1x16x128xbf16> to vector<16x128xbf16>
    %c1_248 = arith.constant 1 : index
    %c256 = arith.constant 256 : index
    %c0_249 = arith.constant 0 : index
    %234 = vector.load %arg6[%c1_248, %c256, %c0_249] : memref<3x288x128xbf16, #tpu.memory_space<vmem>>, vector<1x16x128xbf16>
    %235 = vector.shape_cast %234 : vector<1x16x128xbf16> to vector<16x128xbf16>
    %236 = vector.shape_cast %233 : vector<16x128xbf16> to vector<1x16x128xbf16>
    tpu.vector_store %arg6[%c1_248, %c256, %c0_249], %236 {strides = array<i32>} : memref<3x288x128xbf16, #tpu.memory_space<vmem>>, vector<1x16x128xbf16>,
    %c0_250 = arith.constant 0 : index
    %c241_251 = arith.constant 241 : index
    %c0_252 = arith.constant 0 : index
    %237 = vector.load %arg1[%c0_250, %c241_251, %c0_252] : memref<1x256x128xbf16, #tpu.memory_space<vmem>>, vector<1x15x128xbf16>
    %238 = vector.shape_cast %237 : vector<1x15x128xbf16> to vector<15x128xbf16>
    %c2_253 = arith.constant 2 : index
    %c256_254 = arith.constant 256 : index
    %c0_255 = arith.constant 0 : index
    %239 = vector.load %arg6[%c2_253, %c256_254, %c0_255] : memref<3x288x128xbf16, #tpu.memory_space<vmem>>, vector<1x15x128xbf16>
    %240 = vector.shape_cast %239 : vector<1x15x128xbf16> to vector<15x128xbf16>
    %241 = vector.shape_cast %238 : vector<15x128xbf16> to vector<1x15x128xbf16>
    tpu.vector_store %arg6[%c2_253, %c256_254, %c0_255], %241 {strides = array<i32>} : memref<3x288x128xbf16, #tpu.memory_space<vmem>>, vector<1x15x128xbf16>,
    %cst_256 = arith.constant 0.000000e+00 : f32
    %242 = vector.broadcast %cst_256 : f32 to vector<256x128xf32>
    %c0_257 = arith.constant 0 : index
    %c0_258 = arith.constant 0 : index
    %243 = vector.load %arg7[%c0_257, %c0_258] : memref<256x128xf32, #tpu.memory_space<vmem>>, vector<256x128xf32>
    tpu.vector_store %arg7[%c0_257, %c0_258], %242 {strides = array<i32>} : memref<256x128xf32, #tpu.memory_space<vmem>>, vector<256x128xf32>,
    %c0_259 = arith.constant 0 : index
    %c0_260 = arith.constant 0 : index
    %c0_261 = arith.constant 0 : index
    %244 = vector.load %arg6[%c0_259, %c0_260, %c0_261] : memref<3x288x128xbf16, #tpu.memory_space<vmem>>, vector<1x256x128xbf16>
    %245 = vector.shape_cast %244 : vector<1x256x128xbf16> to vector<256x128xbf16>
    %c0_262 = arith.constant 0 : index
    %c0_263 = arith.constant 0 : index
    %246 = vector.load %arg7[%c0_262, %c0_263] : memref<256x128xf32, #tpu.memory_space<vmem>>, vector<256x128xf32>
    %c0_264 = arith.constant 0 : index
    %c0_265 = arith.constant 0 : index
    %c0_266 = arith.constant 0 : index
    %247 = vector.load %arg2[%c0_264, %c0_265, %c0_266] : memref<9x128x128xbf16, #tpu.memory_space<vmem>>, vector<1x128x128xbf16>
    %248 = vector.shape_cast %247 : vector<1x128x128xbf16> to vector<128x128xbf16>
    %cst_267 = arith.constant dense<0.000000e+00> : vector<256x128xf32>
    %249 = tpu.matmul %245, %248, %cst_267 {dimension_numbers = #tpu.dot_dimension_numbers<[1], [0], [0], [1], [0, 0, 1, 1], [], []>} : vector<256x128xbf16>, vector<128x128xbf16>, vector<256x128xf32> -> vector<256x128xf32>
    %250 = arith.addf %246, %249 : vector<256x128xf32>
    %c0_268 = arith.constant 0 : index
    %c0_269 = arith.constant 0 : index
    %251 = vector.load %arg7[%c0_268, %c0_269] : memref<256x128xf32, #tpu.memory_space<vmem>>, vector<256x128xf32>
    tpu.vector_store %arg7[%c0_268, %c0_269], %250 {strides = array<i32>} : memref<256x128xf32, #tpu.memory_space<vmem>>, vector<256x128xf32>,
    %c1_270 = arith.constant 1 : index
    %c0_271 = arith.constant 0 : index
    %c0_272 = arith.constant 0 : index
    %252 = vector.load %arg6[%c1_270, %c0_271, %c0_272] : memref<3x288x128xbf16, #tpu.memory_space<vmem>>, vector<1x256x128xbf16>
    %253 = vector.shape_cast %252 : vector<1x256x128xbf16> to vector<256x128xbf16>
    %c0_273 = arith.constant 0 : index
    %c0_274 = arith.constant 0 : index
    %254 = vector.load %arg7[%c0_273, %c0_274] : memref<256x128xf32, #tpu.memory_space<vmem>>, vector<256x128xf32>
    %c1_275 = arith.constant 1 : index
    %c0_276 = arith.constant 0 : index
    %c0_277 = arith.constant 0 : index
    %255 = vector.load %arg2[%c1_275, %c0_276, %c0_277] : memref<9x128x128xbf16, #tpu.memory_space<vmem>>, vector<1x128x128xbf16>
    %256 = vector.shape_cast %255 : vector<1x128x128xbf16> to vector<128x128xbf16>
    %cst_278 = arith.constant dense<0.000000e+00> : vector<256x128xf32>
    %257 = tpu.matmul %253, %256, %cst_278 {dimension_numbers = #tpu.dot_dimension_numbers<[1], [0], [0], [1], [0, 0, 1, 1], [], []>} : vector<256x128xbf16>, vector<128x128xbf16>, vector<256x128xf32> -> vector<256x128xf32>
    %258 = arith.addf %254, %257 : vector<256x128xf32>
    %c0_279 = arith.constant 0 : index
    %c0_280 = arith.constant 0 : index
    %259 = vector.load %arg7[%c0_279, %c0_280] : memref<256x128xf32, #tpu.memory_space<vmem>>, vector<256x128xf32>
    tpu.vector_store %arg7[%c0_279, %c0_280], %258 {strides = array<i32>} : memref<256x128xf32, #tpu.memory_space<vmem>>, vector<256x128xf32>,
    %c2_281 = arith.constant 2 : index
    %c0_282 = arith.constant 0 : index
    %c0_283 = arith.constant 0 : index
    %260 = vector.load %arg6[%c2_281, %c0_282, %c0_283] : memref<3x288x128xbf16, #tpu.memory_space<vmem>>, vector<1x256x128xbf16>
    %261 = vector.shape_cast %260 : vector<1x256x128xbf16> to vector<256x128xbf16>
    %c0_284 = arith.constant 0 : index
    %c0_285 = arith.constant 0 : index
    %262 = vector.load %arg7[%c0_284, %c0_285] : memref<256x128xf32, #tpu.memory_space<vmem>>, vector<256x128xf32>
    %c2_286 = arith.constant 2 : index
    %c0_287 = arith.constant 0 : index
    %c0_288 = arith.constant 0 : index
    %263 = vector.load %arg2[%c2_286, %c0_287, %c0_288] : memref<9x128x128xbf16, #tpu.memory_space<vmem>>, vector<1x128x128xbf16>
    %264 = vector.shape_cast %263 : vector<1x128x128xbf16> to vector<128x128xbf16>
    %cst_289 = arith.constant dense<0.000000e+00> : vector<256x128xf32>
    %265 = tpu.matmul %261, %264, %cst_289 {dimension_numbers = #tpu.dot_dimension_numbers<[1], [0], [0], [1], [0, 0, 1, 1], [], []>} : vector<256x128xbf16>, vector<128x128xbf16>, vector<256x128xf32> -> vector<256x128xf32>
    %266 = arith.addf %262, %265 : vector<256x128xf32>
    %c0_290 = arith.constant 0 : index
    %c0_291 = arith.constant 0 : index
    %267 = vector.load %arg7[%c0_290, %c0_291] : memref<256x128xf32, #tpu.memory_space<vmem>>, vector<256x128xf32>
    tpu.vector_store %arg7[%c0_290, %c0_291], %266 {strides = array<i32>} : memref<256x128xf32, #tpu.memory_space<vmem>>, vector<256x128xf32>,
    %c0_292 = arith.constant 0 : index
    %c16_293 = arith.constant 16 : index
    %c0_294 = arith.constant 0 : index
    %268 = vector.load %arg6[%c0_292, %c16_293, %c0_294] : memref<3x288x128xbf16, #tpu.memory_space<vmem>>, vector<1x256x128xbf16>
    %269 = vector.shape_cast %268 : vector<1x256x128xbf16> to vector<256x128xbf16>
    %c0_295 = arith.constant 0 : index
    %c0_296 = arith.constant 0 : index
    %270 = vector.load %arg7[%c0_295, %c0_296] : memref<256x128xf32, #tpu.memory_space<vmem>>, vector<256x128xf32>
    %c3 = arith.constant 3 : index
    %c0_297 = arith.constant 0 : index
    %c0_298 = arith.constant 0 : index
    %271 = vector.load %arg2[%c3, %c0_297, %c0_298] : memref<9x128x128xbf16, #tpu.memory_space<vmem>>, vector<1x128x128xbf16>
    %272 = vector.shape_cast %271 : vector<1x128x128xbf16> to vector<128x128xbf16>
    %cst_299 = arith.constant dense<0.000000e+00> : vector<256x128xf32>
    %273 = tpu.matmul %269, %272, %cst_299 {dimension_numbers = #tpu.dot_dimension_numbers<[1], [0], [0], [1], [0, 0, 1, 1], [], []>} : vector<256x128xbf16>, vector<128x128xbf16>, vector<256x128xf32> -> vector<256x128xf32>
    %274 = arith.addf %270, %273 : vector<256x128xf32>
    %c0_300 = arith.constant 0 : index
    %c0_301 = arith.constant 0 : index
    %275 = vector.load %arg7[%c0_300, %c0_301] : memref<256x128xf32, #tpu.memory_space<vmem>>, vector<256x128xf32>
    tpu.vector_store %arg7[%c0_300, %c0_301], %274 {strides = array<i32>} : memref<256x128xf32, #tpu.memory_space<vmem>>, vector<256x128xf32>,
    %c1_302 = arith.constant 1 : index
    %c16_303 = arith.constant 16 : index
    %c0_304 = arith.constant 0 : index
    %276 = vector.load %arg6[%c1_302, %c16_303, %c0_304] : memref<3x288x128xbf16, #tpu.memory_space<vmem>>, vector<1x256x128xbf16>
    %277 = vector.shape_cast %276 : vector<1x256x128xbf16> to vector<256x128xbf16>
    %c0_305 = arith.constant 0 : index
    %c0_306 = arith.constant 0 : index
    %278 = vector.load %arg7[%c0_305, %c0_306] : memref<256x128xf32, #tpu.memory_space<vmem>>, vector<256x128xf32>
    %c4 = arith.constant 4 : index
    %c0_307 = arith.constant 0 : index
    %c0_308 = arith.constant 0 : index
    %279 = vector.load %arg2[%c4, %c0_307, %c0_308] : memref<9x128x128xbf16, #tpu.memory_space<vmem>>, vector<1x128x128xbf16>
    %280 = vector.shape_cast %279 : vector<1x128x128xbf16> to vector<128x128xbf16>
    %cst_309 = arith.constant dense<0.000000e+00> : vector<256x128xf32>
    %281 = tpu.matmul %277, %280, %cst_309 {dimension_numbers = #tpu.dot_dimension_numbers<[1], [0], [0], [1], [0, 0, 1, 1], [], []>} : vector<256x128xbf16>, vector<128x128xbf16>, vector<256x128xf32> -> vector<256x128xf32>
    %282 = arith.addf %278, %281 : vector<256x128xf32>
    %c0_310 = arith.constant 0 : index
    %c0_311 = arith.constant 0 : index
    %283 = vector.load %arg7[%c0_310, %c0_311] : memref<256x128xf32, #tpu.memory_space<vmem>>, vector<256x128xf32>
    tpu.vector_store %arg7[%c0_310, %c0_311], %282 {strides = array<i32>} : memref<256x128xf32, #tpu.memory_space<vmem>>, vector<256x128xf32>,
    %c2_312 = arith.constant 2 : index
    %c16_313 = arith.constant 16 : index
    %c0_314 = arith.constant 0 : index
    %284 = vector.load %arg6[%c2_312, %c16_313, %c0_314] : memref<3x288x128xbf16, #tpu.memory_space<vmem>>, vector<1x256x128xbf16>
    %285 = vector.shape_cast %284 : vector<1x256x128xbf16> to vector<256x128xbf16>
    %c0_315 = arith.constant 0 : index
    %c0_316 = arith.constant 0 : index
    %286 = vector.load %arg7[%c0_315, %c0_316] : memref<256x128xf32, #tpu.memory_space<vmem>>, vector<256x128xf32>
    %c5 = arith.constant 5 : index
    %c0_317 = arith.constant 0 : index
    %c0_318 = arith.constant 0 : index
    %287 = vector.load %arg2[%c5, %c0_317, %c0_318] : memref<9x128x128xbf16, #tpu.memory_space<vmem>>, vector<1x128x128xbf16>
    %288 = vector.shape_cast %287 : vector<1x128x128xbf16> to vector<128x128xbf16>
    %cst_319 = arith.constant dense<0.000000e+00> : vector<256x128xf32>
    %289 = tpu.matmul %285, %288, %cst_319 {dimension_numbers = #tpu.dot_dimension_numbers<[1], [0], [0], [1], [0, 0, 1, 1], [], []>} : vector<256x128xbf16>, vector<128x128xbf16>, vector<256x128xf32> -> vector<256x128xf32>
    %290 = arith.addf %286, %289 : vector<256x128xf32>
    %c0_320 = arith.constant 0 : index
    %c0_321 = arith.constant 0 : index
    %291 = vector.load %arg7[%c0_320, %c0_321] : memref<256x128xf32, #tpu.memory_space<vmem>>, vector<256x128xf32>
    tpu.vector_store %arg7[%c0_320, %c0_321], %290 {strides = array<i32>} : memref<256x128xf32, #tpu.memory_space<vmem>>, vector<256x128xf32>,
    %c0_322 = arith.constant 0 : index
    %c32_323 = arith.constant 32 : index
    %c0_324 = arith.constant 0 : index
    %292 = vector.load %arg6[%c0_322, %c32_323, %c0_324] : memref<3x288x128xbf16, #tpu.memory_space<vmem>>, vector<1x256x128xbf16>
    %293 = vector.shape_cast %292 : vector<1x256x128xbf16> to vector<256x128xbf16>
    %c0_325 = arith.constant 0 : index
    %c0_326 = arith.constant 0 : index
    %294 = vector.load %arg7[%c0_325, %c0_326] : memref<256x128xf32, #tpu.memory_space<vmem>>, vector<256x128xf32>
    %c6 = arith.constant 6 : index
    %c0_327 = arith.constant 0 : index
    %c0_328 = arith.constant 0 : index
    %295 = vector.load %arg2[%c6, %c0_327, %c0_328] : memref<9x128x128xbf16, #tpu.memory_space<vmem>>, vector<1x128x128xbf16>
    %296 = vector.shape_cast %295 : vector<1x128x128xbf16> to vector<128x128xbf16>
    %cst_329 = arith.constant dense<0.000000e+00> : vector<256x128xf32>
    %297 = tpu.matmul %293, %296, %cst_329 {dimension_numbers = #tpu.dot_dimension_numbers<[1], [0], [0], [1], [0, 0, 1, 1], [], []>} : vector<256x128xbf16>, vector<128x128xbf16>, vector<256x128xf32> -> vector<256x128xf32>
    %298 = arith.addf %294, %297 : vector<256x128xf32>
    %c0_330 = arith.constant 0 : index
    %c0_331 = arith.constant 0 : index
    %299 = vector.load %arg7[%c0_330, %c0_331] : memref<256x128xf32, #tpu.memory_space<vmem>>, vector<256x128xf32>
    tpu.vector_store %arg7[%c0_330, %c0_331], %298 {strides = array<i32>} : memref<256x128xf32, #tpu.memory_space<vmem>>, vector<256x128xf32>,
    %c1_332 = arith.constant 1 : index
    %c32_333 = arith.constant 32 : index
    %c0_334 = arith.constant 0 : index
    %300 = vector.load %arg6[%c1_332, %c32_333, %c0_334] : memref<3x288x128xbf16, #tpu.memory_space<vmem>>, vector<1x256x128xbf16>
    %301 = vector.shape_cast %300 : vector<1x256x128xbf16> to vector<256x128xbf16>
    %c0_335 = arith.constant 0 : index
    %c0_336 = arith.constant 0 : index
    %302 = vector.load %arg7[%c0_335, %c0_336] : memref<256x128xf32, #tpu.memory_space<vmem>>, vector<256x128xf32>
    %c7 = arith.constant 7 : index
    %c0_337 = arith.constant 0 : index
    %c0_338 = arith.constant 0 : index
    %303 = vector.load %arg2[%c7, %c0_337, %c0_338] : memref<9x128x128xbf16, #tpu.memory_space<vmem>>, vector<1x128x128xbf16>
    %304 = vector.shape_cast %303 : vector<1x128x128xbf16> to vector<128x128xbf16>
    %cst_339 = arith.constant dense<0.000000e+00> : vector<256x128xf32>
    %305 = tpu.matmul %301, %304, %cst_339 {dimension_numbers = #tpu.dot_dimension_numbers<[1], [0], [0], [1], [0, 0, 1, 1], [], []>} : vector<256x128xbf16>, vector<128x128xbf16>, vector<256x128xf32> -> vector<256x128xf32>
    %306 = arith.addf %302, %305 : vector<256x128xf32>
    %c0_340 = arith.constant 0 : index
    %c0_341 = arith.constant 0 : index
    %307 = vector.load %arg7[%c0_340, %c0_341] : memref<256x128xf32, #tpu.memory_space<vmem>>, vector<256x128xf32>
    tpu.vector_store %arg7[%c0_340, %c0_341], %306 {strides = array<i32>} : memref<256x128xf32, #tpu.memory_space<vmem>>, vector<256x128xf32>,
    %c2_342 = arith.constant 2 : index
    %c32_343 = arith.constant 32 : index
    %c0_344 = arith.constant 0 : index
    %308 = vector.load %arg6[%c2_342, %c32_343, %c0_344] : memref<3x288x128xbf16, #tpu.memory_space<vmem>>, vector<1x256x128xbf16>
    %309 = vector.shape_cast %308 : vector<1x256x128xbf16> to vector<256x128xbf16>
    %c0_345 = arith.constant 0 : index
    %c0_346 = arith.constant 0 : index
    %310 = vector.load %arg7[%c0_345, %c0_346] : memref<256x128xf32, #tpu.memory_space<vmem>>, vector<256x128xf32>
    %c8 = arith.constant 8 : index
    %c0_347 = arith.constant 0 : index
    %c0_348 = arith.constant 0 : index
    %311 = vector.load %arg2[%c8, %c0_347, %c0_348] : memref<9x128x128xbf16, #tpu.memory_space<vmem>>, vector<1x128x128xbf16>
    %312 = vector.shape_cast %311 : vector<1x128x128xbf16> to vector<128x128xbf16>
    %cst_349 = arith.constant dense<0.000000e+00> : vector<256x128xf32>
    %313 = tpu.matmul %309, %312, %cst_349 {dimension_numbers = #tpu.dot_dimension_numbers<[1], [0], [0], [1], [0, 0, 1, 1], [], []>} : vector<256x128xbf16>, vector<128x128xbf16>, vector<256x128xf32> -> vector<256x128xf32>
    %314 = arith.addf %310, %313 : vector<256x128xf32>
    %c0_350 = arith.constant 0 : index
    %c0_351 = arith.constant 0 : index
    %315 = vector.load %arg7[%c0_350, %c0_351] : memref<256x128xf32, #tpu.memory_space<vmem>>, vector<256x128xf32>
    tpu.vector_store %arg7[%c0_350, %c0_351], %314 {strides = array<i32>} : memref<256x128xf32, #tpu.memory_space<vmem>>, vector<256x128xf32>,
    %c0_352 = arith.constant 0 : index
    %c0_353 = arith.constant 0 : index
    %316 = vector.load %arg7[%c0_352, %c0_353] : memref<256x128xf32, #tpu.memory_space<vmem>>, vector<256x128xf32>
    %c0_354 = arith.constant 0 : index
    %c0_355 = arith.constant 0 : index
    %317 = vector.load %arg3[%c0_354, %c0_355] : memref<1x128xf32, #tpu.memory_space<vmem>>, vector<1x128xf32>
    %318 = vector.broadcast %317 : vector<1x128xf32> to vector<256x128xf32>
    %319 = arith.mulf %316, %318 : vector<256x128xf32>
    %c0_356 = arith.constant 0 : index
    %c0_357 = arith.constant 0 : index
    %320 = vector.load %arg4[%c0_356, %c0_357] : memref<1x128xf32, #tpu.memory_space<vmem>>, vector<1x128xf32>
    %321 = vector.broadcast %320 : vector<1x128xf32> to vector<256x128xf32>
    %322 = arith.addf %319, %321 : vector<256x128xf32>
    %cst_358 = arith.constant 0.000000e+00 : f32
    %323 = vector.broadcast %cst_358 : f32 to vector<256x128xf32>
    %324 = arith.maximumf %322, %323 : vector<256x128xf32>
    %325 = arith.truncf %324 : vector<256x128xf32> to vector<256x128xbf16>
    %c0_359 = arith.constant 0 : index
    %c0_360 = arith.constant 0 : index
    %c0_361 = arith.constant 0 : index
    %326 = vector.load %arg5[%c0_359, %c0_360, %c0_361] : memref<1x256x128xbf16, #tpu.memory_space<vmem>>, vector<1x256x128xbf16>
    %327 = vector.shape_cast %326 : vector<1x256x128xbf16> to vector<256x128xbf16>
    %328 = vector.shape_cast %325 : vector<256x128xbf16> to vector<1x256x128xbf16>
    tpu.vector_store %arg5[%c0_359, %c0_360, %c0_361], %328 {strides = array<i32>} : memref<1x256x128xbf16, #tpu.memory_space<vmem>>, vector<1x256x128xbf16>,
    return
  }
  func.func @transform_0(%arg0: i32) -> (i32, i32, i32) {
    %c0_i32 = arith.constant 0 : i32
    %c0_i32_0 = arith.constant 0 : i32
    %c0_i32_1 = arith.constant 0 : i32
    return %arg0, %c0_i32, %c0_i32_0 : i32, i32, i32
  }
  func.func @transform_1(%arg0: i32) -> (i32, i32, i32) {
    %c0_i32 = arith.constant 0 : i32
    %c0_i32_0 = arith.constant 0 : i32
    %c0_i32_1 = arith.constant 0 : i32
    %c0_i32_2 = arith.constant 0 : i32
    return %c0_i32, %c0_i32_0, %c0_i32_1 : i32, i32, i32
  }
  func.func @transform_2(%arg0: i32) -> (i32, i32) {
    %c0_i32 = arith.constant 0 : i32
    %c0_i32_0 = arith.constant 0 : i32
    %c0_i32_1 = arith.constant 0 : i32
    return %c0_i32, %c0_i32_0 : i32, i32
  }
  func.func @transform_3(%arg0: i32) -> (i32, i32) {
    %c0_i32 = arith.constant 0 : i32
    %c0_i32_0 = arith.constant 0 : i32
    %c0_i32_1 = arith.constant 0 : i32
    return %c0_i32, %c0_i32_0 : i32, i32
  }
  func.func @transform_4(%arg0: i32) -> (i32, i32, i32) {
    %c0_i32 = arith.constant 0 : i32
    %c0_i32_0 = arith.constant 0 : i32
    %c0_i32_1 = arith.constant 0 : i32
    return %arg0, %c0_i32, %c0_i32_0 : i32, i32, i32
  }
}

module attributes {stable_mosaic.version = 11 : i64} {
  func.func @residual_tail_gap_kernel(%arg0: i32, %arg1: i32, %arg2: memref<1x256x128xbf16, #tpu.memory_space<vmem>>, %arg3: memref<1x256x128xbf16, #tpu.memory_space<vmem>>, %arg4: memref<256x256xbf16, #tpu.memory_space<vmem>>, %arg5: memref<1x256xf32, #tpu.memory_space<vmem>>, %arg6: memref<1x1x256xf32, #tpu.memory_space<vmem>>, %arg7: memref<1x256xf32, #tpu.memory_space<vmem>>) attributes {dimension_semantics = [#tpu.dimension_semantics<parallel>, #tpu.dimension_semantics<arbitrary>], iteration_bounds = array<i64: 2, 1>, scalar_prefetch = 0 : i64, scratch_operands = 1 : i64, tpu.core_type = #tpu.core_type<tc>, window_params = [{transform_indices = @transform_0, window_bounds = array<i64: 1, 256, 128>}, {transform_indices = @transform_1, window_bounds = array<i64: 1, 256, 128>}, {pipeline_mode = #tpu.pipeline_mode<synchronous>, transform_indices = @transform_2, window_bounds = array<i64: 256, 256>}, {pipeline_mode = #tpu.pipeline_mode<synchronous>, transform_indices = @transform_3, window_bounds = array<i64: 1, 256>}, {transform_indices = @transform_4, window_bounds = array<i64: 1, 1, 256>}]} {
    %c0_i32 = arith.constant 0 : i32
    %0 = arith.cmpi eq, %arg1, %c0_i32 : i32
    %1 = arith.extui %0 : i1 to i32
    %c0_i32_0 = arith.constant 0 : i32
    %2 = arith.cmpi ne, %1, %c0_i32_0 : i32
    scf.if %2 {
      %cst_18 = arith.constant 0.000000e+00 : f32
      %23 = vector.broadcast %cst_18 : f32 to vector<1x256xf32>
      %c0_19 = arith.constant 0 : index
      %c0_20 = arith.constant 0 : index
      %24 = vector.load %arg7[%c0_19, %c0_20] : memref<1x256xf32, #tpu.memory_space<vmem>>, vector<1x256xf32>
      tpu.vector_store %arg7[%c0_19, %c0_20], %23 {strides = array<i32>} : memref<1x256xf32, #tpu.memory_space<vmem>>, vector<1x256xf32>,
    } else {
    }
    %c0 = arith.constant 0 : index
    %c0_1 = arith.constant 0 : index
    %c0_2 = arith.constant 0 : index
    %3 = vector.load %arg2[%c0, %c0_1, %c0_2] : memref<1x256x128xbf16, #tpu.memory_space<vmem>>, vector<1x256x128xbf16>
    %4 = vector.shape_cast %3 : vector<1x256x128xbf16> to vector<256x128xbf16>
    %c0_3 = arith.constant 0 : index
    %c0_4 = arith.constant 0 : index
    %c0_5 = arith.constant 0 : index
    %5 = vector.load %arg3[%c0_3, %c0_4, %c0_5] : memref<1x256x128xbf16, #tpu.memory_space<vmem>>, vector<1x256x128xbf16>
    %6 = vector.shape_cast %5 : vector<1x256x128xbf16> to vector<256x128xbf16>
    %7 = tpu.concatenate %4, %6 in 1 : vector<256x128xbf16>, vector<256x128xbf16> -> vector<256x256xbf16>
    %c0_6 = arith.constant 0 : index
    %c0_7 = arith.constant 0 : index
    %8 = vector.load %arg4[%c0_6, %c0_7] : memref<256x256xbf16, #tpu.memory_space<vmem>>, vector<256x256xbf16>
    %cst = arith.constant dense<0.000000e+00> : vector<256x256xf32>
    %9 = tpu.matmul %7, %8, %cst {dimension_numbers = #tpu.dot_dimension_numbers<[1], [0], [0], [1], [0, 0, 1, 1], [], []>} : vector<256x256xbf16>, vector<256x256xbf16>, vector<256x256xf32> -> vector<256x256xf32>
    %c0_8 = arith.constant 0 : index
    %c0_9 = arith.constant 0 : index
    %10 = vector.load %arg5[%c0_8, %c0_9] : memref<1x256xf32, #tpu.memory_space<vmem>>, vector<1x256xf32>
    %11 = vector.broadcast %10 : vector<1x256xf32> to vector<256x256xf32>
    %12 = arith.addf %9, %11 : vector<256x256xf32>
    %cst_10 = arith.constant 0.000000e+00 : f32
    %13 = vector.broadcast %cst_10 : f32 to vector<256x256xf32>
    %14 = arith.maximumf %12, %13 : vector<256x256xf32>
    %c0_11 = arith.constant 0 : index
    %c0_12 = arith.constant 0 : index
    %15 = vector.load %arg7[%c0_11, %c0_12] : memref<1x256xf32, #tpu.memory_space<vmem>>, vector<1x256xf32>
    %cst_13 = arith.constant dense<0.000000e+00> : vector<256xf32>
    %16 = vector.multi_reduction <add>, %14, %cst_13 [0] : vector<256x256xf32> to vector<256xf32>
    %17 = vector.shape_cast %16 : vector<256xf32> to vector<1x256xf32>
    %18 = arith.addf %15, %17 : vector<1x256xf32>
    %c0_14 = arith.constant 0 : index
    %c0_15 = arith.constant 0 : index
    %19 = vector.load %arg7[%c0_14, %c0_15] : memref<1x256xf32, #tpu.memory_space<vmem>>, vector<1x256xf32>
    tpu.vector_store %arg7[%c0_14, %c0_15], %18 {strides = array<i32>} : memref<1x256xf32, #tpu.memory_space<vmem>>, vector<1x256xf32>,
    %c0_i32_16 = arith.constant 0 : i32
    %20 = arith.cmpi eq, %arg1, %c0_i32_16 : i32
    %21 = arith.extui %20 : i1 to i32
    %c0_i32_17 = arith.constant 0 : i32
    %22 = arith.cmpi ne, %21, %c0_i32_17 : i32
    scf.if %22 {
      %c0_18 = arith.constant 0 : index
      %c0_19 = arith.constant 0 : index
      %23 = vector.load %arg7[%c0_18, %c0_19] : memref<1x256xf32, #tpu.memory_space<vmem>>, vector<1x256xf32>
      %cst_20 = arith.constant 3.906250e-03 : f32
      %24 = vector.broadcast %cst_20 : f32 to vector<1x256xf32>
      %25 = arith.mulf %23, %24 : vector<1x256xf32>
      %c0_21 = arith.constant 0 : index
      %c0_22 = arith.constant 0 : index
      %c0_23 = arith.constant 0 : index
      %26 = vector.load %arg6[%c0_21, %c0_22, %c0_23] : memref<1x1x256xf32, #tpu.memory_space<vmem>>, vector<1x1x256xf32>
      %27 = vector.shape_cast %26 : vector<1x1x256xf32> to vector<1x256xf32>
      %28 = vector.shape_cast %25 : vector<1x256xf32> to vector<1x1x256xf32>
      tpu.vector_store %arg6[%c0_21, %c0_22, %c0_23], %28 {strides = array<i32>} : memref<1x1x256xf32, #tpu.memory_space<vmem>>, vector<1x1x256xf32>,
    } else {
    }
    return
  }
  func.func @transform_0(%arg0: i32, %arg1: i32) -> (i32, i32, i32) {
    %c0_i32 = arith.constant 0 : i32
    %c0_i32_0 = arith.constant 0 : i32
    return %arg0, %arg1, %c0_i32 : i32, i32, i32
  }
  func.func @transform_1(%arg0: i32, %arg1: i32) -> (i32, i32, i32) {
    %c0_i32 = arith.constant 0 : i32
    %c0_i32_0 = arith.constant 0 : i32
    return %arg0, %arg1, %c0_i32 : i32, i32, i32
  }
  func.func @transform_2(%arg0: i32, %arg1: i32) -> (i32, i32) {
    %c0_i32 = arith.constant 0 : i32
    %c0_i32_0 = arith.constant 0 : i32
    %c0_i32_1 = arith.constant 0 : i32
    return %c0_i32, %c0_i32_0 : i32, i32
  }
  func.func @transform_3(%arg0: i32, %arg1: i32) -> (i32, i32) {
    %c0_i32 = arith.constant 0 : i32
    %c0_i32_0 = arith.constant 0 : i32
    %c0_i32_1 = arith.constant 0 : i32
    return %c0_i32, %c0_i32_0 : i32, i32
  }
  func.func @transform_4(%arg0: i32, %arg1: i32) -> (i32, i32, i32) {
    %c0_i32 = arith.constant 0 : i32
    %c0_i32_0 = arith.constant 0 : i32
    %c0_i32_1 = arith.constant 0 : i32
    return %arg0, %c0_i32, %c0_i32_0 : i32, i32, i32
  }
}

module attributes {stable_mosaic.version = 11 : i64} {
  func.func @linear_bn1d_kernel(%arg0: i32, %arg1: memref<2x256xf32, #tpu.memory_space<vmem>>, %arg2: memref<256x128xf32, #tpu.memory_space<vmem>>, %arg3: memref<1x128xf32, #tpu.memory_space<vmem>>, %arg4: memref<1x128xf32, #tpu.memory_space<vmem>>, %arg5: memref<1x128xf32, #tpu.memory_space<vmem>>, %arg6: memref<2x128xf32, #tpu.memory_space<vmem>>) attributes {dimension_semantics = [#tpu.dimension_semantics<arbitrary>], iteration_bounds = array<i64: 1>, scalar_prefetch = 0 : i64, scratch_operands = 0 : i64, tpu.core_type = #tpu.core_type<tc>, window_params = [{pipeline_mode = #tpu.pipeline_mode<synchronous>, transform_indices = @transform_0, window_bounds = array<i64: 2, 256>}, {pipeline_mode = #tpu.pipeline_mode<synchronous>, transform_indices = @transform_1, window_bounds = array<i64: 256, 128>}, {pipeline_mode = #tpu.pipeline_mode<synchronous>, transform_indices = @transform_2, window_bounds = array<i64: 1, 128>}, {pipeline_mode = #tpu.pipeline_mode<synchronous>, transform_indices = @transform_3, window_bounds = array<i64: 1, 128>}, {pipeline_mode = #tpu.pipeline_mode<synchronous>, transform_indices = @transform_4, window_bounds = array<i64: 1, 128>}, {pipeline_mode = #tpu.pipeline_mode<synchronous>, transform_indices = @transform_5, window_bounds = array<i64: 2, 128>}]} {
    %c0 = arith.constant 0 : index
    %c0_0 = arith.constant 0 : index
    %0 = vector.load %arg1[%c0, %c0_0] : memref<2x256xf32, #tpu.memory_space<vmem>>, vector<2x256xf32>
    %c0_1 = arith.constant 0 : index
    %c0_2 = arith.constant 0 : index
    %1 = vector.load %arg2[%c0_1, %c0_2] : memref<256x128xf32, #tpu.memory_space<vmem>>, vector<256x128xf32>
    %cst = arith.constant dense<0.000000e+00> : vector<2x128xf32>
    %2 = tpu.matmul %0, %1, %cst {dimension_numbers = #tpu.dot_dimension_numbers<[1], [0], [0], [1], [0, 0, 1, 1], [], []>} : vector<2x256xf32>, vector<256x128xf32>, vector<2x128xf32> -> vector<2x128xf32>
    %c0_3 = arith.constant 0 : index
    %c0_4 = arith.constant 0 : index
    %3 = vector.load %arg3[%c0_3, %c0_4] : memref<1x128xf32, #tpu.memory_space<vmem>>, vector<1x128xf32>
    %4 = vector.broadcast %3 : vector<1x128xf32> to vector<2x128xf32>
    %5 = arith.addf %2, %4 : vector<2x128xf32>
    %cst_5 = arith.constant dense<0.000000e+00> : vector<128xf32>
    %6 = vector.multi_reduction <add>, %5, %cst_5 [0] : vector<2x128xf32> to vector<128xf32>
    %7 = vector.shape_cast %6 : vector<128xf32> to vector<1x128xf32>
    %cst_6 = arith.constant 2.000000e+00 : f32
    %8 = vector.broadcast %cst_6 : f32 to vector<1x128xf32>
    %9 = arith.divf %7, %8 : vector<1x128xf32>
    %10 = vector.broadcast %9 : vector<1x128xf32> to vector<2x128xf32>
    %11 = arith.subf %5, %10 : vector<2x128xf32>
    %12 = arith.mulf %11, %11 : vector<2x128xf32>
    %cst_7 = arith.constant dense<0.000000e+00> : vector<128xf32>
    %13 = vector.multi_reduction <add>, %12, %cst_7 [0] : vector<2x128xf32> to vector<128xf32>
    %14 = vector.shape_cast %13 : vector<128xf32> to vector<1x128xf32>
    %cst_8 = arith.constant 2.000000e+00 : f32
    %15 = vector.broadcast %cst_8 : f32 to vector<1x128xf32>
    %16 = arith.divf %14, %15 : vector<1x128xf32>
    %17 = vector.broadcast %9 : vector<1x128xf32> to vector<2x128xf32>
    %18 = arith.subf %5, %17 : vector<2x128xf32>
    %cst_9 = arith.constant 9.99999974E-6 : f32
    %19 = vector.broadcast %cst_9 : f32 to vector<1x128xf32>
    %20 = arith.addf %16, %19 : vector<1x128xf32>
    %21 = math.rsqrt %20 : vector<1x128xf32>
    %22 = vector.broadcast %21 : vector<1x128xf32> to vector<2x128xf32>
    %23 = arith.mulf %18, %22 : vector<2x128xf32>
    %c0_10 = arith.constant 0 : index
    %c0_11 = arith.constant 0 : index
    %24 = vector.load %arg4[%c0_10, %c0_11] : memref<1x128xf32, #tpu.memory_space<vmem>>, vector<1x128xf32>
    %25 = vector.broadcast %24 : vector<1x128xf32> to vector<2x128xf32>
    %26 = arith.mulf %23, %25 : vector<2x128xf32>
    %c0_12 = arith.constant 0 : index
    %c0_13 = arith.constant 0 : index
    %27 = vector.load %arg5[%c0_12, %c0_13] : memref<1x128xf32, #tpu.memory_space<vmem>>, vector<1x128xf32>
    %28 = vector.broadcast %27 : vector<1x128xf32> to vector<2x128xf32>
    %29 = arith.addf %26, %28 : vector<2x128xf32>
    %c0_14 = arith.constant 0 : index
    %c0_15 = arith.constant 0 : index
    %30 = vector.load %arg6[%c0_14, %c0_15] : memref<2x128xf32, #tpu.memory_space<vmem>>, vector<2x128xf32>
    tpu.vector_store %arg6[%c0_14, %c0_15], %29 {strides = array<i32>} : memref<2x128xf32, #tpu.memory_space<vmem>>, vector<2x128xf32>,
    return
  }
  func.func @transform_0(%arg0: i32) -> (i32, i32) {
    %c0_i32 = arith.constant 0 : i32
    %c0_i32_0 = arith.constant 0 : i32
    %c0_i32_1 = arith.constant 0 : i32
    return %c0_i32, %c0_i32_0 : i32, i32
  }
  func.func @transform_1(%arg0: i32) -> (i32, i32) {
    %c0_i32 = arith.constant 0 : i32
    %c0_i32_0 = arith.constant 0 : i32
    %c0_i32_1 = arith.constant 0 : i32
    return %c0_i32, %c0_i32_0 : i32, i32
  }
  func.func @transform_2(%arg0: i32) -> (i32, i32) {
    %c0_i32 = arith.constant 0 : i32
    %c0_i32_0 = arith.constant 0 : i32
    %c0_i32_1 = arith.constant 0 : i32
    return %c0_i32, %c0_i32_0 : i32, i32
  }
  func.func @transform_3(%arg0: i32) -> (i32, i32) {
    %c0_i32 = arith.constant 0 : i32
    %c0_i32_0 = arith.constant 0 : i32
    %c0_i32_1 = arith.constant 0 : i32
    return %c0_i32, %c0_i32_0 : i32, i32
  }
  func.func @transform_4(%arg0: i32) -> (i32, i32) {
    %c0_i32 = arith.constant 0 : i32
    %c0_i32_0 = arith.constant 0 : i32
    %c0_i32_1 = arith.constant 0 : i32
    return %c0_i32, %c0_i32_0 : i32, i32
  }
  func.func @transform_5(%arg0: i32) -> (i32, i32) {
    %c0_i32 = arith.constant 0 : i32
    %c0_i32_0 = arith.constant 0 : i32
    %c0_i32_1 = arith.constant 0 : i32
    return %c0_i32, %c0_i32_0 : i32, i32
  }
}

</mosaic_0001>

<bundles_post_ra>
// kernel: encoder_cnn_forward.6
= control target key start
LH: loop header
LB: loop body
LE: loop exit
PB: predicated region body
PF: predicated region fallthrough
CT: control target
= control target key end

     0   :  { %s1443_s15 = smov 0   ;;  %s1445_s16 = smov 0   ;;  %s1801_s0 = inlined_call_operand.vmem [shape: bf16[2,256,128], index: 0, kind: input, shape index: {}]   ;;  %s1802_s1 = inlined_call_operand.vmem [shape: bf16[2,256,128], index: 1, kind: input, shape index: {}]   ;;  %s1803_s2 = inlined_call_operand.vmem [shape: bf16[256,256], index: 2, kind: input, shape index: {}]   ;;  %s1804_s3 = inlined_call_operand.vmem [shape: f32[1,256], index: 3, kind: input, shape index: {}]   ;;  %s1805_s4 = inlined_call_operand.vmem [shape: f32[2,1,256], index: 4, kind: output, shape index: {}]  }
   0x1   :  { %s1447_s17 = smov 0  }
   0x2 LB: > { %s26_s18 = sadd.s32 1, %s1410_s16  ;;  %p1180_p0 = scmp.ge.s32.totalorder %s1414_s17, 1  ;;  %s1414_s17 = sphi %s1447_s17, %s14_s17   ;;  %s1410_s16 = sphi %s1445_s16, %s1809_s16   ;;  %s1406_s15 = sphi %s1443_s15, %s1808_s15  }
   0x3   : > { %p28_p1 = scmp.ge.s32.totalorder %s26_s18, 2  ;;  %p198_p2 = scmp.lt.s32.totalorder %s1414_s17, 3 }
   0x5   : > { %s1811_s18 = smov (%p28_p1, %s26_s18), 0  ;;  %p199_p3 = pnand %p1180_p0, %p198_p2 }
   0x6   : > { %v1312_v0 = vld [vmem:[%s1803_s2 + $0x4] ss:$8 sps:$4 sm:$0xff] (!%p199_p3)   ;;  %v1314_v1 = vld [vmem:[%s1803_s2] ss:$8 sps:$4 sm:$0xff] (!%p199_p3)   ;;  %v1315_v2 = vld [vmem:[%s1803_s2 + $0x14] ss:$8 sps:$4 sm:$0xff] (!%p199_p3)  }
   0x7   : > { %202 = sbr.rel (%p199_p3) target bundleno = 411 (0x19b), region = 36  ;;  %729 = vmatprep.subr.bf16.mxu0 (!%p199_p3), %v1312_v0  ;;  %1254 = vmatprep.subr.bf16.mxu1 (!%p199_p3), %v1312_v0  ;;  %v1317_v3 = vld [vmem:[%s1803_s2 + $0x10] ss:$8 sps:$4 sm:$0xff] (!%p199_p3)   ;;  %v1318_v4 = vld [vmem:[%s1803_s2 + $0x24] ss:$8 sps:$4 sm:$0xff] (!%p199_p3)   ;;  %p237_p4 = scmp.lt.s32.totalorder (!%p199_p3), %s1406_s15, 1  ;;  %v264_v0 = vlaneseq (!%p199_p3) }
   0x8   : > { %730 = vmatpush1.bf16.msra.mxu0 (!%p199_p3), %v1314_v1  ;;  %1270 = vmatpush1.bf16.msra.mxu1 (!%p199_p3), %v1314_v1  ;;  %v1320_v5 = vld [vmem:[%s1803_s2 + $0x20] ss:$8 sps:$4 sm:$0xff] (!%p199_p3)   ;;  %v1321_v6 = vld [vmem:[%s1803_s2 + $0x34] ss:$8 sps:$4 sm:$0xff] (!%p199_p3)   ;;  %v1323_v7 = vld [vmem:[%s1803_s2 + $0x30] ss:$8 sps:$4 sm:$0xff] (!%p199_p3)  }
   0x9   : > { %731 = vmatprep.subr.bf16.mxu0 (!%p199_p3), %v1315_v2  ;;  %1255 = vmatprep.subr.bf16.mxu1 (!%p199_p3), %v1315_v2  ;;  %v1324_v8 = vld [vmem:[%s1803_s2 + $0x44] ss:$8 sps:$4 sm:$0xff] (!%p199_p3)   ;;  %v1326_v9 = vld [vmem:[%s1803_s2 + $0x40] ss:$8 sps:$4 sm:$0xff] (!%p199_p3)   ;;  %v1327_v10 = vld [vmem:[%s1803_s2 + $0x54] ss:$8 sps:$4 sm:$0xff] (!%p199_p3)  }
   0xa   : > { %v1329_v11 = vld [vmem:[%s1803_s2 + $0x50] ss:$8 sps:$4 sm:$0xff] (!%p199_p3)   ;;  %v1330_v12 = vld [vmem:[%s1803_s2 + $0x64] ss:$8 sps:$4 sm:$0xff] (!%p199_p3)   ;;  %v1332_v14 = vld [vmem:[%s1803_s2 + $0x60] ss:$8 sps:$4 sm:$0xff] (!%p199_p3)  }
   0xb   : > { %v1333_v15 = vld [vmem:[%s1803_s2 + $0x74] ss:$8 sps:$4 sm:$0xff] (!%p199_p3)   ;;  %v1335_v16 = vld [vmem:[%s1803_s2 + $0x70] ss:$8 sps:$4 sm:$0xff] (!%p199_p3)   ;;  %v1336_v17 = vld [vmem:[%s1803_s2 + $0x84] ss:$8 sps:$4 sm:$0xff] (!%p199_p3)  }
   0xc   : > { %732 = vmatpush1.bf16.msra.mxu0 (!%p199_p3), %v1317_v3  ;;  %1271 = vmatpush1.bf16.msra.mxu1 (!%p199_p3), %v1317_v3  ;;  %v1338_v19 = vld [vmem:[%s1803_s2 + $0x80] ss:$8 sps:$4 sm:$0xff] (!%p199_p3)   ;;  %v1339_v20 = vld [vmem:[%s1803_s2 + $0x94] ss:$8 sps:$4 sm:$0xff] (!%p199_p3)   ;;  %v1341_v21 = vld [vmem:[%s1803_s2 + $0x90] ss:$8 sps:$4 sm:$0xff] (!%p199_p3)  }
   0xd   : > { %733 = vmatprep.subr.bf16.mxu0 (!%p199_p3), %v1318_v4  ;;  %1256 = vmatprep.subr.bf16.mxu1 (!%p199_p3), %v1318_v4  ;;  %v1342_v22 = vld [vmem:[%s1803_s2 + $0xa4] ss:$8 sps:$4 sm:$0xff] (!%p199_p3)   ;;  %v1344_v23 = vld [vmem:[%s1803_s2 + $0xa0] ss:$8 sps:$4 sm:$0xff] (!%p199_p3)   ;;  %v1345_v24 = vld [vmem:[%s1803_s2 + $0xb4] ss:$8 sps:$4 sm:$0xff] (!%p199_p3)  }
   0xe   : > { %s1813_s15 = smov (!%p237_p4, %s1406_s15), 1  ;;  %v1347_v25 = vld [vmem:[%s1803_s2 + $0xb0] ss:$8 sps:$4 sm:$0xff]   ;;  %v1348_v26 = vld [vmem:[%s1803_s2 + $0xc4] ss:$8 sps:$4 sm:$0xff]   ;;  %vm1606_vm0 = vcmp.lt.s32.totalorder %v264_v0, 256 }
   0xf   : > { %s1252_s19 = sshll.u32 %s1813_s15, 7  ;;  %v1350_v27 = vld [vmem:[%s1803_s2 + $0xc0] ss:$8 sps:$4 sm:$0xff]   ;;  %v1351_v28 = vld [vmem:[%s1803_s2 + $0xd4] ss:$8 sps:$4 sm:$0xff]   ;;  %v1416_v2 = vmov 0.0  }
  0x10   : > { %734 = vmatpush1.bf16.msra.mxu0 %v1320_v5  ;;  %1272 = vmatpush1.bf16.msra.mxu1 %v1320_v5  ;;  %s1507_s24 = scalar_lea.vmem %s1802_s1, %s1252_s19  ;;  %s1515_s29 = scalar_lea.vmem %s1801_s0, %s1252_s19  ;;  %v1353_v29 = vld [vmem:[%s1803_s2 + $0xd0] ss:$8 sps:$4 sm:$0xff]   ;;  %v1354_v30 = vld [vmem:[%s1803_s2 + $0xe4] ss:$8 sps:$4 sm:$0xff]   ;;  %v1356_v31 = vld [vmem:[%s1803_s2 + $0xe0] ss:$8 sps:$4 sm:$0xff]  }
  0x11   : > { %735 = vmatprep.subr.bf16.mxu0 %v1321_v6  ;;  %1257 = vmatprep.subr.bf16.mxu1 %v1321_v6  ;;  %v1360_v13 = vld [vmem:[%s1507_s24] sm:$0xff]   ;;  %v1357_v32 = vld [vmem:[%s1803_s2 + $0xf4] ss:$8 sps:$4 sm:$0xff]   ;;  %v1359_v33 = vld [vmem:[%s1803_s2 + $0xf0] ss:$8 sps:$4 sm:$0xff]   ;;  %v1612_v3 = vshrl.u32 %v264_v0, 7 }
  0x12   : > { %761 = vmatprep.mubr.bf16.mxu0 %v1360_v13  ;;  %v1368_v18 = vld [vmem:[%s1507_s24 + $0x40] sm:$0xff]   ;;  %v1362_v36 = vld [vmem:[%s1507_s24 + $0x8] sm:$0xff]   ;;  %v1364_v40 = vld [vmem:[%s1507_s24 + $0x10] sm:$0xff]   ;;  %268 = vst.msk [vmem:[#allocation2] sm:$0x3] %vm1606_vm0, %v1416_v2 }
  0x13   : > { %841 = vmatprep.mubr.bf16.mxu1 %v1368_v18  ;;  %v1361_v34 = vld [vmem:[%s1515_s29] sm:$0xff]   ;;  %v1372_v37 = vld [vmem:[%s1507_s24 + $0x48] sm:$0xff]   ;;  %v1376_v41 = vld [vmem:[%s1507_s24 + $0x50] sm:$0xff]   ;;  %v561_v4 = vsub.s32 0, %v1612_v3  ;;  %v565_v6 = vsub.s32 1, %v1612_v3 }
  0x14   : > { %736 = vmatpush1.bf16.msra.mxu0 %v1323_v7  ;;  %1273 = vmatpush1.bf16.msra.mxu1 %v1323_v7  ;;  %v1369_v35 = vld [vmem:[%s1515_s29 + $0x40] sm:$0xff]   ;;  %v1363_v38 = vld [vmem:[%s1515_s29 + $0x8] sm:$0xff]   ;;  %v1365_v42 = vld [vmem:[%s1515_s29 + $0x10] sm:$0xff]  }
  0x15   : > { %737 = vmatprep.subr.bf16.mxu0 %v1324_v8  ;;  %1258 = vmatprep.subr.bf16.mxu1 %v1324_v8  ;;  %v1373_v39 = vld [vmem:[%s1515_s29 + $0x48] sm:$0xff]   ;;  %v1377_v43 = vld [vmem:[%s1515_s29 + $0x50] sm:$0xff]   ;;  %v1366_v44 = vld [vmem:[%s1507_s24 + $0x18] sm:$0xff]  }
  0x16   : > { %v1380_v45 = vld [vmem:[%s1507_s24 + $0x58] sm:$0xff]   ;;  %v1370_v48 = vld [vmem:[%s1507_s24 + $0x20] sm:$0xff]   ;;  %v1374_v52 = vld [vmem:[%s1507_s24 + $0x28] sm:$0xff]  }
  0x17   : > { %v1367_v46 = vld [vmem:[%s1515_s29 + $0x18] sm:$0xff]   ;;  %v1384_v49 = vld [vmem:[%s1507_s24 + $0x60] sm:$0xff]   ;;  %v1386_v53 = vld [vmem:[%s1507_s24 + $0x68] sm:$0xff]  }
  0x18   : > { %738 = vmatpush1.bf16.msra.mxu0 %v1326_v9  ;;  %1274 = vmatpush1.bf16.msra.mxu1 %v1326_v9  ;;  %v1381_v47 = vld [vmem:[%s1515_s29 + $0x58] sm:$0xff]   ;;  %v1371_v50 = vld [vmem:[%s1515_s29 + $0x20] sm:$0xff]   ;;  %v1375_v54 = vld [vmem:[%s1515_s29 + $0x28] sm:$0xff]  }
  0x19   : > { %739 = vmatprep.subr.bf16.mxu0 %v1327_v10  ;;  %1259 = vmatprep.subr.bf16.mxu1 %v1327_v10  ;;  %v1385_v51 = vld [vmem:[%s1515_s29 + $0x60] sm:$0xff]   ;;  %v1387_v55 = vld [vmem:[%s1515_s29 + $0x68] sm:$0xff]   ;;  %v1378_v56 = vld [vmem:[%s1507_s24 + $0x30] sm:$0xff]  }
  0x1a   : > { %v1388_v57 = vld [vmem:[%s1507_s24 + $0x70] sm:$0xff]   ;;  %v1382_v60 = vld [vmem:[%s1507_s24 + $0x38] sm:$0xff]   ;;  %v557_v5 = vld [vmem:[%s1804_s3] sm:$0x3] }
  0x1b   : > { %v1379_v58 = vld [vmem:[%s1515_s29 + $0x30] sm:$0xff]   ;;  %v1390_v61 = vld [vmem:[%s1507_s24 + $0x78] sm:$0xff]   ;;  %v1619_v7 = vrot.slane %v557_v5, %v561_v4  ;;  %v1621_v8 = vrot.slane %v557_v5, %v565_v6 }
  0x1c   : > { %740 = vmatpush1.bf16.msra.mxu0 %v1329_v11  ;;  %1275 = vmatpush1.bf16.msra.mxu1 %v1329_v11  ;;  %v1389_v59 = vld [vmem:[%s1515_s29 + $0x70] sm:$0xff]   ;;  %v1383_v62 = vld [vmem:[%s1515_s29 + $0x38] sm:$0xff]  }
  0x1d   : > { %741 = vmatprep.subr.bf16.mxu0 %v1330_v12  ;;  %1260 = vmatprep.subr.bf16.mxu1 %v1330_v12  ;;  %v1391_v63 = vld [vmem:[%s1515_s29 + $0x78] sm:$0xff]   ;;  %s1185_s29 = sshll.u32 %s1813_s15, 1 }
  0x1e   : > { %s259_s5 = scalar_lea.vmem %s1805_s4, %s1185_s29 }
  0x20   : > { %742 = vmatpush1.bf16.msra.mxu0 %v1332_v14  ;;  %1276 = vmatpush1.bf16.msra.mxu1 %v1332_v14 }
  0x21   : > { %743 = vmatprep.subr.bf16.mxu0 %v1333_v15  ;;  %1261 = vmatprep.subr.bf16.mxu1 %v1333_v15 }
  0x24   : > { %744 = vmatpush1.bf16.msra.mxu0 %v1335_v16  ;;  %1277 = vmatpush1.bf16.msra.mxu1 %v1335_v16 }
  0x25   : > { %745 = vmatprep.subr.bf16.mxu0 %v1336_v17  ;;  %1262 = vmatprep.subr.bf16.mxu1 %v1336_v17 }
  0x28   : > { %746 = vmatpush1.bf16.msra.mxu0 %v1338_v19  ;;  %1278 = vmatpush1.bf16.msra.mxu1 %v1338_v19 }
  0x29   : > { %747 = vmatprep.subr.bf16.mxu0 %v1339_v20  ;;  %1263 = vmatprep.subr.bf16.mxu1 %v1339_v20 }
  0x2c   : > { %748 = vmatpush1.bf16.msra.mxu0 %v1341_v21  ;;  %1279 = vmatpush1.bf16.msra.mxu1 %v1341_v21 }
  0x2d   : > { %749 = vmatprep.subr.bf16.mxu0 %v1342_v22  ;;  %1264 = vmatprep.subr.bf16.mxu1 %v1342_v22 }
  0x30   : > { %750 = vmatpush1.bf16.msra.mxu0 %v1344_v23  ;;  %1280 = vmatpush1.bf16.msra.mxu1 %v1344_v23 }
  0x31   : > { %751 = vmatprep.subr.bf16.mxu0 %v1345_v24  ;;  %1265 = vmatprep.subr.bf16.mxu1 %v1345_v24 }
  0x34   : > { %752 = vmatpush1.bf16.msra.mxu0 %v1347_v25  ;;  %1281 = vmatpush1.bf16.msra.mxu1 %v1347_v25 }
  0x35   : > { %753 = vmatprep.subr.bf16.mxu0 %v1348_v26  ;;  %1266 = vmatprep.subr.bf16.mxu1 %v1348_v26 }
  0x38   : > { %754 = vmatpush1.bf16.msra.mxu0 %v1350_v27  ;;  %1282 = vmatpush1.bf16.msra.mxu1 %v1350_v27 }
  0x39   : > { %755 = vmatprep.subr.bf16.mxu0 %v1351_v28  ;;  %1267 = vmatprep.subr.bf16.mxu1 %v1351_v28 }
  0x3c   : > { %756 = vmatpush1.bf16.msra.mxu0 %v1353_v29  ;;  %1283 = vmatpush1.bf16.msra.mxu1 %v1353_v29 }
  0x3d   : > { %757 = vmatprep.subr.bf16.mxu0 %v1354_v30  ;;  %1268 = vmatprep.subr.bf16.mxu1 %v1354_v30 }
  0x40   : > { %758 = vmatpush1.bf16.msra.mxu0 %v1356_v31  ;;  %1284 = vmatpush1.bf16.msra.mxu1 %v1356_v31 }
  0x41   : > { %759 = vmatprep.subr.bf16.mxu0 %v1357_v32  ;;  %1269 = vmatprep.subr.bf16.mxu1 %v1357_v32 }
  0x44   : > { %760 = vmatpush1.bf16.msra.mxu0 %v1359_v33  ;;  %1285 = vmatpush1.bf16.msra.mxu1 %v1359_v33 }
  0x47   : > { %762 = vmatmul.mubr.bf16.vlgmr.msra.gmra.mrb[0].mxu0 %v1361_v34  ;;  %842 = vmatmul.mubr.bf16.vlgmr.msra.gmra.mrb[0].mxu1 %v1369_v35 }
  0x48   : > { %771 = vmatprep.mubr.bf16.mxu0 %v1362_v36  ;;  %851 = vmatprep.mubr.bf16.mxu1 %v1372_v37 }
  0x4f   : > { %772 = vmatmul.mubr.bf16.gmra.mrb[4].mxu0 %v1363_v38  ;;  %852 = vmatmul.mubr.bf16.gmra.mrb[4].mxu1 %v1373_v39 }
  0x50   : > { %781 = vmatprep.mubr.bf16.mxu0 %v1364_v40  ;;  %861 = vmatprep.mubr.bf16.mxu1 %v1376_v41 }
  0x57   : > { %782 = vmatmul.mubr.bf16.gmra.mrb[8].mxu0 %v1365_v42  ;;  %862 = vmatmul.mubr.bf16.gmra.mrb[8].mxu1 %v1377_v43 }
  0x58   : > { %791 = vmatprep.mubr.bf16.mxu0 %v1366_v44  ;;  %871 = vmatprep.mubr.bf16.mxu1 %v1380_v45 }
  0x5f   : > { %792 = vmatmul.mubr.bf16.gmra.mrb[12].mxu0 %v1367_v46  ;;  %872 = vmatmul.mubr.bf16.gmra.mrb[12].mxu1 %v1381_v47 }
  0x60   : > { %801 = vmatprep.mubr.bf16.mxu0 %v1370_v48  ;;  %881 = vmatprep.mubr.bf16.mxu1 %v1384_v49 }
  0x67   : > { %802 = vmatmul.mubr.bf16.gmra.mrb[16].mxu0 %v1371_v50  ;;  %882 = vmatmul.mubr.bf16.gmra.mrb[16].mxu1 %v1385_v51 }
  0x68   : > { %811 = vmatprep.mubr.bf16.mxu0 %v1374_v52  ;;  %891 = vmatprep.mubr.bf16.mxu1 %v1386_v53 }
  0x6f   : > { %812 = vmatmul.mubr.bf16.gmra.mrb[20].mxu0 %v1375_v54  ;;  %892 = vmatmul.mubr.bf16.gmra.mrb[20].mxu1 %v1387_v55 }
  0x70   : > { %821 = vmatprep.mubr.bf16.mxu0 %v1378_v56  ;;  %901 = vmatprep.mubr.bf16.mxu1 %v1388_v57 }
  0x77   : > { %822 = vmatmul.mubr.bf16.gmra.mrb[24].mxu0 %v1379_v58  ;;  %902 = vmatmul.mubr.bf16.gmra.mrb[24].mxu1 %v1389_v59 }
  0x78   : > { %831 = vmatprep.mubr.bf16.mxu0 %v1382_v60  ;;  %911 = vmatprep.mubr.bf16.mxu1 %v1390_v61 }
  0x7f   : > { %832 = vmatmul.mubr.bf16.gmra.mrb[28].mxu0 %v1383_v62  ;;  %912 = vmatmul.mubr.bf16.gmra.mrb[28].mxu1 %v1391_v63 }
 0x11a   : > { %v763_v9 = vpop.f32.mrb[0].mxu0  ;;  %v1623_v10 = vpop.f32.mrb[0].mxu1 }
 0x11b   : > { %v764_v11 = vadd.f32 %v763_v9, %v1619_v7  ;;  %v765_v12 = vpop.f32.mrb[1].mxu0  ;;  %v1626_v13 = vpop.f32.mrb[1].mxu1 }
 0x11c   : > { %v766_v14 = vadd.f32 %v765_v12, %v1621_v8  ;;  %v767_v15 = vpop.f32.mrb[2].mxu0  ;;  %v1629_v16 = vpop.f32.mrb[2].mxu1 }
 0x11d   : > { %v768_v17 = vadd.f32 %v767_v15, %v1619_v7  ;;  %v769_v18 = vpop.f32.mrb[3].mxu0  ;;  %v1632_v19 = vpop.f32.mrb[3].mxu1  ;;  %v922_v21 = vmax.f32 %v764_v11, 0.0 }
 0x11e   : > { %v770_v20 = vadd.f32 %v769_v18, %v1621_v8  ;;  %v923_v23 = vmax.f32 %v766_v14, 0.0 }
 0x11f   : > { %v924_v22 = vmax.f32 %v768_v17, 0.0 }
 0x120   : > { %v925_v24 = vmax.f32 %v770_v20, 0.0 }
 0x121   : > { %v987_v25 = vadd.f32 %v924_v22, %v922_v21 }
 0x122   : > { %v1024_v26 = vadd.f32 %v925_v24, %v923_v23  ;;  %v773_v27 = vpop.f32.mrb[4].mxu0  ;;  %v1635_v28 = vpop.f32.mrb[4].mxu1 }
 0x123   : > { %v774_v29 = vadd.f32 %v773_v27, %v1619_v7  ;;  %v775_v30 = vpop.f32.mrb[5].mxu0  ;;  %v1638_v31 = vpop.f32.mrb[5].mxu1 }
 0x124   : > { %v776_v32 = vadd.f32 %v775_v30, %v1621_v8  ;;  %v777_v33 = vpop.f32.mrb[6].mxu0  ;;  %v1641_v34 = vpop.f32.mrb[6].mxu1 }
 0x125   : > { %v926_v35 = vmax.f32 %v774_v29, 0.0  ;;  %v778_v36 = vadd.f32 %v777_v33, %v1619_v7  ;;  %v779_v37 = vpop.f32.mrb[7].mxu0  ;;  %v1644_v38 = vpop.f32.mrb[7].mxu1 }
 0x126   : > { %v927_v39 = vmax.f32 %v776_v32, 0.0  ;;  %v780_v40 = vadd.f32 %v779_v37, %v1621_v8 }
 0x127   : > { %v988_v41 = vadd.f32 %v987_v25, %v926_v35  ;;  %v928_v42 = vmax.f32 %v778_v36, 0.0 }
 0x128   : > { %v1025_v43 = vadd.f32 %v1024_v26, %v927_v39  ;;  %v929_v44 = vmax.f32 %v780_v40, 0.0 }
 0x129   : > { %v989_v45 = vadd.f32 %v988_v41, %v928_v42 }
 0x12a   : > { %v1026_v46 = vadd.f32 %v1025_v43, %v929_v44  ;;  %v783_v47 = vpop.f32.mrb[8].mxu0  ;;  %v1647_v48 = vpop.f32.mrb[8].mxu1 }
 0x12b   : > { %v784_v49 = vadd.f32 %v783_v47, %v1619_v7  ;;  %v785_v50 = vpop.f32.mrb[9].mxu0  ;;  %v1650_v51 = vpop.f32.mrb[9].mxu1 }
 0x12c   : > { %v786_v52 = vadd.f32 %v785_v50, %v1621_v8  ;;  %v787_v53 = vpop.f32.mrb[10].mxu0  ;;  %v1653_v54 = vpop.f32.mrb[10].mxu1 }
 0x12d   : > { %v930_v55 = vmax.f32 %v784_v49, 0.0  ;;  %v788_v56 = vadd.f32 %v787_v53, %v1619_v7  ;;  %v789_v57 = vpop.f32.mrb[11].mxu0  ;;  %v1656_v58 = vpop.f32.mrb[11].mxu1 }
 0x12e   : > { %v931_v59 = vmax.f32 %v786_v52, 0.0  ;;  %v790_v60 = vadd.f32 %v789_v57, %v1621_v8 }
 0x12f   : > { %v990_v61 = vadd.f32 %v989_v45, %v930_v55  ;;  %v932_v62 = vmax.f32 %v788_v56, 0.0 }
 0x130   : > { %v1027_v63 = vadd.f32 %v1026_v46, %v931_v59  ;;  %v933_v0 = vmax.f32 %v790_v60, 0.0 }
 0x131   : > { %v991_v2 = vadd.f32 %v990_v61, %v932_v62 }
 0x132   : > { %v1028_v4 = vadd.f32 %v1027_v63, %v933_v0  ;;  %v793_v5 = vpop.f32.mrb[12].mxu0  ;;  %v1659_v6 = vpop.f32.mrb[12].mxu1 }
 0x133   : > { %v794_v9 = vadd.f32 %v793_v5, %v1619_v7  ;;  %v795_v11 = vpop.f32.mrb[13].mxu0  ;;  %v1662_v12 = vpop.f32.mrb[13].mxu1 }
 0x134   : > { %v796_v14 = vadd.f32 %v795_v11, %v1621_v8  ;;  %v797_v15 = vpop.f32.mrb[14].mxu0  ;;  %v1665_v17 = vpop.f32.mrb[14].mxu1 }
 0x135   : > { %v934_v18 = vmax.f32 %v794_v9, 0.0  ;;  %v798_v20 = vadd.f32 %v797_v15, %v1619_v7  ;;  %v799_v21 = vpop.f32.mrb[15].mxu0  ;;  %v1668_v22 = vpop.f32.mrb[15].mxu1 }
 0x136   : > { %v935_v23 = vmax.f32 %v796_v14, 0.0  ;;  %v800_v24 = vadd.f32 %v799_v21, %v1621_v8 }
 0x137   : > { %v992_v25 = vadd.f32 %v991_v2, %v934_v18  ;;  %v936_v26 = vmax.f32 %v798_v20, 0.0 }
 0x138   : > { %v1029_v27 = vadd.f32 %v1028_v4, %v935_v23  ;;  %v937_v29 = vmax.f32 %v800_v24, 0.0 }
 0x139   : > { %v993_v30 = vadd.f32 %v992_v25, %v936_v26 }
 0x13a   : > { %v1030_v32 = vadd.f32 %v1029_v27, %v937_v29  ;;  %v803_v33 = vpop.f32.mrb[16].mxu0  ;;  %v1671_v35 = vpop.f32.mrb[16].mxu1 }
 0x13b   : > { %v804_v36 = vadd.f32 %v803_v33, %v1619_v7  ;;  %v805_v37 = vpop.f32.mrb[17].mxu0  ;;  %v1674_v39 = vpop.f32.mrb[17].mxu1 }
 0x13c   : > { %v806_v40 = vadd.f32 %v805_v37, %v1621_v8  ;;  %v807_v41 = vpop.f32.mrb[18].mxu0  ;;  %v1677_v42 = vpop.f32.mrb[18].mxu1 }
 0x13d   : > { %v938_v43 = vmax.f32 %v804_v36, 0.0  ;;  %v808_v44 = vadd.f32 %v807_v41, %v1619_v7  ;;  %v809_v45 = vpop.f32.mrb[19].mxu0  ;;  %v1680_v46 = vpop.f32.mrb[19].mxu1 }
 0x13e   : > { %v939_v47 = vmax.f32 %v806_v40, 0.0  ;;  %v810_v49 = vadd.f32 %v809_v45, %v1621_v8 }
 0x13f   : > { %v994_v50 = vadd.f32 %v993_v30, %v938_v43  ;;  %v940_v52 = vmax.f32 %v808_v44, 0.0 }
 0x140   : > { %v1031_v53 = vadd.f32 %v1030_v32, %v939_v47  ;;  %v941_v55 = vmax.f32 %v810_v49, 0.0 }
 0x141   : > { %v995_v56 = vadd.f32 %v994_v50, %v940_v52 }
 0x142   : > { %v1032_v57 = vadd.f32 %v1031_v53, %v941_v55  ;;  %v813_v59 = vpop.f32.mrb[20].mxu0  ;;  %v1683_v60 = vpop.f32.mrb[20].mxu1 }
 0x143   : > { %v814_v61 = vadd.f32 %v813_v59, %v1619_v7  ;;  %v815_v62 = vpop.f32.mrb[21].mxu0  ;;  %v1686_v63 = vpop.f32.mrb[21].mxu1 }
 0x144   : > { %v816_v0 = vadd.f32 %v815_v62, %v1621_v8  ;;  %v817_v2 = vpop.f32.mrb[22].mxu0  ;;  %v1689_v4 = vpop.f32.mrb[22].mxu1 }
 0x145   : > { %v942_v5 = vmax.f32 %v814_v61, 0.0  ;;  %v818_v9 = vadd.f32 %v817_v2, %v1619_v7  ;;  %v819_v11 = vpop.f32.mrb[23].mxu0  ;;  %v1692_v14 = vpop.f32.mrb[23].mxu1 }
 0x146   : > { %v943_v15 = vmax.f32 %v816_v0, 0.0  ;;  %v820_v18 = vadd.f32 %v819_v11, %v1621_v8 }
 0x147   : > { %v996_v20 = vadd.f32 %v995_v56, %v942_v5  ;;  %v944_v21 = vmax.f32 %v818_v9, 0.0 }
 0x148   : > { %v1033_v23 = vadd.f32 %v1032_v57, %v943_v15  ;;  %v945_v24 = vmax.f32 %v820_v18, 0.0  ;;  %v844_v15 = vadd.f32 %v1623_v10, %v1619_v7  ;;  %v850_v10 = vadd.f32 %v1632_v19, %v1621_v8 }
 0x149   : > { %v997_v25 = vadd.f32 %v996_v20, %v944_v21  ;;  %v860_v19 = vadd.f32 %v1644_v38, %v1621_v8  ;;  %v870_v38 = vadd.f32 %v1656_v58, %v1621_v8  ;;  %v880_v58 = vadd.f32 %v1668_v22, %v1621_v8 }
 0x14a   : > { %v1034_v26 = vadd.f32 %v1033_v23, %v945_v24  ;;  %v823_v27 = vpop.f32.mrb[24].mxu0  ;;  %v1695_v29 = vpop.f32.mrb[24].mxu1  ;;  %v846_v24 = vadd.f32 %v1626_v13, %v1621_v8  ;;  %v856_v13 = vadd.f32 %v1638_v31, %v1621_v8  ;;  %v866_v31 = vadd.f32 %v1650_v51, %v1621_v8 }
 0x14b   : > { %v824_v30 = vadd.f32 %v823_v27, %v1619_v7  ;;  %v825_v32 = vpop.f32.mrb[25].mxu0  ;;  %v1698_v33 = vpop.f32.mrb[25].mxu1  ;;  %v848_v27 = vadd.f32 %v1629_v16, %v1619_v7  ;;  %v858_v16 = vadd.f32 %v1641_v34, %v1619_v7  ;;  %v868_v34 = vadd.f32 %v1653_v54, %v1619_v7 }
 0x14c   : > { %v826_v36 = vadd.f32 %v825_v32, %v1621_v8  ;;  %v827_v37 = vpop.f32.mrb[26].mxu0  ;;  %v1701_v40 = vpop.f32.mrb[26].mxu1  ;;  %v876_v51 = vadd.f32 %v1662_v12, %v1621_v8  ;;  %v878_v54 = vadd.f32 %v1665_v17, %v1619_v7  ;;  %v886_v12 = vadd.f32 %v1674_v39, %v1621_v8 }
 0x14d   : > { %v946_v41 = vmax.f32 %v824_v30, 0.0  ;;  %v828_v43 = vadd.f32 %v827_v37, %v1619_v7  ;;  %v829_v44 = vpop.f32.mrb[27].mxu0  ;;  %v1704_v45 = vpop.f32.mrb[27].mxu1  ;;  %v888_v17 = vadd.f32 %v1677_v42, %v1619_v7  ;;  %v890_v22 = vadd.f32 %v1680_v46, %v1621_v8 }
 0x14e   : > { %v947_v47 = vmax.f32 %v826_v36, 0.0  ;;  %v830_v49 = vadd.f32 %v829_v44, %v1621_v8  ;;  %v896_v39 = vadd.f32 %v1686_v63, %v1621_v8  ;;  %v898_v42 = vadd.f32 %v1689_v4, %v1619_v7 }
 0x14f   : > { %v998_v50 = vadd.f32 %v997_v25, %v946_v41  ;;  %v948_v52 = vmax.f32 %v828_v43, 0.0  ;;  %v954_v41 = vmax.f32 %v844_v15, 0.0  ;;  %v854_v43 = vadd.f32 %v1635_v28, %v1619_v7 }
 0x150   : > { %v1035_v53 = vadd.f32 %v1034_v26, %v947_v47  ;;  %v949_v55 = vmax.f32 %v830_v49, 0.0  ;;  %v955_v47 = vmax.f32 %v846_v24, 0.0  ;;  %v864_v28 = vadd.f32 %v1647_v48, %v1619_v7 }
 0x151   : > { %v999_v56 = vadd.f32 %v998_v50, %v948_v52  ;;  %v956_v50 = vmax.f32 %v848_v27, 0.0  ;;  %v874_v48 = vadd.f32 %v1659_v6, %v1619_v7  ;;  %v965_v27 = vmax.f32 %v870_v38, 0.0 }
 0x152   : > { %v1036_v57 = vadd.f32 %v1035_v53, %v949_v55  ;;  %v833_v59 = vpop.f32.mrb[28].mxu0  ;;  %v1707_v61 = vpop.f32.mrb[28].mxu1  ;;  %v957_v53 = vmax.f32 %v850_v10, 0.0  ;;  %v884_v6 = vadd.f32 %v1671_v35, %v1619_v7  ;;  %v894_v35 = vadd.f32 %v1683_v60, %v1619_v7 }
 0x153   : > { %v834_v62 = vadd.f32 %v833_v59, %v1619_v7  ;;  %v835_v0 = vpop.f32.mrb[29].mxu0  ;;  %v1710_v2 = vpop.f32.mrb[29].mxu1  ;;  %v959_v59 = vmax.f32 %v856_v13, 0.0  ;;  %v900_v46 = vadd.f32 %v1692_v14, %v1621_v8  ;;  %v904_v60 = vadd.f32 %v1695_v29, %v1619_v7 }
 0x154   : > { %v836_v5 = vadd.f32 %v835_v0, %v1621_v8  ;;  %v837_v9 = vpop.f32.mrb[30].mxu0  ;;  %v1713_v11 = vpop.f32.mrb[30].mxu1  ;;  %v960_v0 = vmax.f32 %v858_v16, 0.0  ;;  %v970_v13 = vmax.f32 %v884_v6, 0.0  ;;  %v906_v63 = vadd.f32 %v1698_v33, %v1621_v8 }
 0x155   : > { %v950_v18 = vmax.f32 %v834_v62, 0.0  ;;  %v838_v20 = vadd.f32 %v837_v9, %v1619_v7  ;;  %v839_v21 = vpop.f32.mrb[31].mxu0  ;;  %v1718_v23 = vpop.f32.mrb[31].mxu1  ;;  %v961_v9 = vmax.f32 %v860_v19, 0.0  ;;  %v908_v4 = vadd.f32 %v1701_v40, %v1619_v7 }
 0x156   : > { %v951_v25 = vmax.f32 %v836_v5, 0.0  ;;  %v840_v26 = vadd.f32 %v839_v21, %v1621_v8  ;;  %v963_v21 = vmax.f32 %v866_v31, 0.0  ;;  %v977_v14 = vmax.f32 %v900_v46, 0.0 }
 0x157   : > { %v1000_v30 = vadd.f32 %v999_v56, %v950_v18  ;;  %v952_v32 = vmax.f32 %v838_v20, 0.0  ;;  %v958_v56 = vmax.f32 %v854_v43, 0.0  ;;  %v962_v18 = vmax.f32 %v864_v28, 0.0 }
 0x158   : > { %v1037_v36 = vadd.f32 %v1036_v57, %v951_v25  ;;  %v953_v37 = vmax.f32 %v840_v26, 0.0  ;;  %v964_v25 = vmax.f32 %v868_v34, 0.0  ;;  %v974_v28 = vmax.f32 %v894_v35, 0.0  ;;  %v986_v35 = vld [vmem:[#allocation2] sm:$0x3] }
 0x159   : > { %v1001_v44 = vadd.f32 %v1000_v30, %v952_v32  ;;  %v966_v32 = vmax.f32 %v874_v48, 0.0  ;;  %v916_v29 = vadd.f32 %v1710_v2, %v1621_v8  ;;  %v978_v38 = vmax.f32 %v904_v60, 0.0 }
 0x15a   : > { %v1038_v49 = vadd.f32 %v1037_v36, %v953_v37  ;;  %v967_v36 = vmax.f32 %v876_v51, 0.0  ;;  %v979_v33 = vmax.f32 %v906_v63, 0.0  ;;  %v980_v48 = vmax.f32 %v908_v4, 0.0 }
 0x15b   : > { %v1002_v52 = vadd.f32 %v1001_v44, %v954_v41  ;;  %v968_v41 = vmax.f32 %v878_v54, 0.0  ;;  %v969_v44 = vmax.f32 %v880_v58, 0.0  ;;  %v918_v40 = vadd.f32 %v1713_v11, %v1619_v7 }
 0x15c   : > { %v1039_v55 = vadd.f32 %v1038_v49, %v955_v47  ;;  %v983_v51 = vmax.f32 %v916_v29, 0.0 }
 0x15d   : > { %v1003_v57 = vadd.f32 %v1002_v52, %v956_v50  ;;  %v971_v50 = vmax.f32 %v886_v12, 0.0  ;;  %v984_v2 = vmax.f32 %v918_v40, 0.0  ;;  %v1417_v12 = vmov 1966171168  }
 0x15e   : > { %v1040_v62 = vadd.f32 %v1039_v55, %v957_v53  ;;  %v972_v53 = vmax.f32 %v888_v17, 0.0  ;;  %v973_v55 = vmax.f32 %v890_v22, 0.0 }
 0x15f   : > { %v1004_v5 = vadd.f32 %v1003_v57, %v958_v56 }
 0x160   : > { %v1041_v15 = vadd.f32 %v1040_v62, %v959_v59  ;;  %v975_v59 = vmax.f32 %v896_v39, 0.0  ;;  %v976_v62 = vmax.f32 %v898_v42, 0.0 }
 0x161   : > { %v1005_v20 = vadd.f32 %v1004_v5, %v960_v0  ;;  %v914_v0 = vadd.f32 %v1707_v61, %v1619_v7  ;;  %v910_v5 = vadd.f32 %v1704_v45, %v1621_v8  ;;  %v1065_v7 = vunpack.c.l.s4 %v1417_v12 }
 0x162   : > { %v1042_v24 = vadd.f32 %v1041_v15, %v961_v9 }
 0x163   : > { %v1006_v26 = vadd.f32 %v1005_v20, %v962_v18  ;;  %v982_v20 = vmax.f32 %v914_v0, 0.0  ;;  %v981_v61 = vmax.f32 %v910_v5, 0.0 }
 0x164   : > { %v1043_v30 = vadd.f32 %v1042_v24, %v963_v21  ;;  %v920_v24 = vadd.f32 %v1718_v23, %v1621_v8  ;;  %v1066_v8 = vunpack.c.0.s8 %v1065_v7 }
 0x165   : > { %v1007_v10 = vadd.f32 %v1006_v26, %v964_v25 }
 0x166   : > { %v1044_v37 = vadd.f32 %v1043_v30, %v965_v27  ;;  %v985_v27 = vmax.f32 %v920_v24, 0.0  ;;  %v1069_v22 = vsub.s32 %v1066_v8, %v1612_v3 }
 0x167   : > { %v1008_v43 = vadd.f32 %v1007_v10, %v966_v32 }
 0x168   : > { %v1045_v47 = vadd.f32 %v1044_v37, %v967_v36 }
 0x169   : > { %v1009_v49 = vadd.f32 %v1008_v43, %v968_v41 }
 0x16a   : > { %v1046_v16 = vadd.f32 %v1045_v47, %v969_v44 }
 0x16b   : > { %v1010_v52 = vadd.f32 %v1009_v49, %v970_v13 }
 0x16c   : > { %v1047_v19 = vadd.f32 %v1046_v16, %v971_v50 }
 0x16d   : > { %v1011_v56 = vadd.f32 %v1010_v52, %v972_v53 }
 0x16e   : > { %v1048_v57 = vadd.f32 %v1047_v19, %v973_v55 }
 0x16f   : > { %v1012_v31 = vadd.f32 %v1011_v56, %v974_v28 }
 0x170   : > { %v1049_v34 = vadd.f32 %v1048_v57, %v975_v59 }
 0x171   : > { %v1013_v9 = vadd.f32 %v1012_v31, %v976_v62 }
 0x172   : > { %v1050_v15 = vadd.f32 %v1049_v34, %v977_v14 }
 0x173   : > { %v1014_v18 = vadd.f32 %v1013_v9, %v978_v38 }
 0x174   : > { %v1051_v21 = vadd.f32 %v1050_v15, %v979_v33 }
 0x175   : > { %v1015_v45 = vadd.f32 %v1014_v18, %v980_v48 }
 0x176   : > { %v1052_v25 = vadd.f32 %v1051_v21, %v981_v61 }
 0x177   : > { %v1016_v54 = vadd.f32 %v1015_v45, %v982_v20 }
 0x178   : > { %v1053_v26 = vadd.f32 %v1052_v25, %v983_v51 }
 0x179   : > { %v1017_v58 = vadd.f32 %v1016_v54, %v984_v2 }
 0x17a   : > { %v1054_v30 = vadd.f32 %v1053_v26, %v985_v27 }
 0x17b   : > { %v1018_v32 = vrot.slane %v1017_v58, 4 }
 0x17c   : > { %v1055_v6 = vrot.slane %v1054_v30, 4 }
 0x17d   : > { %v1019_v10 = vadd.f32 %v1018_v32, %v1017_v58 }
 0x17e   : > { %v1056_v36 = vadd.f32 %v1055_v6, %v1054_v30 }
 0x17f   : > { %v1020_v11 = vrot.slane %v1019_v10, 2 }
 0x180   : > { %v1057_v37 = vrot.slane %v1056_v36, 2 }
 0x181   : > { %v1021_v41 = vadd.f32 %v1020_v11, %v1019_v10 }
 0x182   : > { %v1058_v43 = vadd.f32 %v1057_v37, %v1056_v36 }
 0x183   : > { %v1022_v23 = vrot.slane %v1021_v41, 1 }
 0x184   : > { %v1059_v17 = vrot.slane %v1058_v43, 1 }
 0x185   : > { %v1023_v44 = vadd.f32 %v1022_v23, %v1021_v41 }
 0x186   : > { %v1060_v47 = vadd.f32 %v1059_v17, %v1058_v43 }
 0x188   : > { %v1063_v13 = vcombine.low %v1023_v44, %v1060_v47 }
 0x18a   : > { %v1070_v49 = vrot.slane %v1063_v13, %v1069_v22 }
 0x18c   : > { %v1077_v50 = vrot.slane %v1070_v49, %v1069_v22 }
 0x18e   : > { %v1079_v16 = vadd.f32 %v1077_v50, %v986_v35 }
 0x190   : > { %1084 = vst.msk [vmem:[#allocation2] sm:$0x3] %vm1606_vm0, %v1079_v16 }
 0x197   : > { %v1088_v39 = vld [vmem:[#allocation2] sm:$0x3] }
 0x198   : > { %v1089_v52 = vmul.f32 0.00390625, %v1088_v39 }
 0x19a   : > { %1090 = vst.msk [vmem:[%s259_s5] sm:$0x3] %vm1606_vm0, %v1089_v52 }
 0x19b PF: > { %s14_s17 = sadd.s32 1, %s1414_s17   ;;  %s1808_s15 = smov %s1410_s16 }
 0x19c   : > { %p11_p5 = scmp.ge.s32.totalorder %s14_s17, 4   ;;  %s1809_s16 = smov %s1811_s18 }
 0x19e   :  { %13 = sbr.rel (!%p11_p5) target bundleno = 2 (0x2), region = 77 }

// kernel: encoder_cnn_forward.4
= control target key start
LH: loop header
LB: loop body
LE: loop exit
PB: predicated region body
PF: predicated region fallthrough
CT: control target
= control target key end

     0   :  { %vm269_vm0 = vcmask 261120   ;;  %s3735_s1 = inlined_call_operand.vmem [shape: bf16[32,128], index: 1, kind: input, shape index: {}]   ;;  %s3736_s0 = inlined_call_operand.vmem [shape: bf16[512,32], index: 0, kind: input, shape index: {}]   ;;  %s3737_s4 = inlined_call_operand.vmem [shape: bf16[128,128], index: 4, kind: input, shape index: {}]   ;;  %s3738_s2 = inlined_call_operand.vmem [shape: f32[1,128], index: 2, kind: input, shape index: {}]   ;;  %s3739_s3 = inlined_call_operand.vmem [shape: f32[1,128], index: 3, kind: input, shape index: {}]   ;;  %s3740_s7 = inlined_call_operand.vmem [shape: bf16[512,128], index: 7, kind: output, shape index: {0}]   ;;  %s3741_s5 = inlined_call_operand.vmem [shape: f32[1,128], index: 5, kind: input, shape index: {}]   ;;  %s3742_s6 = inlined_call_operand.vmem [shape: f32[1,128], index: 6, kind: input, shape index: {}]   ;;  %s3743_s8 = inlined_call_operand.vmem [shape: bf16[512,128], index: 8, kind: output, shape index: {1}]  }
   0x1   :  { %v3022_v0 = vld [vmem:[%s3735_s1] sm:$0xff]   ;;  %v3023_v1 = vld [vmem:[%s3735_s1 + $0x8] sm:$0xff]   ;;  %v3026_v4 = vld [vmem:[%s3736_s0 + $0x10] sm:$0xff]  }
   0x2   :  { %2858 = vmatprep.subr.bf16.mxu0 %v3022_v0  ;;  %v3024_v2 = vld [vmem:[%s3736_s0] sm:$0xff]   ;;  %v3025_v3 = vld [vmem:[%s3736_s0 + $0x8] sm:$0xff]   ;;  %v3027_v5 = vld [vmem:[%s3736_s0 + $0x18] sm:$0xff]  }
   0x3   :  { %2859 = vmatpush3.bf16.msra.mxu0 %v3022_v0  ;;  %2862 = vmatprep.mubr.msk.bf16.mxu0 %vm269_vm0, %v3024_v2  ;;  %v3028_v6 = vld [vmem:[%s3736_s0 + $0x20] sm:$0xff]   ;;  %v3029_v7 = vld [vmem:[%s3736_s0 + $0x28] sm:$0xff]   ;;  %v3030_v8 = vld [vmem:[%s3736_s0 + $0x30] sm:$0xff]  }
   0x4   :  { %2860 = vmatprep.subr.bf16.mxu0 %v3023_v1  ;;  %v3031_v9 = vld [vmem:[%s3736_s0 + $0x38] sm:$0xff]   ;;  %v3032_v10 = vld [vmem:[%s3736_s0 + $0x40] sm:$0xff]   ;;  %v3057_v12 = vld [vmem:[%s3737_s4 + $0x8] sm:$0xff]  }
   0x5   :  { %v3056_v11 = vld [vmem:[%s3737_s4] sm:$0xff]   ;;  %v3033_v13 = vld [vmem:[%s3736_s0 + $0x48] sm:$0xff]   ;;  %v3034_v14 = vld [vmem:[%s3736_s0 + $0x50] sm:$0xff]  }
   0x6   :  { %3006 = vmatprep.subr.bf16.mxu1 %v3056_v11  ;;  %v3058_v15 = vld [vmem:[%s3737_s4 + $0x10] sm:$0xff]   ;;  %v3059_v16 = vld [vmem:[%s3737_s4 + $0x18] sm:$0xff]   ;;  %v3060_v18 = vld [vmem:[%s3737_s4 + $0x20] sm:$0xff]  }
   0x7   :  { %2861 = vmatpush3.bf16.msra.mxu0 %v3023_v1  ;;  %3014 = vmatpush3.bf16.msra.mxu1 %v3056_v11  ;;  %v3035_v17 = vld [vmem:[%s3736_s0 + $0x58] sm:$0xff]   ;;  %v3036_v19 = vld [vmem:[%s3736_s0 + $0x60] sm:$0xff]   ;;  %v3037_v20 = vld [vmem:[%s3736_s0 + $0x68] sm:$0xff]  }
   0x8   :  { %2926 = vmatprep.subr.bf16.mxu0 %v3056_v11  ;;  %3007 = vmatprep.subr.bf16.mxu1 %v3057_v12  ;;  %v3038_v21 = vld [vmem:[%s3736_s0 + $0x70] sm:$0xff]   ;;  %v3039_v22 = vld [vmem:[%s3736_s0 + $0x78] sm:$0xff]   ;;  %v3040_v23 = vld [vmem:[%s3736_s0 + $0x80] sm:$0xff]  }
   0x9   :  { %v3041_v24 = vld [vmem:[%s3736_s0 + $0x88] sm:$0xff]   ;;  %v3042_v25 = vld [vmem:[%s3736_s0 + $0x90] sm:$0xff]   ;;  %v3043_v26 = vld [vmem:[%s3736_s0 + $0x98] sm:$0xff]  }
   0xa   :  { %2863 = vmatmul.mubr.msk.bf16.vlgmr.msra.gmra.mrb[0].mxu0 %vm269_vm0, %v3025_v3  ;;  %v3044_v27 = vld [vmem:[%s3736_s0 + $0xa0] sm:$0xff]   ;;  %v3045_v28 = vld [vmem:[%s3736_s0 + $0xa8] sm:$0xff]   ;;  %v3046_v29 = vld [vmem:[%s3736_s0 + $0xb0] sm:$0xff]  }
   0xb   :  { %2866 = vmatprep.mubr.msk.bf16.mxu0 %vm269_vm0, %v3026_v4  ;;  %2927 = vmatpush3.bf16.msra.mxu0 %v3056_v11  ;;  %v3061_v30 = vld [vmem:[%s3737_s4 + $0x28] sm:$0xff]   ;;  %v3047_v31 = vld [vmem:[%s3736_s0 + $0xb8] sm:$0xff]   ;;  %v3048_v32 = vld [vmem:[%s3736_s0 + $0xc0] sm:$0xff]  }
   0xc   :  { %2928 = vmatprep.subr.bf16.mxu0 %v3057_v12  ;;  %3015 = vmatpush3.bf16.msra.mxu1 %v3057_v12  ;;  %v3062_v33 = vld [vmem:[%s3737_s4 + $0x30] sm:$0xff]   ;;  %v3063_v34 = vld [vmem:[%s3737_s4 + $0x38] sm:$0xff]   ;;  %v3049_v35 = vld [vmem:[%s3736_s0 + $0xc8] sm:$0xff]  }
   0xd   :  { %3008 = vmatprep.subr.bf16.mxu1 %v3058_v15  ;;  %v3050_v36 = vld [vmem:[%s3736_s0 + $0xd0] sm:$0xff]   ;;  %v3051_v37 = vld [vmem:[%s3736_s0 + $0xd8] sm:$0xff]   ;;  %v3052_v38 = vld [vmem:[%s3736_s0 + $0xe0] sm:$0xff]  }
   0xe   :  { %v3053_v39 = vld [vmem:[%s3736_s0 + $0xe8] sm:$0xff]   ;;  %v3054_v40 = vld [vmem:[%s3736_s0 + $0xf0] sm:$0xff]   ;;  %v3055_v41 = vld [vmem:[%s3736_s0 + $0xf8] sm:$0xff]  }
   0xf   :  { %2929 = vmatpush3.bf16.msra.mxu0 %v3057_v12  ;;  %v3270_v42 = vld [vmem:[%s3738_s2] ss:$0 sm:$0xff] }
  0x10   :  { %2930 = vmatprep.subr.bf16.mxu0 %v3058_v15  ;;  %3016 = vmatpush3.bf16.msra.mxu1 %v3058_v15  ;;  %v3275_v44 = vld [vmem:[%s3739_s3] ss:$0 sm:$0xff] }
  0x11   :  { %3009 = vmatprep.subr.bf16.mxu1 %v3059_v16 }
  0x12   :  { %2867 = vmatmul.mubr.msk.bf16.gmra.mrb[4].mxu0 %vm269_vm0, %v3027_v5 }
  0x13   :  { %2870 = vmatprep.mubr.msk.bf16.mxu0 %vm269_vm0, %v3028_v6  ;;  %2931 = vmatpush3.bf16.msra.mxu0 %v3058_v15 }
  0x14   :  { %2932 = vmatprep.subr.bf16.mxu0 %v3059_v16  ;;  %3017 = vmatpush3.bf16.msra.mxu1 %v3059_v16 }
  0x15   :  { %3010 = vmatprep.subr.bf16.mxu1 %v3060_v18 }
  0x17   :  { %2933 = vmatpush3.bf16.msra.mxu0 %v3059_v16 }
  0x18   :  { %2934 = vmatprep.subr.bf16.mxu0 %v3060_v18  ;;  %3018 = vmatpush3.bf16.msra.mxu1 %v3060_v18 }
  0x19   :  { %3011 = vmatprep.subr.bf16.mxu1 %v3061_v30 }
  0x1a   :  { %2871 = vmatmul.mubr.msk.bf16.gmra.mrb[8].mxu0 %vm269_vm0, %v3029_v7 }
  0x1b   :  { %2874 = vmatprep.mubr.msk.bf16.mxu0 %vm269_vm0, %v3030_v8  ;;  %2935 = vmatpush3.bf16.msra.mxu0 %v3060_v18 }
  0x1c   :  { %2936 = vmatprep.subr.bf16.mxu0 %v3061_v30  ;;  %3019 = vmatpush3.bf16.msra.mxu1 %v3061_v30 }
  0x1d   :  { %3012 = vmatprep.subr.bf16.mxu1 %v3062_v33 }
  0x1f   :  { %2937 = vmatpush3.bf16.msra.mxu0 %v3061_v30 }
  0x20   :  { %2938 = vmatprep.subr.bf16.mxu0 %v3062_v33  ;;  %3020 = vmatpush3.bf16.msra.mxu1 %v3062_v33 }
  0x21   :  { %3013 = vmatprep.subr.bf16.mxu1 %v3063_v34 }
  0x22   :  { %2875 = vmatmul.mubr.msk.bf16.gmra.mrb[12].mxu0 %vm269_vm0, %v3031_v9 }
  0x23   :  { %2878 = vmatprep.mubr.msk.bf16.mxu0 %vm269_vm0, %v3032_v10  ;;  %2939 = vmatpush3.bf16.msra.mxu0 %v3062_v33 }
  0x24   :  { %2940 = vmatprep.subr.bf16.mxu0 %v3063_v34  ;;  %3021 = vmatpush3.bf16.msra.mxu1 %v3063_v34 }
  0x27   :  { %2941 = vmatpush3.bf16.msra.mxu0 %v3063_v34 }
  0x2a   :  { %2879 = vmatmul.mubr.msk.bf16.gmra.mrb[16].mxu0 %vm269_vm0, %v3033_v13 }
  0x2b   :  { %2882 = vmatprep.mubr.msk.bf16.mxu0 %vm269_vm0, %v3034_v14 }
  0x32   :  { %2883 = vmatmul.mubr.msk.bf16.gmra.mrb[20].mxu0 %vm269_vm0, %v3035_v17 }
  0x33   :  { %2886 = vmatprep.mubr.msk.bf16.mxu0 %vm269_vm0, %v3036_v19 }
  0x3a   :  { %2887 = vmatmul.mubr.msk.bf16.gmra.mrb[24].mxu0 %vm269_vm0, %v3037_v20 }
  0x3b   :  { %2890 = vmatprep.mubr.msk.bf16.mxu0 %vm269_vm0, %v3038_v21 }
  0x42   :  { %2891 = vmatmul.mubr.msk.bf16.gmra.mrb[28].mxu0 %vm269_vm0, %v3039_v22 }
  0x43   :  { %2894 = vmatprep.mubr.msk.bf16.mxu0 %vm269_vm0, %v3040_v23 }
  0x4a   :  { %2895 = vmatmul.mubr.msk.bf16.gmra.mrb[32].mxu0 %vm269_vm0, %v3041_v24 }
  0x4b   :  { %2898 = vmatprep.mubr.msk.bf16.mxu0 %vm269_vm0, %v3042_v25 }
  0x52   :  { %2899 = vmatmul.mubr.msk.bf16.gmra.mrb[36].mxu0 %vm269_vm0, %v3043_v26 }
  0x53   :  { %2902 = vmatprep.mubr.msk.bf16.mxu0 %vm269_vm0, %v3044_v27 }
  0x5a   :  { %2903 = vmatmul.mubr.msk.bf16.gmra.mrb[40].mxu0 %vm269_vm0, %v3045_v28 }
  0x5b   :  { %2906 = vmatprep.mubr.msk.bf16.mxu0 %vm269_vm0, %v3046_v29 }
  0x62   :  { %2907 = vmatmul.mubr.msk.bf16.gmra.mrb[44].mxu0 %vm269_vm0, %v3047_v31 }
  0x63   :  { %2910 = vmatprep.mubr.msk.bf16.mxu0 %vm269_vm0, %v3048_v32 }
  0x6a   :  { %2911 = vmatmul.mubr.msk.bf16.gmra.mrb[48].mxu0 %vm269_vm0, %v3049_v35 }
  0x6b   :  { %2914 = vmatprep.mubr.msk.bf16.mxu0 %vm269_vm0, %v3050_v36 }
  0x72   :  { %2915 = vmatmul.mubr.msk.bf16.gmra.mrb[52].mxu0 %vm269_vm0, %v3051_v37 }
  0x73   :  { %2918 = vmatprep.mubr.msk.bf16.mxu0 %vm269_vm0, %v3052_v38 }
  0x7a   :  { %2919 = vmatmul.mubr.msk.bf16.gmra.mrb[56].mxu0 %vm269_vm0, %v3053_v39 }
  0x7b   :  { %2922 = vmatprep.mubr.msk.bf16.mxu0 %vm269_vm0, %v3054_v40 }
  0x82   :  { %2923 = vmatmul.mubr.msk.bf16.gmra.mrb[60].mxu0 %vm269_vm0, %v3055_v41 }
  0xdd   :  { %v2864_v43 = vpop.f32.mrb[0].mxu0 }
  0xde   :  { %v664_v45 = vmul.f32 %v2864_v43, %v3270_v42  ;;  %v400_v46 = vpop.f32.mrb[1].mxu0 }
  0xdf   :  { %v662_v47 = vmul.f32 %v3270_v42, %v400_v46  ;;  %v2865_v48 = vpop.f32.mrb[2].mxu0 }
  0xe0   :  { %v735_v49 = vadd.f32 %v3275_v44, %v664_v45  ;;  %v665_v50 = vmul.f32 %v2865_v48, %v3270_v42  ;;  %v403_v51 = vpop.f32.mrb[3].mxu0 }
  0xe1   :  { %v733_v52 = vadd.f32 %v3275_v44, %v662_v47  ;;  %v663_v53 = vmul.f32 %v3270_v42, %v403_v51 }
  0xe2   :  { %v736_v54 = vadd.f32 %v3275_v44, %v665_v50  ;;  %v799_v56 = vmax.f32 %v735_v49, 0.0 }
  0xe3   :  { %v734_v55 = vadd.f32 %v3275_v44, %v663_v53  ;;  %v797_v58 = vmax.f32 %v733_v52, 0.0 }
  0xe4   :  { %v800_v57 = vmax.f32 %v736_v54, 0.0 }
  0xe5   :  { %v798_v59 = vmax.f32 %v734_v55, 0.0  ;;  %v2868_v60 = vpop.f32.mrb[4].mxu0 }
  0xe6   :  { %v862_v61 = vpack.c.bf16 %v800_v57, %v799_v56  ;;  %v668_v62 = vmul.f32 %v2868_v60, %v3270_v42  ;;  %v416_v63 = vpop.f32.mrb[5].mxu0 }
  0xe7   :  { %v666_v0 = vmul.f32 %v3270_v42, %v416_v63  ;;  %v2869_v1 = vpop.f32.mrb[6].mxu0  ;;  %v861_v2 = vpack.c.bf16 %v798_v59, %v797_v58 }
  0xe8   :  { %2722 = vst [vmem:[%s3740_s7 + $0x8] sm:$0xff] %v862_v61   ;;  %v739_v3 = vadd.f32 %v3275_v44, %v668_v62  ;;  %v669_v4 = vmul.f32 %v2869_v1, %v3270_v42  ;;  %v419_v5 = vpop.f32.mrb[7].mxu0 }
  0xe9   :  { %v737_v6 = vadd.f32 %v3275_v44, %v666_v0  ;;  %v667_v7 = vmul.f32 %v3270_v42, %v419_v5  ;;  %2406 = vst [vmem:[%s3740_s7] sm:$0xff] %v861_v2   ;;  %2942 = vmatprep.mubr.bf16.mxu0 %v861_v2 }
  0xea   :  { %v740_v8 = vadd.f32 %v3275_v44, %v669_v4  ;;  %2943 = vmatmul.mubr.bf16.vlgmr.msra.gmra.mrb[64].mxu0 %v862_v61  ;;  %v803_v10 = vmax.f32 %v739_v3, 0.0 }
  0xeb   :  { %v738_v9 = vadd.f32 %v3275_v44, %v667_v7  ;;  %v801_v12 = vmax.f32 %v737_v6, 0.0 }
  0xec   :  { %v804_v11 = vmax.f32 %v740_v8, 0.0 }
  0xed   :  { %v802_v13 = vmax.f32 %v738_v9, 0.0  ;;  %v2872_v14 = vpop.f32.mrb[8].mxu0 }
  0xee   :  { %v672_v15 = vmul.f32 %v2872_v14, %v3270_v42  ;;  %v432_v16 = vpop.f32.mrb[9].mxu0  ;;  %v864_v17 = vpack.c.bf16 %v804_v11, %v803_v10 }
  0xef   :  { %v670_v18 = vmul.f32 %v3270_v42, %v432_v16  ;;  %v2873_v19 = vpop.f32.mrb[10].mxu0  ;;  %v863_v20 = vpack.c.bf16 %v802_v13, %v801_v12 }
  0xf0   :  { %v743_v21 = vadd.f32 %v3275_v44, %v672_v15  ;;  %v673_v22 = vmul.f32 %v2873_v19, %v3270_v42  ;;  %v435_v23 = vpop.f32.mrb[11].mxu0  ;;  %2724 = vst [vmem:[%s3740_s7 + $0x18] sm:$0xff] %v864_v17  }
  0xf1   :  { %v741_v24 = vadd.f32 %v3275_v44, %v670_v18  ;;  %v671_v25 = vmul.f32 %v3270_v42, %v435_v23  ;;  %2723 = vst [vmem:[%s3740_s7 + $0x10] sm:$0xff] %v863_v20   ;;  %2946 = vmatprep.mubr.bf16.mxu1 %v863_v20 }
  0xf2   :  { %v744_v26 = vadd.f32 %v3275_v44, %v673_v22  ;;  %2947 = vmatmul.mubr.bf16.vlgmr.msra.gmra.mrb[0].mxu1 %v864_v17  ;;  %v807_v28 = vmax.f32 %v743_v21, 0.0 }
  0xf3   :  { %v742_v27 = vadd.f32 %v3275_v44, %v671_v25  ;;  %v805_v30 = vmax.f32 %v741_v24, 0.0 }
  0xf4   :  { %v808_v29 = vmax.f32 %v744_v26, 0.0 }
  0xf5   :  { %v806_v31 = vmax.f32 %v742_v27, 0.0  ;;  %v2876_v32 = vpop.f32.mrb[12].mxu0 }
  0xf6   :  { %v676_v33 = vmul.f32 %v2876_v32, %v3270_v42  ;;  %v448_v34 = vpop.f32.mrb[13].mxu0  ;;  %v866_v35 = vpack.c.bf16 %v808_v29, %v807_v28 }
  0xf7   :  { %v674_v36 = vmul.f32 %v3270_v42, %v448_v34  ;;  %v2877_v37 = vpop.f32.mrb[14].mxu0  ;;  %v865_v38 = vpack.c.bf16 %v806_v31, %v805_v30 }
  0xf8   :  { %v747_v39 = vadd.f32 %v3275_v44, %v676_v33  ;;  %v677_v40 = vmul.f32 %v2877_v37, %v3270_v42  ;;  %v451_v41 = vpop.f32.mrb[15].mxu0  ;;  %2726 = vst [vmem:[%s3740_s7 + $0x28] sm:$0xff] %v866_v35  }
  0xf9   :  { %v745_v43 = vadd.f32 %v3275_v44, %v674_v36  ;;  %v675_v45 = vmul.f32 %v3270_v42, %v451_v41  ;;  %2725 = vst [vmem:[%s3740_s7 + $0x20] sm:$0xff] %v865_v38   ;;  %2950 = vmatprep.mubr.bf16.mxu1 %v865_v38 }
  0xfa   :  { %v748_v46 = vadd.f32 %v3275_v44, %v677_v40  ;;  %2951 = vmatmul.mubr.bf16.gmra.mrb[4].mxu1 %v866_v35  ;;  %v811_v48 = vmax.f32 %v747_v39, 0.0 }
  0xfb   :  { %v746_v47 = vadd.f32 %v3275_v44, %v675_v45  ;;  %v809_v50 = vmax.f32 %v745_v43, 0.0 }
  0xfc   :  { %v812_v49 = vmax.f32 %v748_v46, 0.0 }
  0xfd   :  { %v810_v51 = vmax.f32 %v746_v47, 0.0  ;;  %v2880_v52 = vpop.f32.mrb[16].mxu0 }
  0xfe   :  { %v680_v53 = vmul.f32 %v2880_v52, %v3270_v42  ;;  %v464_v54 = vpop.f32.mrb[17].mxu0  ;;  %v868_v55 = vpack.c.bf16 %v812_v49, %v811_v48 }
  0xff   :  { %v678_v56 = vmul.f32 %v3270_v42, %v464_v54  ;;  %v2881_v57 = vpop.f32.mrb[18].mxu0  ;;  %v867_v58 = vpack.c.bf16 %v810_v51, %v809_v50 }
 0x100   :  { %v751_v59 = vadd.f32 %v3275_v44, %v680_v53  ;;  %v681_v60 = vmul.f32 %v2881_v57, %v3270_v42  ;;  %v467_v61 = vpop.f32.mrb[19].mxu0  ;;  %2728 = vst [vmem:[%s3740_s7 + $0x38] sm:$0xff] %v868_v55  }
 0x101   :  { %v749_v62 = vadd.f32 %v3275_v44, %v678_v56  ;;  %v679_v63 = vmul.f32 %v3270_v42, %v467_v61  ;;  %2727 = vst [vmem:[%s3740_s7 + $0x30] sm:$0xff] %v867_v58   ;;  %2954 = vmatprep.mubr.bf16.mxu1 %v867_v58 }
 0x102   :  { %v752_v0 = vadd.f32 %v3275_v44, %v681_v60  ;;  %2955 = vmatmul.mubr.bf16.gmra.mrb[8].mxu1 %v868_v55  ;;  %v815_v2 = vmax.f32 %v751_v59, 0.0 }
 0x103   :  { %v750_v1 = vadd.f32 %v3275_v44, %v679_v63  ;;  %v813_v4 = vmax.f32 %v749_v62, 0.0 }
 0x104   :  { %v816_v3 = vmax.f32 %v752_v0, 0.0 }
 0x105   :  { %v814_v5 = vmax.f32 %v750_v1, 0.0  ;;  %v2884_v6 = vpop.f32.mrb[20].mxu0 }
 0x106   :  { %v684_v7 = vmul.f32 %v2884_v6, %v3270_v42  ;;  %v480_v8 = vpop.f32.mrb[21].mxu0  ;;  %v870_v9 = vpack.c.bf16 %v816_v3, %v815_v2 }
 0x107   :  { %v682_v10 = vmul.f32 %v3270_v42, %v480_v8  ;;  %v2885_v11 = vpop.f32.mrb[22].mxu0  ;;  %v869_v12 = vpack.c.bf16 %v814_v5, %v813_v4 }
 0x108   :  { %v755_v13 = vadd.f32 %v3275_v44, %v684_v7  ;;  %v685_v14 = vmul.f32 %v2885_v11, %v3270_v42  ;;  %v483_v15 = vpop.f32.mrb[23].mxu0  ;;  %2730 = vst [vmem:[%s3740_s7 + $0x48] sm:$0xff] %v870_v9  }
 0x109   :  { %v753_v16 = vadd.f32 %v3275_v44, %v682_v10  ;;  %v683_v17 = vmul.f32 %v3270_v42, %v483_v15  ;;  %2729 = vst [vmem:[%s3740_s7 + $0x40] sm:$0xff] %v869_v12   ;;  %2958 = vmatprep.mubr.bf16.mxu1 %v869_v12 }
 0x10a   :  { %v756_v18 = vadd.f32 %v3275_v44, %v685_v14  ;;  %2959 = vmatmul.mubr.bf16.gmra.mrb[12].mxu1 %v870_v9  ;;  %v819_v20 = vmax.f32 %v755_v13, 0.0 }
 0x10b   :  { %v754_v19 = vadd.f32 %v3275_v44, %v683_v17  ;;  %v817_v22 = vmax.f32 %v753_v16, 0.0 }
 0x10c   :  { %v820_v21 = vmax.f32 %v756_v18, 0.0 }
 0x10d   :  { %v818_v23 = vmax.f32 %v754_v19, 0.0  ;;  %v2888_v24 = vpop.f32.mrb[24].mxu0 }
 0x10e   :  { %v688_v25 = vmul.f32 %v2888_v24, %v3270_v42  ;;  %v496_v26 = vpop.f32.mrb[25].mxu0  ;;  %v872_v27 = vpack.c.bf16 %v820_v21, %v819_v20 }
 0x10f   :  { %v686_v28 = vmul.f32 %v3270_v42, %v496_v26  ;;  %v2889_v29 = vpop.f32.mrb[26].mxu0  ;;  %v871_v30 = vpack.c.bf16 %v818_v23, %v817_v22 }
 0x110   :  { %v759_v31 = vadd.f32 %v3275_v44, %v688_v25  ;;  %v689_v32 = vmul.f32 %v2889_v29, %v3270_v42  ;;  %v499_v33 = vpop.f32.mrb[27].mxu0  ;;  %2732 = vst [vmem:[%s3740_s7 + $0x58] sm:$0xff] %v872_v27  }
 0x111   :  { %v757_v34 = vadd.f32 %v3275_v44, %v686_v28  ;;  %v687_v35 = vmul.f32 %v3270_v42, %v499_v33  ;;  %2731 = vst [vmem:[%s3740_s7 + $0x50] sm:$0xff] %v871_v30   ;;  %2962 = vmatprep.mubr.bf16.mxu1 %v871_v30 }
 0x112   :  { %v760_v36 = vadd.f32 %v3275_v44, %v689_v32  ;;  %2963 = vmatmul.mubr.bf16.gmra.mrb[16].mxu1 %v872_v27  ;;  %v823_v38 = vmax.f32 %v759_v31, 0.0 }
 0x113   :  { %v758_v37 = vadd.f32 %v3275_v44, %v687_v35  ;;  %v821_v40 = vmax.f32 %v757_v34, 0.0 }
 0x114   :  { %v824_v39 = vmax.f32 %v760_v36, 0.0 }
 0x115   :  { %v822_v41 = vmax.f32 %v758_v37, 0.0  ;;  %v2892_v43 = vpop.f32.mrb[28].mxu0 }
 0x116   :  { %v692_v45 = vmul.f32 %v2892_v43, %v3270_v42  ;;  %v512_v46 = vpop.f32.mrb[29].mxu0  ;;  %v874_v47 = vpack.c.bf16 %v824_v39, %v823_v38 }
 0x117   :  { %v690_v48 = vmul.f32 %v3270_v42, %v512_v46  ;;  %v2893_v49 = vpop.f32.mrb[30].mxu0  ;;  %v873_v50 = vpack.c.bf16 %v822_v41, %v821_v40 }
 0x118   :  { %v763_v51 = vadd.f32 %v3275_v44, %v692_v45  ;;  %v693_v52 = vmul.f32 %v2893_v49, %v3270_v42  ;;  %v515_v53 = vpop.f32.mrb[31].mxu0  ;;  %2734 = vst [vmem:[%s3740_s7 + $0x68] sm:$0xff] %v874_v47  }
 0x119   :  { %v761_v54 = vadd.f32 %v3275_v44, %v690_v48  ;;  %v691_v55 = vmul.f32 %v3270_v42, %v515_v53  ;;  %2733 = vst [vmem:[%s3740_s7 + $0x60] sm:$0xff] %v873_v50   ;;  %2966 = vmatprep.mubr.bf16.mxu1 %v873_v50 }
 0x11a   :  { %v764_v56 = vadd.f32 %v3275_v44, %v693_v52  ;;  %2967 = vmatmul.mubr.bf16.gmra.mrb[20].mxu1 %v874_v47  ;;  %v827_v58 = vmax.f32 %v763_v51, 0.0 }
 0x11b   :  { %v762_v57 = vadd.f32 %v3275_v44, %v691_v55  ;;  %v825_v60 = vmax.f32 %v761_v54, 0.0 }
 0x11c   :  { %v828_v59 = vmax.f32 %v764_v56, 0.0 }
 0x11d   :  { %v826_v61 = vmax.f32 %v762_v57, 0.0  ;;  %v2896_v62 = vpop.f32.mrb[32].mxu0 }
 0x11e   :  { %v696_v63 = vmul.f32 %v2896_v62, %v3270_v42  ;;  %v528_v0 = vpop.f32.mrb[33].mxu0  ;;  %v876_v1 = vpack.c.bf16 %v828_v59, %v827_v58 }
 0x11f   :  { %v694_v2 = vmul.f32 %v3270_v42, %v528_v0  ;;  %v2897_v3 = vpop.f32.mrb[34].mxu0  ;;  %v875_v4 = vpack.c.bf16 %v826_v61, %v825_v60 }
 0x120   :  { %v767_v5 = vadd.f32 %v3275_v44, %v696_v63  ;;  %v697_v6 = vmul.f32 %v2897_v3, %v3270_v42  ;;  %v531_v7 = vpop.f32.mrb[35].mxu0  ;;  %2736 = vst [vmem:[%s3740_s7 + $0x78] sm:$0xff] %v876_v1  }
 0x121   :  { %v765_v8 = vadd.f32 %v3275_v44, %v694_v2  ;;  %v695_v9 = vmul.f32 %v3270_v42, %v531_v7  ;;  %2735 = vst [vmem:[%s3740_s7 + $0x70] sm:$0xff] %v875_v4   ;;  %2970 = vmatprep.mubr.bf16.mxu1 %v875_v4 }
 0x122   :  { %v768_v10 = vadd.f32 %v3275_v44, %v697_v6  ;;  %2971 = vmatmul.mubr.bf16.gmra.mrb[24].mxu1 %v876_v1  ;;  %v831_v12 = vmax.f32 %v767_v5, 0.0 }
 0x123   :  { %v766_v11 = vadd.f32 %v3275_v44, %v695_v9  ;;  %v829_v14 = vmax.f32 %v765_v8, 0.0 }
 0x124   :  { %v832_v13 = vmax.f32 %v768_v10, 0.0 }
 0x125   :  { %v830_v15 = vmax.f32 %v766_v11, 0.0  ;;  %v2900_v16 = vpop.f32.mrb[36].mxu0 }
 0x126   :  { %v700_v17 = vmul.f32 %v2900_v16, %v3270_v42  ;;  %v544_v18 = vpop.f32.mrb[37].mxu0  ;;  %v878_v19 = vpack.c.bf16 %v832_v13, %v831_v12 }
 0x127   :  { %v698_v20 = vmul.f32 %v3270_v42, %v544_v18  ;;  %v2901_v21 = vpop.f32.mrb[38].mxu0  ;;  %v877_v22 = vpack.c.bf16 %v830_v15, %v829_v14 }
 0x128   :  { %v771_v23 = vadd.f32 %v3275_v44, %v700_v17  ;;  %v701_v24 = vmul.f32 %v2901_v21, %v3270_v42  ;;  %v547_v25 = vpop.f32.mrb[39].mxu0  ;;  %2738 = vst [vmem:[%s3740_s7 + $0x88] sm:$0xff] %v878_v19  }
 0x129   :  { %v769_v26 = vadd.f32 %v3275_v44, %v698_v20  ;;  %v699_v27 = vmul.f32 %v3270_v42, %v547_v25  ;;  %2737 = vst [vmem:[%s3740_s7 + $0x80] sm:$0xff] %v877_v22   ;;  %2974 = vmatprep.mubr.bf16.mxu1 %v877_v22 }
 0x12a   :  { %v772_v28 = vadd.f32 %v3275_v44, %v701_v24  ;;  %2975 = vmatmul.mubr.bf16.gmra.mrb[28].mxu1 %v878_v19  ;;  %v835_v30 = vmax.f32 %v771_v23, 0.0 }
 0x12b   :  { %v770_v29 = vadd.f32 %v3275_v44, %v699_v27  ;;  %v833_v32 = vmax.f32 %v769_v26, 0.0 }
 0x12c   :  { %v836_v31 = vmax.f32 %v772_v28, 0.0 }
 0x12d   :  { %v834_v33 = vmax.f32 %v770_v29, 0.0  ;;  %v2904_v34 = vpop.f32.mrb[40].mxu0 }
 0x12e   :  { %v704_v35 = vmul.f32 %v2904_v34, %v3270_v42  ;;  %v560_v36 = vpop.f32.mrb[41].mxu0  ;;  %v880_v37 = vpack.c.bf16 %v836_v31, %v835_v30 }
 0x12f   :  { %v702_v38 = vmul.f32 %v3270_v42, %v560_v36  ;;  %v2905_v39 = vpop.f32.mrb[42].mxu0  ;;  %v879_v40 = vpack.c.bf16 %v834_v33, %v833_v32 }
 0x130   :  { %v775_v41 = vadd.f32 %v3275_v44, %v704_v35  ;;  %v705_v43 = vmul.f32 %v2905_v39, %v3270_v42  ;;  %v563_v45 = vpop.f32.mrb[43].mxu0  ;;  %2740 = vst [vmem:[%s3740_s7 + $0x98] sm:$0xff] %v880_v37  }
 0x131   :  { %v773_v46 = vadd.f32 %v3275_v44, %v702_v38  ;;  %v703_v47 = vmul.f32 %v3270_v42, %v563_v45  ;;  %2739 = vst [vmem:[%s3740_s7 + $0x90] sm:$0xff] %v879_v40   ;;  %2978 = vmatprep.mubr.bf16.mxu1 %v879_v40 }
 0x132   :  { %v776_v48 = vadd.f32 %v3275_v44, %v705_v43  ;;  %2979 = vmatmul.mubr.bf16.gmra.mrb[32].mxu1 %v880_v37  ;;  %v839_v50 = vmax.f32 %v775_v41, 0.0 }
 0x133   :  { %v774_v49 = vadd.f32 %v3275_v44, %v703_v47  ;;  %v837_v52 = vmax.f32 %v773_v46, 0.0 }
 0x134   :  { %v840_v51 = vmax.f32 %v776_v48, 0.0 }
 0x135   :  { %v838_v53 = vmax.f32 %v774_v49, 0.0  ;;  %v2908_v54 = vpop.f32.mrb[44].mxu0 }
 0x136   :  { %v708_v55 = vmul.f32 %v2908_v54, %v3270_v42  ;;  %v576_v56 = vpop.f32.mrb[45].mxu0  ;;  %v882_v57 = vpack.c.bf16 %v840_v51, %v839_v50 }
 0x137   :  { %v706_v58 = vmul.f32 %v3270_v42, %v576_v56  ;;  %v2909_v59 = vpop.f32.mrb[46].mxu0  ;;  %v881_v60 = vpack.c.bf16 %v838_v53, %v837_v52 }
 0x138   :  { %v779_v61 = vadd.f32 %v3275_v44, %v708_v55  ;;  %v709_v62 = vmul.f32 %v2909_v59, %v3270_v42  ;;  %v579_v63 = vpop.f32.mrb[47].mxu0  ;;  %2742 = vst [vmem:[%s3740_s7 + $0xa8] sm:$0xff] %v882_v57  }
 0x139   :  { %v777_v0 = vadd.f32 %v3275_v44, %v706_v58  ;;  %v707_v1 = vmul.f32 %v3270_v42, %v579_v63  ;;  %2741 = vst [vmem:[%s3740_s7 + $0xa0] sm:$0xff] %v881_v60   ;;  %2982 = vmatprep.mubr.bf16.mxu1 %v881_v60 }
 0x13a   :  { %v780_v2 = vadd.f32 %v3275_v44, %v709_v62  ;;  %2983 = vmatmul.mubr.bf16.gmra.mrb[36].mxu1 %v882_v57  ;;  %v843_v4 = vmax.f32 %v779_v61, 0.0 }
 0x13b   :  { %v778_v3 = vadd.f32 %v3275_v44, %v707_v1  ;;  %v841_v6 = vmax.f32 %v777_v0, 0.0 }
 0x13c   :  { %v844_v5 = vmax.f32 %v780_v2, 0.0 }
 0x13d   :  { %v842_v7 = vmax.f32 %v778_v3, 0.0  ;;  %v2912_v8 = vpop.f32.mrb[48].mxu0 }
 0x13e   :  { %v712_v9 = vmul.f32 %v2912_v8, %v3270_v42  ;;  %v592_v10 = vpop.f32.mrb[49].mxu0  ;;  %v884_v11 = vpack.c.bf16 %v844_v5, %v843_v4 }
 0x13f   :  { %v710_v12 = vmul.f32 %v3270_v42, %v592_v10  ;;  %v2913_v13 = vpop.f32.mrb[50].mxu0  ;;  %v883_v14 = vpack.c.bf16 %v842_v7, %v841_v6 }
 0x140   :  { %v783_v15 = vadd.f32 %v3275_v44, %v712_v9  ;;  %v713_v16 = vmul.f32 %v2913_v13, %v3270_v42  ;;  %v595_v17 = vpop.f32.mrb[51].mxu0  ;;  %2744 = vst [vmem:[%s3740_s7 + $0xb8] sm:$0xff] %v884_v11  }
 0x141   :  { %v781_v18 = vadd.f32 %v3275_v44, %v710_v12  ;;  %v711_v19 = vmul.f32 %v3270_v42, %v595_v17  ;;  %2743 = vst [vmem:[%s3740_s7 + $0xb0] sm:$0xff] %v883_v14   ;;  %2986 = vmatprep.mubr.bf16.mxu1 %v883_v14 }
 0x142   :  { %v784_v20 = vadd.f32 %v3275_v44, %v713_v16  ;;  %2987 = vmatmul.mubr.bf16.gmra.mrb[40].mxu1 %v884_v11  ;;  %v847_v22 = vmax.f32 %v783_v15, 0.0 }
 0x143   :  { %v782_v21 = vadd.f32 %v3275_v44, %v711_v19  ;;  %v845_v24 = vmax.f32 %v781_v18, 0.0 }
 0x144   :  { %v848_v23 = vmax.f32 %v784_v20, 0.0  ;;  %v3509_v20 = vld [vmem:[%s3742_s6] ss:$0 sm:$0xff] }
 0x145   :  { %v846_v25 = vmax.f32 %v782_v21, 0.0  ;;  %v2916_v26 = vpop.f32.mrb[52].mxu0 }
 0x146   :  { %v716_v27 = vmul.f32 %v2916_v26, %v3270_v42  ;;  %v608_v28 = vpop.f32.mrb[53].mxu0  ;;  %v886_v29 = vpack.c.bf16 %v848_v23, %v847_v22 }
 0x147   :  { %v714_v30 = vmul.f32 %v3270_v42, %v608_v28  ;;  %v2917_v31 = vpop.f32.mrb[54].mxu0  ;;  %v885_v32 = vpack.c.bf16 %v846_v25, %v845_v24 }
 0x148   :  { %v787_v33 = vadd.f32 %v3275_v44, %v716_v27  ;;  %v717_v34 = vmul.f32 %v2917_v31, %v3270_v42  ;;  %v611_v35 = vpop.f32.mrb[55].mxu0  ;;  %2746 = vst [vmem:[%s3740_s7 + $0xc8] sm:$0xff] %v886_v29  }
 0x149   :  { %v785_v36 = vadd.f32 %v3275_v44, %v714_v30  ;;  %v715_v37 = vmul.f32 %v3270_v42, %v611_v35  ;;  %2745 = vst [vmem:[%s3740_s7 + $0xc0] sm:$0xff] %v885_v32   ;;  %2990 = vmatprep.mubr.bf16.mxu1 %v885_v32 }
 0x14a   :  { %v788_v38 = vadd.f32 %v3275_v44, %v717_v34  ;;  %2991 = vmatmul.mubr.bf16.gmra.mrb[44].mxu1 %v886_v29  ;;  %v851_v40 = vmax.f32 %v787_v33, 0.0 }
 0x14b   :  { %v786_v39 = vadd.f32 %v3275_v44, %v715_v37  ;;  %v849_v43 = vmax.f32 %v785_v36, 0.0 }
 0x14c   :  { %v852_v41 = vmax.f32 %v788_v38, 0.0 }
 0x14d   :  { %v850_v45 = vmax.f32 %v786_v39, 0.0  ;;  %v2920_v46 = vpop.f32.mrb[56].mxu0 }
 0x14e   :  { %v720_v47 = vmul.f32 %v2920_v46, %v3270_v42  ;;  %v624_v48 = vpop.f32.mrb[57].mxu0  ;;  %v888_v49 = vpack.c.bf16 %v852_v41, %v851_v40 }
 0x14f   :  { %v718_v50 = vmul.f32 %v3270_v42, %v624_v48  ;;  %v2921_v51 = vpop.f32.mrb[58].mxu0  ;;  %v887_v52 = vpack.c.bf16 %v850_v45, %v849_v43 }
 0x150   :  { %v791_v53 = vadd.f32 %v3275_v44, %v720_v47  ;;  %v721_v54 = vmul.f32 %v2921_v51, %v3270_v42  ;;  %v627_v55 = vpop.f32.mrb[59].mxu0  ;;  %2748 = vst [vmem:[%s3740_s7 + $0xd8] sm:$0xff] %v888_v49  }
 0x151   :  { %v789_v56 = vadd.f32 %v3275_v44, %v718_v50  ;;  %v719_v57 = vmul.f32 %v3270_v42, %v627_v55  ;;  %2747 = vst [vmem:[%s3740_s7 + $0xd0] sm:$0xff] %v887_v52   ;;  %2994 = vmatprep.mubr.bf16.mxu1 %v887_v52 }
 0x152   :  { %v792_v58 = vadd.f32 %v3275_v44, %v721_v54  ;;  %2995 = vmatmul.mubr.bf16.gmra.mrb[48].mxu1 %v888_v49  ;;  %v855_v60 = vmax.f32 %v791_v53, 0.0 }
 0x153   :  { %v790_v59 = vadd.f32 %v3275_v44, %v719_v57  ;;  %v853_v62 = vmax.f32 %v789_v56, 0.0 }
 0x154   :  { %v856_v61 = vmax.f32 %v792_v58, 0.0 }
 0x155   :  { %v854_v63 = vmax.f32 %v790_v59, 0.0  ;;  %v2924_v0 = vpop.f32.mrb[60].mxu0 }
 0x156   :  { %v724_v1 = vmul.f32 %v2924_v0, %v3270_v42  ;;  %v640_v2 = vpop.f32.mrb[61].mxu0  ;;  %v890_v3 = vpack.c.bf16 %v856_v61, %v855_v60 }
 0x157   :  { %v722_v4 = vmul.f32 %v3270_v42, %v640_v2  ;;  %v2925_v5 = vpop.f32.mrb[62].mxu0  ;;  %v889_v6 = vpack.c.bf16 %v854_v63, %v853_v62 }
 0x158   :  { %v795_v7 = vadd.f32 %v3275_v44, %v724_v1  ;;  %v725_v8 = vmul.f32 %v2925_v5, %v3270_v42  ;;  %v643_v9 = vpop.f32.mrb[63].mxu0  ;;  %2750 = vst [vmem:[%s3740_s7 + $0xe8] sm:$0xff] %v890_v3  }
 0x159   :  { %v793_v10 = vadd.f32 %v3275_v44, %v722_v4  ;;  %v723_v11 = vmul.f32 %v3270_v42, %v643_v9  ;;  %2749 = vst [vmem:[%s3740_s7 + $0xe0] sm:$0xff] %v889_v6   ;;  %2998 = vmatprep.mubr.bf16.mxu1 %v889_v6  ;;  %v3504_v42 = vld [vmem:[%s3741_s5] ss:$0 sm:$0xff] }
 0x15a   :  { %v796_v12 = vadd.f32 %v3275_v44, %v725_v8  ;;  %2999 = vmatmul.mubr.bf16.gmra.mrb[52].mxu1 %v890_v3  ;;  %v859_v14 = vmax.f32 %v795_v7, 0.0 }
 0x15b   :  { %v794_v13 = vadd.f32 %v3275_v44, %v723_v11  ;;  %v857_v16 = vmax.f32 %v793_v10, 0.0 }
 0x15c   :  { %v860_v15 = vmax.f32 %v796_v12, 0.0 }
 0x15d   :  { %v858_v17 = vmax.f32 %v794_v13, 0.0 }
 0x15e   :  { %v892_v18 = vpack.c.bf16 %v860_v15, %v859_v14 }
 0x15f   :  { %v891_v19 = vpack.c.bf16 %v858_v17, %v857_v16 }
 0x160   :  { %2752 = vst [vmem:[%s3740_s7 + $0xf8] sm:$0xff] %v892_v18  }
 0x161   :  { %2751 = vst [vmem:[%s3740_s7 + $0xf0] sm:$0xff] %v891_v19   ;;  %3002 = vmatprep.mubr.bf16.mxu1 %v891_v19 }
 0x162   :  { %3003 = vmatmul.mubr.bf16.gmra.mrb[56].mxu1 %v892_v18 }
 0x1bd   :  { %v2944_v44 = vpop.f32.mrb[64].mxu0 }
 0x1be   :  { %v1543_v21 = vmul.f32 %v2944_v44, %v3504_v42  ;;  %v1279_v22 = vpop.f32.mrb[65].mxu0 }
 0x1bf   :  { %v1541_v23 = vmul.f32 %v3504_v42, %v1279_v22  ;;  %v2945_v24 = vpop.f32.mrb[66].mxu0 }
 0x1c0   :  { %v1614_v25 = vadd.f32 %v3509_v20, %v1543_v21  ;;  %v1544_v26 = vmul.f32 %v2945_v24, %v3504_v42  ;;  %v1282_v27 = vpop.f32.mrb[67].mxu0 }
 0x1c1   :  { %v1612_v28 = vadd.f32 %v3509_v20, %v1541_v23  ;;  %v1542_v29 = vmul.f32 %v3504_v42, %v1282_v27 }
 0x1c2   :  { %v1615_v30 = vadd.f32 %v3509_v20, %v1544_v26  ;;  %v1678_v32 = vmax.f32 %v1614_v25, 0.0 }
 0x1c3   :  { %v1613_v31 = vadd.f32 %v3509_v20, %v1542_v29  ;;  %v1676_v34 = vmax.f32 %v1612_v28, 0.0 }
 0x1c4   :  { %v1679_v33 = vmax.f32 %v1615_v30, 0.0 }
 0x1c5   :  { %v1677_v35 = vmax.f32 %v1613_v31, 0.0  ;;  %v2948_v36 = vpop.f32.mrb[0].mxu1 }
 0x1c6   :  { %v2570_v37 = vpack.c.bf16 %v1679_v33, %v1678_v32  ;;  %v1547_v38 = vmul.f32 %v2948_v36, %v3504_v42  ;;  %v1295_v39 = vpop.f32.mrb[1].mxu1 }
 0x1c7   :  { %v2565_v40 = vpack.c.bf16 %v1677_v35, %v1676_v34  ;;  %v1545_v41 = vmul.f32 %v3504_v42, %v1295_v39  ;;  %v2949_v43 = vpop.f32.mrb[2].mxu1 }
 0x1c8   :  { %2753 = vst [vmem:[%s3743_s8 + $0x8] sm:$0xff] %v2570_v37   ;;  %v1618_v45 = vadd.f32 %v3509_v20, %v1547_v38  ;;  %v1548_v46 = vmul.f32 %v2949_v43, %v3504_v42  ;;  %v1298_v47 = vpop.f32.mrb[3].mxu1 }
 0x1c9   :  { %2566 = vst [vmem:[%s3743_s8] sm:$0xff] %v2565_v40   ;;  %v1616_v48 = vadd.f32 %v3509_v20, %v1545_v41  ;;  %v1546_v49 = vmul.f32 %v3504_v42, %v1298_v47 }
 0x1ca   :  { %v1619_v50 = vadd.f32 %v3509_v20, %v1548_v46  ;;  %v1682_v52 = vmax.f32 %v1618_v45, 0.0 }
 0x1cb   :  { %v1617_v51 = vadd.f32 %v3509_v20, %v1546_v49  ;;  %v1680_v54 = vmax.f32 %v1616_v48, 0.0 }
 0x1cc   :  { %v1683_v53 = vmax.f32 %v1619_v50, 0.0 }
 0x1cd   :  { %v1681_v55 = vmax.f32 %v1617_v51, 0.0  ;;  %v2952_v56 = vpop.f32.mrb[4].mxu1 }
 0x1ce   :  { %v2580_v57 = vpack.c.bf16 %v1683_v53, %v1682_v52  ;;  %v1551_v58 = vmul.f32 %v2952_v56, %v3504_v42  ;;  %v1311_v59 = vpop.f32.mrb[5].mxu1 }
 0x1cf   :  { %v2575_v60 = vpack.c.bf16 %v1681_v55, %v1680_v54  ;;  %v1549_v61 = vmul.f32 %v3504_v42, %v1311_v59  ;;  %v2953_v62 = vpop.f32.mrb[6].mxu1 }
 0x1d0   :  { %2755 = vst [vmem:[%s3743_s8 + $0x18] sm:$0xff] %v2580_v57   ;;  %v1622_v63 = vadd.f32 %v3509_v20, %v1551_v58  ;;  %v1552_v0 = vmul.f32 %v2953_v62, %v3504_v42  ;;  %v1314_v1 = vpop.f32.mrb[7].mxu1 }
 0x1d1   :  { %2754 = vst [vmem:[%s3743_s8 + $0x10] sm:$0xff] %v2575_v60   ;;  %v1620_v2 = vadd.f32 %v3509_v20, %v1549_v61  ;;  %v1550_v3 = vmul.f32 %v3504_v42, %v1314_v1 }
 0x1d2   :  { %v1623_v4 = vadd.f32 %v3509_v20, %v1552_v0  ;;  %v1686_v6 = vmax.f32 %v1622_v63, 0.0 }
 0x1d3   :  { %v1621_v5 = vadd.f32 %v3509_v20, %v1550_v3  ;;  %v1684_v8 = vmax.f32 %v1620_v2, 0.0 }
 0x1d4   :  { %v1687_v7 = vmax.f32 %v1623_v4, 0.0 }
 0x1d5   :  { %v1685_v9 = vmax.f32 %v1621_v5, 0.0  ;;  %v2956_v10 = vpop.f32.mrb[8].mxu1 }
 0x1d6   :  { %v2590_v11 = vpack.c.bf16 %v1687_v7, %v1686_v6  ;;  %v1555_v12 = vmul.f32 %v2956_v10, %v3504_v42  ;;  %v1327_v13 = vpop.f32.mrb[9].mxu1 }
 0x1d7   :  { %v2585_v14 = vpack.c.bf16 %v1685_v9, %v1684_v8  ;;  %v1553_v15 = vmul.f32 %v3504_v42, %v1327_v13  ;;  %v2957_v16 = vpop.f32.mrb[10].mxu1 }
 0x1d8   :  { %2757 = vst [vmem:[%s3743_s8 + $0x28] sm:$0xff] %v2590_v11   ;;  %v1626_v17 = vadd.f32 %v3509_v20, %v1555_v12  ;;  %v1556_v18 = vmul.f32 %v2957_v16, %v3504_v42  ;;  %v1330_v19 = vpop.f32.mrb[11].mxu1 }
 0x1d9   :  { %2756 = vst [vmem:[%s3743_s8 + $0x20] sm:$0xff] %v2585_v14   ;;  %v1624_v44 = vadd.f32 %v3509_v20, %v1553_v15  ;;  %v1554_v21 = vmul.f32 %v3504_v42, %v1330_v19 }
 0x1da   :  { %v1627_v22 = vadd.f32 %v3509_v20, %v1556_v18  ;;  %v1690_v24 = vmax.f32 %v1626_v17, 0.0 }
 0x1db   :  { %v1625_v23 = vadd.f32 %v3509_v20, %v1554_v21  ;;  %v1688_v26 = vmax.f32 %v1624_v44, 0.0 }
 0x1dc   :  { %v1691_v25 = vmax.f32 %v1627_v22, 0.0 }
 0x1dd   :  { %v1689_v27 = vmax.f32 %v1625_v23, 0.0  ;;  %v2960_v28 = vpop.f32.mrb[12].mxu1 }
 0x1de   :  { %v2600_v29 = vpack.c.bf16 %v1691_v25, %v1690_v24  ;;  %v1559_v30 = vmul.f32 %v2960_v28, %v3504_v42  ;;  %v1343_v31 = vpop.f32.mrb[13].mxu1 }
 0x1df   :  { %v2595_v32 = vpack.c.bf16 %v1689_v27, %v1688_v26  ;;  %v1557_v33 = vmul.f32 %v3504_v42, %v1343_v31  ;;  %v2961_v34 = vpop.f32.mrb[14].mxu1 }
 0x1e0   :  { %2759 = vst [vmem:[%s3743_s8 + $0x38] sm:$0xff] %v2600_v29   ;;  %v1630_v35 = vadd.f32 %v3509_v20, %v1559_v30  ;;  %v1560_v36 = vmul.f32 %v2961_v34, %v3504_v42  ;;  %v1346_v37 = vpop.f32.mrb[15].mxu1 }
 0x1e1   :  { %2758 = vst [vmem:[%s3743_s8 + $0x30] sm:$0xff] %v2595_v32   ;;  %v1628_v38 = vadd.f32 %v3509_v20, %v1557_v33  ;;  %v1558_v39 = vmul.f32 %v3504_v42, %v1346_v37 }
 0x1e2   :  { %v1631_v40 = vadd.f32 %v3509_v20, %v1560_v36  ;;  %v1694_v43 = vmax.f32 %v1630_v35, 0.0 }
 0x1e3   :  { %v1629_v41 = vadd.f32 %v3509_v20, %v1558_v39  ;;  %v1692_v46 = vmax.f32 %v1628_v38, 0.0 }
 0x1e4   :  { %v1695_v45 = vmax.f32 %v1631_v40, 0.0 }
 0x1e5   :  { %v1693_v47 = vmax.f32 %v1629_v41, 0.0  ;;  %v2964_v48 = vpop.f32.mrb[16].mxu1 }
 0x1e6   :  { %v2610_v49 = vpack.c.bf16 %v1695_v45, %v1694_v43  ;;  %v1563_v50 = vmul.f32 %v2964_v48, %v3504_v42  ;;  %v1359_v51 = vpop.f32.mrb[17].mxu1 }
 0x1e7   :  { %v2605_v52 = vpack.c.bf16 %v1693_v47, %v1692_v46  ;;  %v1561_v53 = vmul.f32 %v3504_v42, %v1359_v51  ;;  %v2965_v54 = vpop.f32.mrb[18].mxu1 }
 0x1e8   :  { %2761 = vst [vmem:[%s3743_s8 + $0x48] sm:$0xff] %v2610_v49   ;;  %v1634_v55 = vadd.f32 %v3509_v20, %v1563_v50  ;;  %v1564_v56 = vmul.f32 %v2965_v54, %v3504_v42  ;;  %v1362_v57 = vpop.f32.mrb[19].mxu1 }
 0x1e9   :  { %2760 = vst [vmem:[%s3743_s8 + $0x40] sm:$0xff] %v2605_v52   ;;  %v1632_v58 = vadd.f32 %v3509_v20, %v1561_v53  ;;  %v1562_v59 = vmul.f32 %v3504_v42, %v1362_v57 }
 0x1ea   :  { %v1635_v60 = vadd.f32 %v3509_v20, %v1564_v56  ;;  %v1698_v62 = vmax.f32 %v1634_v55, 0.0 }
 0x1eb   :  { %v1633_v61 = vadd.f32 %v3509_v20, %v1562_v59  ;;  %v1696_v0 = vmax.f32 %v1632_v58, 0.0 }
 0x1ec   :  { %v1699_v63 = vmax.f32 %v1635_v60, 0.0 }
 0x1ed   :  { %v1697_v1 = vmax.f32 %v1633_v61, 0.0  ;;  %v2968_v2 = vpop.f32.mrb[20].mxu1 }
 0x1ee   :  { %v2620_v3 = vpack.c.bf16 %v1699_v63, %v1698_v62  ;;  %v1567_v4 = vmul.f32 %v2968_v2, %v3504_v42  ;;  %v1375_v5 = vpop.f32.mrb[21].mxu1 }
 0x1ef   :  { %v2615_v6 = vpack.c.bf16 %v1697_v1, %v1696_v0  ;;  %v1565_v7 = vmul.f32 %v3504_v42, %v1375_v5  ;;  %v2969_v8 = vpop.f32.mrb[22].mxu1 }
 0x1f0   :  { %2763 = vst [vmem:[%s3743_s8 + $0x58] sm:$0xff] %v2620_v3   ;;  %v1638_v9 = vadd.f32 %v3509_v20, %v1567_v4  ;;  %v1568_v10 = vmul.f32 %v2969_v8, %v3504_v42  ;;  %v1378_v11 = vpop.f32.mrb[23].mxu1 }
 0x1f1   :  { %2762 = vst [vmem:[%s3743_s8 + $0x50] sm:$0xff] %v2615_v6   ;;  %v1636_v12 = vadd.f32 %v3509_v20, %v1565_v7  ;;  %v1566_v13 = vmul.f32 %v3504_v42, %v1378_v11 }
 0x1f2   :  { %v1639_v14 = vadd.f32 %v3509_v20, %v1568_v10  ;;  %v1702_v16 = vmax.f32 %v1638_v9, 0.0 }
 0x1f3   :  { %v1637_v15 = vadd.f32 %v3509_v20, %v1566_v13  ;;  %v1700_v18 = vmax.f32 %v1636_v12, 0.0 }
 0x1f4   :  { %v1703_v17 = vmax.f32 %v1639_v14, 0.0 }
 0x1f5   :  { %v1701_v19 = vmax.f32 %v1637_v15, 0.0  ;;  %v2972_v44 = vpop.f32.mrb[24].mxu1 }
 0x1f6   :  { %v2630_v21 = vpack.c.bf16 %v1703_v17, %v1702_v16  ;;  %v1571_v22 = vmul.f32 %v2972_v44, %v3504_v42  ;;  %v1391_v23 = vpop.f32.mrb[25].mxu1 }
 0x1f7   :  { %v2625_v24 = vpack.c.bf16 %v1701_v19, %v1700_v18  ;;  %v1569_v25 = vmul.f32 %v3504_v42, %v1391_v23  ;;  %v2973_v26 = vpop.f32.mrb[26].mxu1 }
 0x1f8   :  { %2765 = vst [vmem:[%s3743_s8 + $0x68] sm:$0xff] %v2630_v21   ;;  %v1642_v27 = vadd.f32 %v3509_v20, %v1571_v22  ;;  %v1572_v28 = vmul.f32 %v2973_v26, %v3504_v42  ;;  %v1394_v29 = vpop.f32.mrb[27].mxu1 }
 0x1f9   :  { %2764 = vst [vmem:[%s3743_s8 + $0x60] sm:$0xff] %v2625_v24   ;;  %v1640_v30 = vadd.f32 %v3509_v20, %v1569_v25  ;;  %v1570_v31 = vmul.f32 %v3504_v42, %v1394_v29 }
 0x1fa   :  { %v1643_v32 = vadd.f32 %v3509_v20, %v1572_v28  ;;  %v1706_v34 = vmax.f32 %v1642_v27, 0.0 }
 0x1fb   :  { %v1641_v33 = vadd.f32 %v3509_v20, %v1570_v31  ;;  %v1704_v36 = vmax.f32 %v1640_v30, 0.0 }
 0x1fc   :  { %v1707_v35 = vmax.f32 %v1643_v32, 0.0 }
 0x1fd   :  { %v1705_v37 = vmax.f32 %v1641_v33, 0.0  ;;  %v2976_v38 = vpop.f32.mrb[28].mxu1 }
 0x1fe   :  { %v2640_v39 = vpack.c.bf16 %v1707_v35, %v1706_v34  ;;  %v1575_v40 = vmul.f32 %v2976_v38, %v3504_v42  ;;  %v1407_v41 = vpop.f32.mrb[29].mxu1 }
 0x1ff   :  { %v2635_v43 = vpack.c.bf16 %v1705_v37, %v1704_v36  ;;  %v1573_v45 = vmul.f32 %v3504_v42, %v1407_v41  ;;  %v2977_v46 = vpop.f32.mrb[30].mxu1 }
 0x200   :  { %2767 = vst [vmem:[%s3743_s8 + $0x78] sm:$0xff] %v2640_v39   ;;  %v1646_v47 = vadd.f32 %v3509_v20, %v1575_v40  ;;  %v1576_v48 = vmul.f32 %v2977_v46, %v3504_v42  ;;  %v1410_v49 = vpop.f32.mrb[31].mxu1 }
 0x201   :  { %2766 = vst [vmem:[%s3743_s8 + $0x70] sm:$0xff] %v2635_v43   ;;  %v1644_v50 = vadd.f32 %v3509_v20, %v1573_v45  ;;  %v1574_v51 = vmul.f32 %v3504_v42, %v1410_v49 }
 0x202   :  { %v1647_v52 = vadd.f32 %v3509_v20, %v1576_v48  ;;  %v1710_v54 = vmax.f32 %v1646_v47, 0.0 }
 0x203   :  { %v1645_v53 = vadd.f32 %v3509_v20, %v1574_v51  ;;  %v1708_v56 = vmax.f32 %v1644_v50, 0.0 }
 0x204   :  { %v1711_v55 = vmax.f32 %v1647_v52, 0.0 }
 0x205   :  { %v1709_v57 = vmax.f32 %v1645_v53, 0.0  ;;  %v2980_v58 = vpop.f32.mrb[32].mxu1 }
 0x206   :  { %v2650_v59 = vpack.c.bf16 %v1711_v55, %v1710_v54  ;;  %v1579_v60 = vmul.f32 %v2980_v58, %v3504_v42  ;;  %v1423_v61 = vpop.f32.mrb[33].mxu1 }
 0x207   :  { %v2645_v62 = vpack.c.bf16 %v1709_v57, %v1708_v56  ;;  %v1577_v63 = vmul.f32 %v3504_v42, %v1423_v61  ;;  %v2981_v0 = vpop.f32.mrb[34].mxu1 }
 0x208   :  { %2769 = vst [vmem:[%s3743_s8 + $0x88] sm:$0xff] %v2650_v59   ;;  %v1650_v1 = vadd.f32 %v3509_v20, %v1579_v60  ;;  %v1580_v2 = vmul.f32 %v2981_v0, %v3504_v42  ;;  %v1426_v3 = vpop.f32.mrb[35].mxu1 }
 0x209   :  { %2768 = vst [vmem:[%s3743_s8 + $0x80] sm:$0xff] %v2645_v62   ;;  %v1648_v4 = vadd.f32 %v3509_v20, %v1577_v63  ;;  %v1578_v5 = vmul.f32 %v3504_v42, %v1426_v3 }
 0x20a   :  { %v1651_v6 = vadd.f32 %v3509_v20, %v1580_v2  ;;  %v1714_v8 = vmax.f32 %v1650_v1, 0.0 }
 0x20b   :  { %v1649_v7 = vadd.f32 %v3509_v20, %v1578_v5  ;;  %v1712_v10 = vmax.f32 %v1648_v4, 0.0 }
 0x20c   :  { %v1715_v9 = vmax.f32 %v1651_v6, 0.0 }
 0x20d   :  { %v1713_v11 = vmax.f32 %v1649_v7, 0.0  ;;  %v2984_v12 = vpop.f32.mrb[36].mxu1 }
 0x20e   :  { %v2660_v13 = vpack.c.bf16 %v1715_v9, %v1714_v8  ;;  %v1583_v14 = vmul.f32 %v2984_v12, %v3504_v42  ;;  %v1439_v15 = vpop.f32.mrb[37].mxu1 }
 0x20f   :  { %v2655_v16 = vpack.c.bf16 %v1713_v11, %v1712_v10  ;;  %v1581_v17 = vmul.f32 %v3504_v42, %v1439_v15  ;;  %v2985_v18 = vpop.f32.mrb[38].mxu1 }
 0x210   :  { %2771 = vst [vmem:[%s3743_s8 + $0x98] sm:$0xff] %v2660_v13   ;;  %v1654_v19 = vadd.f32 %v3509_v20, %v1583_v14  ;;  %v1584_v44 = vmul.f32 %v2985_v18, %v3504_v42  ;;  %v1442_v21 = vpop.f32.mrb[39].mxu1 }
 0x211   :  { %2770 = vst [vmem:[%s3743_s8 + $0x90] sm:$0xff] %v2655_v16   ;;  %v1652_v22 = vadd.f32 %v3509_v20, %v1581_v17  ;;  %v1582_v23 = vmul.f32 %v3504_v42, %v1442_v21 }
 0x212   :  { %v1655_v24 = vadd.f32 %v3509_v20, %v1584_v44  ;;  %v1718_v26 = vmax.f32 %v1654_v19, 0.0 }
 0x213   :  { %v1653_v25 = vadd.f32 %v3509_v20, %v1582_v23  ;;  %v1716_v28 = vmax.f32 %v1652_v22, 0.0 }
 0x214   :  { %v1719_v27 = vmax.f32 %v1655_v24, 0.0 }
 0x215   :  { %v1717_v29 = vmax.f32 %v1653_v25, 0.0  ;;  %v2988_v30 = vpop.f32.mrb[40].mxu1 }
 0x216   :  { %v2670_v31 = vpack.c.bf16 %v1719_v27, %v1718_v26  ;;  %v1587_v32 = vmul.f32 %v2988_v30, %v3504_v42  ;;  %v1455_v33 = vpop.f32.mrb[41].mxu1 }
 0x217   :  { %v2665_v34 = vpack.c.bf16 %v1717_v29, %v1716_v28  ;;  %v1585_v35 = vmul.f32 %v3504_v42, %v1455_v33  ;;  %v2989_v36 = vpop.f32.mrb[42].mxu1 }
 0x218   :  { %2773 = vst [vmem:[%s3743_s8 + $0xa8] sm:$0xff] %v2670_v31   ;;  %v1658_v37 = vadd.f32 %v3509_v20, %v1587_v32  ;;  %v1588_v38 = vmul.f32 %v2989_v36, %v3504_v42  ;;  %v1458_v39 = vpop.f32.mrb[43].mxu1 }
 0x219   :  { %2772 = vst [vmem:[%s3743_s8 + $0xa0] sm:$0xff] %v2665_v34   ;;  %v1656_v40 = vadd.f32 %v3509_v20, %v1585_v35  ;;  %v1586_v41 = vmul.f32 %v3504_v42, %v1458_v39 }
 0x21a   :  { %v1659_v43 = vadd.f32 %v3509_v20, %v1588_v38  ;;  %v1722_v46 = vmax.f32 %v1658_v37, 0.0 }
 0x21b   :  { %v1657_v45 = vadd.f32 %v3509_v20, %v1586_v41  ;;  %v1720_v48 = vmax.f32 %v1656_v40, 0.0 }
 0x21c   :  { %v1723_v47 = vmax.f32 %v1659_v43, 0.0 }
 0x21d   :  { %v1721_v49 = vmax.f32 %v1657_v45, 0.0  ;;  %v2992_v50 = vpop.f32.mrb[44].mxu1 }
 0x21e   :  { %v2680_v51 = vpack.c.bf16 %v1723_v47, %v1722_v46  ;;  %v1591_v52 = vmul.f32 %v2992_v50, %v3504_v42  ;;  %v1471_v53 = vpop.f32.mrb[45].mxu1 }
 0x21f   :  { %v2675_v54 = vpack.c.bf16 %v1721_v49, %v1720_v48  ;;  %v1589_v55 = vmul.f32 %v3504_v42, %v1471_v53  ;;  %v2993_v56 = vpop.f32.mrb[46].mxu1 }
 0x220   :  { %2775 = vst [vmem:[%s3743_s8 + $0xb8] sm:$0xff] %v2680_v51   ;;  %v1662_v57 = vadd.f32 %v3509_v20, %v1591_v52  ;;  %v1592_v58 = vmul.f32 %v2993_v56, %v3504_v42  ;;  %v1474_v59 = vpop.f32.mrb[47].mxu1 }
 0x221   :  { %2774 = vst [vmem:[%s3743_s8 + $0xb0] sm:$0xff] %v2675_v54   ;;  %v1660_v60 = vadd.f32 %v3509_v20, %v1589_v55  ;;  %v1590_v61 = vmul.f32 %v3504_v42, %v1474_v59 }
 0x222   :  { %v1663_v62 = vadd.f32 %v3509_v20, %v1592_v58  ;;  %v1726_v0 = vmax.f32 %v1662_v57, 0.0 }
 0x223   :  { %v1661_v63 = vadd.f32 %v3509_v20, %v1590_v61  ;;  %v1724_v2 = vmax.f32 %v1660_v60, 0.0 }
 0x224   :  { %v1727_v1 = vmax.f32 %v1663_v62, 0.0 }
 0x225   :  { %v1725_v3 = vmax.f32 %v1661_v63, 0.0  ;;  %v2996_v4 = vpop.f32.mrb[48].mxu1 }
 0x226   :  { %v2690_v5 = vpack.c.bf16 %v1727_v1, %v1726_v0  ;;  %v1595_v6 = vmul.f32 %v2996_v4, %v3504_v42  ;;  %v1487_v7 = vpop.f32.mrb[49].mxu1 }
 0x227   :  { %v2685_v8 = vpack.c.bf16 %v1725_v3, %v1724_v2  ;;  %v1593_v9 = vmul.f32 %v3504_v42, %v1487_v7  ;;  %v2997_v10 = vpop.f32.mrb[50].mxu1 }
 0x228   :  { %2777 = vst [vmem:[%s3743_s8 + $0xc8] sm:$0xff] %v2690_v5   ;;  %v1666_v11 = vadd.f32 %v3509_v20, %v1595_v6  ;;  %v1596_v12 = vmul.f32 %v2997_v10, %v3504_v42  ;;  %v1490_v13 = vpop.f32.mrb[51].mxu1 }
 0x229   :  { %2776 = vst [vmem:[%s3743_s8 + $0xc0] sm:$0xff] %v2685_v8   ;;  %v1664_v14 = vadd.f32 %v3509_v20, %v1593_v9  ;;  %v1594_v15 = vmul.f32 %v3504_v42, %v1490_v13 }
 0x22a   :  { %v1667_v16 = vadd.f32 %v3509_v20, %v1596_v12  ;;  %v1730_v18 = vmax.f32 %v1666_v11, 0.0 }
 0x22b   :  { %v1665_v17 = vadd.f32 %v3509_v20, %v1594_v15  ;;  %v1728_v44 = vmax.f32 %v1664_v14, 0.0 }
 0x22c   :  { %v1731_v19 = vmax.f32 %v1667_v16, 0.0 }
 0x22d   :  { %v1729_v21 = vmax.f32 %v1665_v17, 0.0  ;;  %v3000_v22 = vpop.f32.mrb[52].mxu1 }
 0x22e   :  { %v2700_v23 = vpack.c.bf16 %v1731_v19, %v1730_v18  ;;  %v1599_v24 = vmul.f32 %v3000_v22, %v3504_v42  ;;  %v1503_v25 = vpop.f32.mrb[53].mxu1 }
 0x22f   :  { %v2695_v26 = vpack.c.bf16 %v1729_v21, %v1728_v44  ;;  %v1597_v27 = vmul.f32 %v3504_v42, %v1503_v25  ;;  %v3001_v28 = vpop.f32.mrb[54].mxu1 }
 0x230   :  { %2779 = vst [vmem:[%s3743_s8 + $0xd8] sm:$0xff] %v2700_v23   ;;  %v1670_v29 = vadd.f32 %v3509_v20, %v1599_v24  ;;  %v1600_v30 = vmul.f32 %v3001_v28, %v3504_v42  ;;  %v1506_v31 = vpop.f32.mrb[55].mxu1 }
 0x231   :  { %2778 = vst [vmem:[%s3743_s8 + $0xd0] sm:$0xff] %v2695_v26   ;;  %v1668_v32 = vadd.f32 %v3509_v20, %v1597_v27  ;;  %v1598_v33 = vmul.f32 %v3504_v42, %v1506_v31 }
 0x232   :  { %v1671_v34 = vadd.f32 %v3509_v20, %v1600_v30  ;;  %v1734_v36 = vmax.f32 %v1670_v29, 0.0 }
 0x233   :  { %v1669_v35 = vadd.f32 %v3509_v20, %v1598_v33  ;;  %v1732_v38 = vmax.f32 %v1668_v32, 0.0 }
 0x234   :  { %v1735_v37 = vmax.f32 %v1671_v34, 0.0 }
 0x235   :  { %v1733_v39 = vmax.f32 %v1669_v35, 0.0  ;;  %v3004_v40 = vpop.f32.mrb[56].mxu1 }
 0x236   :  { %v2710_v41 = vpack.c.bf16 %v1735_v37, %v1734_v36  ;;  %v1603_v43 = vmul.f32 %v3004_v40, %v3504_v42  ;;  %v1519_v45 = vpop.f32.mrb[57].mxu1 }
 0x237   :  { %v2705_v46 = vpack.c.bf16 %v1733_v39, %v1732_v38  ;;  %v1601_v47 = vmul.f32 %v3504_v42, %v1519_v45  ;;  %v3005_v48 = vpop.f32.mrb[58].mxu1 }
 0x238   :  { %2781 = vst [vmem:[%s3743_s8 + $0xe8] sm:$0xff] %v2710_v41   ;;  %v1674_v49 = vadd.f32 %v3509_v20, %v1603_v43  ;;  %v1604_v50 = vmul.f32 %v3005_v48, %v3504_v42  ;;  %v1522_v51 = vpop.f32.mrb[59].mxu1 }
 0x239   :  { %2780 = vst [vmem:[%s3743_s8 + $0xe0] sm:$0xff] %v2705_v46   ;;  %v1672_v52 = vadd.f32 %v3509_v20, %v1601_v47  ;;  %v1602_v53 = vmul.f32 %v3504_v42, %v1522_v51 }
 0x23a   :  { %v1675_v54 = vadd.f32 %v3509_v20, %v1604_v50  ;;  %v1738_v56 = vmax.f32 %v1674_v49, 0.0 }
 0x23b   :  { %v1673_v55 = vadd.f32 %v3509_v20, %v1602_v53  ;;  %v1736_v58 = vmax.f32 %v1672_v52, 0.0 }
 0x23c   :  { %v1739_v57 = vmax.f32 %v1675_v54, 0.0 }
 0x23d   :  { %v1737_v59 = vmax.f32 %v1673_v55, 0.0 }
 0x23e   :  { %v2720_v60 = vpack.c.bf16 %v1739_v57, %v1738_v56 }
 0x23f   :  { %v2715_v61 = vpack.c.bf16 %v1737_v59, %v1736_v58 }
 0x240   :  { %2783 = vst [vmem:[%s3743_s8 + $0xf8] sm:$0xff] %v2720_v60  }
 0x241   :  { %2782 = vst [vmem:[%s3743_s8 + $0xf0] sm:$0xff] %v2715_v61  }

// kernel: encoder_cnn_forward.7
= control target key start
LH: loop header
LB: loop body
LE: loop exit
PB: predicated region body
PF: predicated region fallthrough
CT: control target
= control target key end

     0   :  { %s445_s0 = inlined_call_operand.vmem [shape: f32[2,256], index: 0, kind: input, shape index: {}]   ;;  %s446_s1 = inlined_call_operand.vmem [shape: f32[256,128], index: 1, kind: input, shape index: {}]   ;;  %s447_s2 = inlined_call_operand.vmem [shape: f32[1,128], index: 2, kind: input, shape index: {}]   ;;  %s448_s3 = inlined_call_operand.vmem [shape: f32[1,128], index: 3, kind: input, shape index: {}]   ;;  %s449_s4 = inlined_call_operand.vmem [shape: f32[1,128], index: 4, kind: input, shape index: {}]   ;;  %s450_s5 = inlined_call_operand.hbm [shape: f32[2,128], index: 5, kind: output, shape index: {}]  }
   0x1   :  { %v38_v0 = vld [vmem:[%s446_s1 + $0x80] sm:$0xff]  ;;  %v39_v1 = vld [vmem:[%s446_s1 + $0x88] sm:$0xff]  ;;  %v40_v5 = vld [vmem:[%s446_s1 + $0x90] sm:$0xff] }
   0x2   :  { %v22_v2 = vld [vmem:[%s446_s1] sm:$0xff]  ;;  %v235_v3 = vpack.c.bf16 %v39_v1, %v38_v0  ;;  %v23_v4 = vld [vmem:[%s446_s1 + $0x8] sm:$0xff]  ;;  %v41_v6 = vld [vmem:[%s446_s1 + $0x98] sm:$0xff] }
   0x3   :  { %v237_v7 = vpack.c.bf16 %v23_v4, %v22_v2  ;;  %v239_v8 = vpack.c.bf16 %v41_v6, %v40_v5  ;;  %v24_v9 = vld [vmem:[%s446_s1 + $0x10] sm:$0xff]  ;;  %v25_v10 = vld [vmem:[%s446_s1 + $0x18] sm:$0xff]  ;;  %v42_v11 = vld [vmem:[%s446_s1 + $0xa0] sm:$0xff] }
   0x4   :  { %236 = vmatprep.subr.bf16.mxu0 %v235_v3  ;;  %v43_v12 = vld [vmem:[%s446_s1 + $0xa8] sm:$0xff]  ;;  %v241_v13 = vpack.c.bf16 %v25_v10, %v24_v9  ;;  %v26_v15 = vld [vmem:[%s446_s1 + $0x20] sm:$0xff]  ;;  %v44_v17 = vld [vmem:[%s446_s1 + $0xb0] sm:$0xff] }
   0x5   :  { %238 = vmatpush3.bf16.msra.mxu0 %v237_v7  ;;  %v243_v14 = vpack.c.bf16 %v43_v12, %v42_v11  ;;  %v27_v16 = vld [vmem:[%s446_s1 + $0x28] sm:$0xff]  ;;  %v45_v18 = vld [vmem:[%s446_s1 + $0xb8] sm:$0xff]  ;;  %v28_v21 = vld [vmem:[%s446_s1 + $0x30] sm:$0xff] }
   0x6   :  { %240 = vmatprep.subr.bf16.mxu0 %v239_v8  ;;  %v245_v19 = vpack.c.bf16 %v27_v16, %v26_v15  ;;  %v247_v20 = vpack.c.bf16 %v45_v18, %v44_v17  ;;  %v29_v22 = vld [vmem:[%s446_s1 + $0x38] sm:$0xff]  ;;  %v46_v23 = vld [vmem:[%s446_s1 + $0xc0] sm:$0xff]  ;;  %v47_v24 = vld [vmem:[%s446_s1 + $0xc8] sm:$0xff] }
   0x7   :  { %v197_v25 = vld.sshfl [vmem:[%s445_s0] sm:$0x33 pattern:$0x76325410] }
   0x8   :  { %v69_v26 = vcombine.high %v197_v25, %v197_v25 }
   0x9   :  { %242 = vmatpush3.bf16.msra.mxu0 %v241_v13 }
   0xa   :  { %244 = vmatprep.subr.bf16.mxu0 %v243_v14 }
   0xb   :  { %10 = vsyncpa [#allocation3], 0  ;;  %v249_v27 = vpack.c.bf16 %v29_v22, %v28_v21  ;;  %v251_v28 = vpack.c.bf16 %v47_v24, %v46_v23  ;;  %v30_v29 = vld [vmem:[%s446_s1 + $0x40] sm:$0xff]  ;;  %v31_v30 = vld [vmem:[%s446_s1 + $0x48] sm:$0xff]  ;;  %136 = vmatprep.mubr.f32.mxu0 %v69_v26  ;;  %vm142_vm0 = vcmask 1041408   ;;  %s294_s0 = smov [#allocation2]  }
   0xc   :  { %v48_v31 = vld [vmem:[%s446_s1 + $0xd0] sm:$0xff]  ;;  %v49_v32 = vld [vmem:[%s446_s1 + $0xd8] sm:$0xff]  ;;  %v253_v33 = vpack.c.bf16 %v31_v30, %v30_v29  ;;  %v50_v37 = vld [vmem:[%s446_s1 + $0xe0] sm:$0xff]  ;;  %s188_s12 = sshll.u32 %s294_s0, 4  ;;  %s189_s12 = int_to_ptr.vmem [resolvable:$true] %s188_s12 }
   0xd   :  { %246 = vmatpush3.bf16.msra.mxu0 %v245_v19  ;;  %v255_v34 = vpack.c.bf16 %v49_v32, %v48_v31  ;;  %v32_v35 = vld [vmem:[%s446_s1 + $0x50] sm:$0xff]  ;;  %v33_v36 = vld [vmem:[%s446_s1 + $0x58] sm:$0xff]  ;;  %v51_v38 = vld [vmem:[%s446_s1 + $0xe8] sm:$0xff]  ;;  %s270_s13 = scalar_lea.vmem %s189_s12, 32  ;;  %p275_p1 = scmp.lt.s32.totalorder %s189_s12, %s189_s12 }
   0xe   :  { %248 = vmatprep.subr.bf16.mxu0 %v247_v20  ;;  %v257_v39 = vpack.c.bf16 %v33_v36, %v32_v35  ;;  %v259_v40 = vpack.c.bf16 %v51_v38, %v50_v37  ;;  %v34_v41 = vld [vmem:[%s446_s1 + $0x60] sm:$0xff]  ;;  %v35_v42 = vld [vmem:[%s446_s1 + $0x68] sm:$0xff]  ;;  %v52_v43 = vld [vmem:[%s446_s1 + $0xf0] sm:$0xff]  ;;  %p271_p0 = scmp.ne.s32.totalorder %s189_s12, %s270_s13  ;;  %p276_p2 = scmp.lt.s32.totalorder %s270_s13, %s270_s13 }
   0xf   :  { %v53_v44 = vld [vmem:[%s446_s1 + $0xf8] sm:$0xff]  ;;  %v261_v45 = vpack.c.bf16 %v35_v42, %v34_v41  ;;  %v36_v47 = vld [vmem:[%s446_s1 + $0x70] sm:$0xff]  ;;  %v196_v51 = vld [vmem:[%s447_s2] ss:$0 sm:$0xff] }
  0x10   :  { %v263_v46 = vpack.c.bf16 %v53_v44, %v52_v43  ;;  %v37_v48 = vld [vmem:[%s446_s1 + $0x78] sm:$0xff]  ;;  %v198_v11 = vld [vmem:[%s448_s3] ss:$0 sm:$0xff]  ;;  %p277_p3 = por %p276_p2, %p275_p1 }
  0x11   :  { %250 = vmatpush3.bf16.msra.mxu0 %v249_v27  ;;  %v265_v49 = vpack.c.bf16 %v37_v48, %v36_v47  ;;  %v199_v13 = vld [vmem:[%s449_s4] ss:$0 sm:$0xff] }
  0x12   :  { %252 = vmatprep.subr.bf16.mxu0 %v251_v28  ;;  %p278_p4 = pnand %p277_p3, %p271_p0 }
  0x15   :  { %254 = vmatpush3.bf16.msra.mxu0 %v253_v33 }
  0x16   :  { %256 = vmatprep.subr.bf16.mxu0 %v255_v34 }
  0x19   :  { %258 = vmatpush3.bf16.msra.mxu0 %v257_v39 }
  0x1a   :  { %260 = vmatprep.subr.bf16.mxu0 %v259_v40 }
  0x1d   :  { %262 = vmatpush3.bf16.msra.mxu0 %v261_v45 }
  0x1e   :  { %264 = vmatprep.subr.bf16.mxu0 %v263_v46 }
  0x21   :  { %266 = vmatpush3.bf16.msra.mxu0 %v265_v49 }
  0x24   :  { %137 = vmatmul.mubr.f32.vlgmr.msra.gmra.mrb[0].mxu0 %v197_v25 }
  0xf7   :  { %v232_v50 = vpop.f32.mrb[0].mxu0 }
  0xf8   :  { %v233_v52 = vpop.f32.mrb[1].mxu0 }
  0xf9   :  { %v234_v53 = vadd.f32 %v233_v52, %v232_v50 }
  0xfb   :  { %v139_v54 = vadd.f32 %v234_v53, %v196_v51 }
  0xfd   :  { %v143_v55 = vsel %vm142_vm0, %v139_v54, 0.0 }
  0xfe   :  { %v144_v56 = vrot.slane %v143_v55, 4 }
 0x100   :  { %v145_v57 = vadd.f32 %v144_v56, %v143_v55 }
 0x102   :  { %v146_v58 = vrot.slane %v145_v57, 2 }
 0x104   :  { %v147_v59 = vadd.f32 %v146_v58, %v145_v57 }
 0x106   :  { %v148_v60 = vrot.slane %v147_v59, 1 }
 0x108   :  { %v149_v61 = vadd.f32 %v148_v60, %v147_v59 }
 0x10a   :  { %v151_v62 = vmul.f32 0.5, %v149_v61 }
 0x10c   :  { %v152_v63 = vsub.f32 %v139_v54, %v151_v62 }
 0x10e   :  { %v153_v0 = vmul.f32 %v152_v63, %v152_v63 }
 0x110   :  { %v154_v1 = vsel %vm142_vm0, %v153_v0, 0.0 }
 0x111   :  { %v155_v2 = vrot.slane %v154_v1, 4 }
 0x113   :  { %v156_v3 = vadd.f32 %v155_v2, %v154_v1 }
 0x115   :  { %v157_v4 = vrot.slane %v156_v3, 2 }
 0x117   :  { %v158_v5 = vadd.f32 %v157_v4, %v156_v3 }
 0x119   :  { %v159_v6 = vrot.slane %v158_v5, 1 }
 0x11b   :  { %v160_v7 = vadd.f32 %v159_v6, %v158_v5 }
 0x11d   :  { %v161_v8 = vmul.f32 0.5, %v160_v7 }
 0x11f   :  { %v162_v9 = vadd.f32 1e-05, %v161_v8 }
 0x121   :  { %268 = vrsqrt.f32 %v162_v9 }
 0x12b   :  { %v269_v10 = vpop.eup %268 }
 0x12c   :  { %v164_v12 = vmul.f32 %v269_v10, %v152_v63 }
 0x12e   :  { %v172_v14 = vmul.f32 %v198_v11, %v164_v12 }
 0x130   :  { %v180_v15 = vadd.f32 %v199_v13, %v172_v14 }
 0x132   :  { %181 = vst [vmem:[#allocation2] sm:$0x3] %v180_v15 }
 0x133   :  { %281 = shalt.err (!%p278_p4)
}
 0x134   :  { %s282_s15 = scalar_lea.hbm %s450_s5, 32 }
 0x135   :  { %p283_p5 = scmp.ne.s32.totalorder %s450_s5, %s282_s15  ;;  %p286_p6 = scmp.lt.u32.totalorder %s282_s15, %s450_s5 }
 0x137   :  { %p288_p7 = pnand %p286_p6, %p283_p5 }
 0x139   :  { %291 = shalt.err (!%p288_p7)
}
 0x13a   :  { %191 = dma.vmem_to_hbm [thread:$0]  %s189_s12, 32, %s450_s5, [#allocation3]  }
 0x13b   :  { %292 = dma.done.wait [#allocation3], 32  }
 0x13c   :  { %293 = vsyncadd [#allocation3], 4294967264 }
 0x13d   :  { %195 = vsyncpa [#allocation3], 1 }

// kernel: encoder_cnn_forward.5
= control target key start
LH: loop header
LB: loop body
LE: loop exit
PB: predicated region body
PF: predicated region fallthrough
CT: control target
= control target key end

     0   :  { %s5929_s15 = smov 0   ;;  %s6669_s0 = inlined_call_operand.vmem [shape: bf16[2,256,128], index: 0, kind: input, shape index: {}]   ;;  %s6670_s1 = inlined_call_operand.vmem [shape: bf16[9,128,128], index: 1, kind: input, shape index: {}]   ;;  %s6671_s2 = inlined_call_operand.vmem [shape: f32[1,128], index: 2, kind: input, shape index: {}]   ;;  %s6672_s3 = inlined_call_operand.vmem [shape: f32[1,128], index: 3, kind: input, shape index: {}]   ;;  %s6673_s4 = inlined_call_operand.vmem [shape: bf16[2,256,128], index: 4, kind: output, shape index: {}]  }
   0x1 LB: > { %s4410_s16 = sadd.s32 4294967295, %s5901_s15   ;;  %p4414_p0 = scmp.ge.s32.totalorder %s5901_s15, 1  ;;  %s5901_s15 = sphi %s5929_s15, %s14_s15  }
   0x2   : > { %p162_p1 = scmp.lt.s32.totalorder %s5901_s15, 3 }
   0x4   : > { %p163_p2 = pnand %p4414_p0, %p162_p1 }
   0x5   : > { %v5761_v0 = vld [vmem:[%s6670_s1] sm:$0xff] (!%p163_p2)   ;;  %v5903_v2 = vmov (!%p163_p2), 0   ;;  %v5763_v3 = vld [vmem:[%s6670_s1 + $0x8] sm:$0xff] (!%p163_p2)   ;;  %p188_p3 = scmp.lt.s32.totalorder (!%p163_p2), %s4410_s16, 1  ;;  %v5765_v5 = vld [vmem:[%s6670_s1 + $0x10] sm:$0xff] (!%p163_p2)   ;;  %vm268_vm0 = vcmask (!%p163_p2), 1047552  }
   0x6   : > { %166 = sbr.rel (%p163_p2) target bundleno = 545 (0x221), region = 36  ;;  %v5762_v1 = vld [vmem:[%s6670_s1 + $0x100] sm:$0xff] (!%p163_p2)   ;;  %5064 = vmatprep.mubr.bf16.mxu1 (!%p163_p2), %v5903_v2  ;;  %5048 = vmatprep.subr.bf16.mxu1 (!%p163_p2), %v5761_v0  ;;  %v5764_v4 = vld [vmem:[%s6670_s1 + $0x108] sm:$0xff] (!%p163_p2)   ;;  %v5766_v6 = vld [vmem:[%s6670_s1 + $0x110] sm:$0xff] (!%p163_p2)   ;;  %vm269_vm1 = vsmask.f32 (!%p163_p2), 7938 }
   0x7   : > { %5240 = vmatprep.subr.bf16.mxu0 (!%p163_p2), %v5762_v1  ;;  %5049 = vmatpush3.bf16.msra.mxu1 (!%p163_p2), %v5761_v0  ;;  %v5767_v7 = vld [vmem:[%s6670_s1 + $0x18] sm:$0xff] (!%p163_p2)   ;;  %v5769_v9 = vld [vmem:[%s6670_s1 + $0x20] sm:$0xff] (!%p163_p2)   ;;  %v5771_v11 = vld [vmem:[%s6670_s1 + $0x28] sm:$0xff] (!%p163_p2)   ;;  %vm300_vm3 = vsmask.f32 (!%p163_p2), 7424 }
   0x8   : > { %5241 = vmatpush3.bf16.msra.mxu0 (!%p163_p2), %v5762_v1  ;;  %5050 = vmatprep.subr.bf16.mxu1 (!%p163_p2), %v5763_v3  ;;  %v5768_v8 = vld [vmem:[%s6670_s1 + $0x118] sm:$0xff] (!%p163_p2)   ;;  %v5770_v10 = vld [vmem:[%s6670_s1 + $0x120] sm:$0xff] (!%p163_p2)   ;;  %v5772_v12 = vld [vmem:[%s6670_s1 + $0x128] sm:$0xff] (!%p163_p2)  }
   0x9   : > { %5242 = vmatprep.subr.bf16.mxu0 (!%p163_p2), %v5764_v4  ;;  %v5773_v16 = vld [vmem:[%s6670_s1 + $0x30] sm:$0xff] (!%p163_p2)   ;;  %v5775_v18 = vld [vmem:[%s6670_s1 + $0x38] sm:$0xff] (!%p163_p2)   ;;  %vm6004_vm2 = vmand (!%p163_p2), %vm268_vm0, %vm269_vm1 }
   0xa   : > { %v5774_v17 = vld [vmem:[%s6670_s1 + $0x130] sm:$0xff] (!%p163_p2)   ;;  %v5776_v22 = vld [vmem:[%s6670_s1 + $0x138] sm:$0xff] (!%p163_p2)   ;;  %v5779_v28 = vld [vmem:[%s6670_s1 + $0x40] sm:$0xff] (!%p163_p2)  }
   0xb   : > { %5051 = vmatpush3.bf16.msra.mxu1 (!%p163_p2), %v5763_v3  ;;  %v5781_v32 = vld [vmem:[%s6670_s1 + $0x140] sm:$0xff] (!%p163_p2)   ;;  %v5782_v36 = vld [vmem:[%s6670_s1 + $0x148] sm:$0xff] (!%p163_p2)   ;;  %v5793_v49 = vld [vmem:[%s6670_s1 + $0x50] sm:$0xff] (!%p163_p2)  }
   0xc   : > { %5243 = vmatpush3.bf16.msra.mxu0 (!%p163_p2), %v5764_v4  ;;  %5052 = vmatprep.subr.bf16.mxu1 (!%p163_p2), %v5765_v5  ;;  %v5786_v44 = vld [vmem:[%s6670_s1 + $0x48] sm:$0xff] (!%p163_p2)   ;;  %v5788_v51 = vld [vmem:[%s6670_s1 + $0x150] sm:$0xff] (!%p163_p2)   ;;  %v5789_v57 = vld [vmem:[%s6670_s1 + $0x158] sm:$0xff] (!%p163_p2)  }
   0xd   : > { %s6679_s16 = smov (!%p188_p3, %s4410_s16), 1  ;;  %5244 = vmatprep.subr.bf16.mxu0 %v5766_v6  ;;  %v5800_v0 = vld [vmem:[%s6670_s1 + $0x58] sm:$0xff]   ;;  %v5795_v3 = vld [vmem:[%s6670_s1 + $0x160] sm:$0xff]   ;;  %vm6112_vm4 = vmand %vm268_vm0, %vm300_vm3 }
   0xe   : > { %s4703_s7 = sshll.u32 %s6679_s16, 7  ;;  %v5872_v27 = vld [vmem:[%s6670_s1 + $0xf0] sm:$0xff]  }
   0xf   : > { %5053 = vmatpush3.bf16.msra.mxu1 %v5765_v5  ;;  %s5979_s18 = scalar_lea.vmem %s6669_s0, %s4703_s7  ;;  %s6587_s30 = scalar_lea.vmem %s6673_s4, %s4703_s7 }
  0x10   : > { %5245 = vmatpush3.bf16.msra.mxu0 %v5766_v6  ;;  %5054 = vmatprep.subr.bf16.mxu1 %v5767_v7  ;;  %v5985_v13 = vld [vmem:[%s5979_s18] sm:$0xff]   ;;  %v5783_v21 = vld [vmem:[%s5979_s18 + $0x8] sm:$0xff]   ;;  %v5785_v25 = vld [vmem:[%s5979_s18 + $0x10] sm:$0xff]  }
  0x11   : > { %5246 = vmatprep.subr.bf16.mxu0 %v5768_v8  ;;  %v5778_v14 = vld [vmem:[%s5979_s18] sm:$0xff]   ;;  %5256 = vmatprep.mubr.bf16.mxu0 %v5985_v13  ;;  %v313_v23 = vshrl.u32 %v5783_v21, 16  ;;  %v316_v24 = vshll.u32 %v5783_v21, 16  ;;  %v358_v30 = vshrl.u32 %v5785_v25, 16  ;;  %v6012_v31 = vld [vmem:[%s5979_s18 + $0x8] sm:$0xff]   ;;  %v361_v35 = vshll.u32 %v5785_v25, 16 }
  0x12   : > { %v261_v15 = vshrl.u32 %v5778_v14, 16  ;;  %v264_v20 = vshll.u32 %v5778_v14, 16  ;;  %v5790_v38 = vld [vmem:[%s5979_s18 + $0x18] sm:$0xff]   ;;  %v6026_v39 = vld [vmem:[%s5979_s18 + $0x10] sm:$0xff]   ;;  %v5792_v43 = vld [vmem:[%s5979_s18 + $0x20] sm:$0xff]  }
  0x13   : > { %5055 = vmatpush3.bf16.msra.mxu1 %v5767_v7  ;;  %v315_v29 = vrot.slane %v313_v23, 7  ;;  %v360_v37 = vrot.slane %v358_v30, 7  ;;  %v403_v41 = vshrl.u32 %v5790_v38, 16  ;;  %v406_v42 = vshll.u32 %v5790_v38, 16  ;;  %v6044_v50 = vld [vmem:[%s5979_s18 + $0x18] sm:$0xff]   ;;  %v6050_v54 = vld [vmem:[%s5979_s18 + $0x20] sm:$0xff]  }
  0x14   : > { %5247 = vmatpush3.bf16.msra.mxu0 %v5768_v8  ;;  %5056 = vmatprep.subr.bf16.mxu1 %v5769_v9  ;;  %v263_v19 = vrot.slane %v261_v15, 7  ;;  %v448_v47 = vshrl.u32 %v5792_v43, 16  ;;  %v451_v48 = vshll.u32 %v5792_v43, 16  ;;  %v5797_v55 = vld [vmem:[%s5979_s18 + $0x28] sm:$0xff]   ;;  %v5799_v62 = vld [vmem:[%s5979_s18 + $0x30] sm:$0xff]   ;;  %v5806_v14 = vld [vmem:[%s5979_s18 + $0x40] sm:$0xff]  }
  0x15   : > { %5248 = vmatprep.subr.bf16.mxu0 %v5770_v10  ;;  %v318_v33 = vor.u32 %v316_v24, %v315_v29  ;;  %v363_v45 = vor.u32 %v361_v35, %v360_v37  ;;  %v405_v46 = vrot.slane %v403_v41, 7  ;;  %v493_v60 = vshrl.u32 %v5797_v55, 16  ;;  %v6080_v6 = vld [vmem:[%s5979_s18 + $0x28] sm:$0xff]   ;;  %v5807_v23 = vld [vmem:[%s6670_s1 + $0x60] sm:$0xff]   ;;  %v5802_v29 = vld [vmem:[%s6670_s1 + $0x170] sm:$0xff]  }
  0x16   : > { %v266_v26 = vor.u32 %v264_v20, %v263_v19  ;;  %v450_v53 = vrot.slane %v448_v47, 7  ;;  %v496_v61 = vshll.u32 %v5797_v55, 16  ;;  %v538_v4 = vshrl.u32 %v5799_v62, 16  ;;  %v5808_v24 = vld [vmem:[%s5979_s18 + $0x8] sm:$0xff]   ;;  %v6108_v37 = vld [vmem:[%s5979_s18 + $0x38] sm:$0xff]   ;;  %v6345_v38 = vld [vmem:[%s5979_s18 + $0x40] sm:$0xff]  }
  0x17   : > { %5057 = vmatpush3.bf16.msra.mxu1 %v5769_v9  ;;  %v6030_v40 = vsel %vm6004_vm2, %v318_v33, 0  ;;  %v408_v52 = vor.u32 %v406_v42, %v405_v46  ;;  %v6055_v56 = vsel %vm6004_vm2, %v363_v45, 0  ;;  %v495_v63 = vrot.slane %v493_v60, 7  ;;  %v5810_v35 = vld [vmem:[%s5979_s18 + $0x48] sm:$0xff]   ;;  %v5803_v45 = vld [vmem:[%s6670_s1 + $0x178] sm:$0xff]  }
  0x18   : > { %5249 = vmatpush3.bf16.msra.mxu0 %v5770_v10  ;;  %5058 = vmatprep.subr.bf16.mxu1 %v5771_v11  ;;  %v6019_v34 = vsel %vm6004_vm2, %v266_v26, 0  ;;  %v453_v59 = vor.u32 %v451_v48, %v450_v53  ;;  %v540_v7 = vrot.slane %v538_v4, 7  ;;  %v541_v8 = vshll.u32 %v5799_v62, 16  ;;  %v6087_v10 = vld [vmem:[%s5979_s18 + $0x30] sm:$0xff]   ;;  %v5813_v53 = vld [vmem:[%s6670_s1 + $0x68] sm:$0xff]   ;;  %v5814_v62 = vld [vmem:[%s5979_s18 + $0x18] sm:$0xff]  }
  0x19   : > { %5250 = vmatprep.subr.bf16.mxu0 %v5772_v12  ;;  %v6062_v58 = vsel %vm6004_vm2, %v408_v52, 0  ;;  %v498_v5 = vor.u32 %v496_v61, %v495_v63  ;;  %v628_v20 = vshrl.u32 %v5806_v14, 16  ;;  %v342_v33 = vshll.u32 %v5808_v24, 16  ;;  %v5811_v48 = vld [vmem:[%s5979_s18 + $0x10] sm:$0xff]  }
  0x1a   : > { %v6073_v1 = vsel %vm6004_vm2, %v453_v59, 0  ;;  %v543_v25 = vor.u32 %v541_v8, %v540_v7  ;;  %v673_v42 = vshrl.u32 %v5810_v35, 16  ;;  %v676_v43 = vshll.u32 %v5810_v35, 16 }
  0x1b   : > { %5059 = vmatpush3.bf16.msra.mxu1 %v5771_v11  ;;  %v6084_v9 = vsel %vm6004_vm2, %v498_v5, 0  ;;  %v5804_v11 = vld [vmem:[%s5979_s18 + $0x38] sm:$0xff]   ;;  %v344_v41 = vrot.slane %v342_v33, 1  ;;  %v387_v59 = vshll.u32 %v5811_v48, 16  ;;  %v432_v8 = vshll.u32 %v5814_v62, 16 }
  0x1c   : > { %5251 = vmatpush3.bf16.msra.mxu0 %v5772_v12  ;;  %5060 = vmatprep.subr.bf16.mxu1 %v5773_v16  ;;  %v5805_v12 = vld [vmem:[%s5979_s18] sm:$0xff]   ;;  %v583_v15 = vshrl.u32 %v5804_v11, 16  ;;  %v675_v52 = vrot.slane %v673_v42, 7 }
  0x1d   : > { %5252 = vmatprep.subr.bf16.mxu0 %v5774_v17  ;;  %v294_v19 = vshll.u32 %v5805_v12, 16 }
  0x1e   : > { %v585_v21 = vrot.slane %v583_v15, 7  ;;  %v678_v61 = vor.u32 %v676_v43, %v675_v52  ;;  %v430_v15 = vshrl.u32 %v5814_v62, 16  ;;  %v5821_v43 = vld [vmem:[%s6670_s1 + $0x190] sm:$0xff]  }
  0x1f   : > { %5061 = vmatpush3.bf16.msra.mxu1 %v5773_v16  ;;  %v586_v16 = vshll.u32 %v5804_v11, 16  ;;  %v296_v26 = vrot.slane %v294_v19, 1  ;;  %v5815_v19 = vld [vmem:[%s6670_s1 + $0x188] sm:$0xff]   ;;  %v5824_v52 = vld [vmem:[%s5979_s18 + $0x70] sm:$0xff]  }
  0x20   : > { %5253 = vmatpush3.bf16.msra.mxu0 %v5774_v17  ;;  %5062 = vmatprep.subr.bf16.mxu1 %v5775_v18  ;;  %v5796_v17 = vld [vmem:[%s6670_s1 + $0x168] sm:$0xff]   ;;  %v6154_v11 = vsel %vm6004_vm2, %v678_v61, 0 }
  0x21   : > { %5254 = vmatprep.subr.bf16.mxu0 %v5776_v22  ;;  %v588_v30 = vor.u32 %v586_v16, %v585_v21  ;;  %v5817_v16 = vld [vmem:[%s5979_s18 + $0x20] sm:$0xff]  }
  0x23   : > { %5063 = vmatpush3.bf16.msra.mxu1 %v5775_v18  ;;  %v292_v18 = vshrl.u32 %v5805_v12, 16  ;;  %v6125_v46 = vsel %vm6004_vm2, %v588_v30, 0 }
  0x24   : > { %5255 = vmatpush3.bf16.msra.mxu0 %v5776_v22  ;;  %5096 = vmatprep.subr.bf16.mxu1 %v5779_v28  ;;  %v631_v22 = vshll.u32 %v5806_v14, 16  ;;  %v5816_v14 = vld [vmem:[%s5979_s18 + $0x58] sm:$0xff]  }
  0x25   : > { %5288 = vmatprep.subr.bf16.mxu0 %v5781_v32  ;;  %v766_v21 = vshll.u32 %v5816_v14, 16 }
  0x26   : > { %5065 = vmatmul.mubr.bf16.vlgmr.msra.gmra.mrb[0].mxu1 %v6019_v34 }
  0x27   : > { %5257 = vmatmul.mubr.bf16.vlgmr.msra.gmra.mrb[0].mxu0 %v6012_v31  ;;  %5097 = vmatpush3.bf16.msra.mxu1 %v5779_v28  ;;  %v630_v28 = vrot.slane %v628_v20, 7  ;;  %v763_v20 = vshrl.u32 %v5816_v14, 16 }
  0x28   : > { %5289 = vmatpush3.bf16.msra.mxu0 %v5781_v32  ;;  %5068 = vmatprep.mubr.bf16.mxu1 %v6030_v40  ;;  %v340_v32 = vshrl.u32 %v5808_v24, 16  ;;  %v5818_v24 = vld [vmem:[%s5979_s18 + $0x60] sm:$0xff]  }
  0x29   : > { %5290 = vmatprep.subr.bf16.mxu0 %v5782_v36  ;;  %5260 = vmatprep.mubr.bf16.mxu0 %v6026_v39  ;;  %v633_v47 = vor.u32 %v631_v22, %v630_v28  ;;  %v475_v22 = vshrl.u32 %v5817_v16, 16  ;;  %v5820_v28 = vld [vmem:[%s5979_s18 + $0x28] sm:$0xff]   ;;  %v808_v30 = vshrl.u32 %v5818_v24, 16  ;;  %v811_v42 = vshll.u32 %v5818_v24, 16 }
  0x2a   : > { %5098 = vmatprep.subr.bf16.mxu1 %v5786_v44  ;;  %v522_v33 = vshll.u32 %v5820_v28, 16 }
  0x2b   : > { %5099 = vmatpush3.bf16.msra.mxu1 %v5786_v44  ;;  %v6118_v44 = vsel %vm6004_vm2, %v543_v25, 0  ;;  %v6142_v63 = vsel %vm6004_vm2, %v633_v47, 0  ;;  %v5819_v25 = vld [vmem:[%s6670_s1 + $0x70] sm:$0xff]   ;;  %v520_v47 = vshrl.u32 %v5820_v28, 16 }
  0x2c   : > { %5291 = vmatpush3.bf16.msra.mxu0 %v5782_v36  ;;  %5100 = vmatprep.subr.bf16.mxu1 %v5793_v49  ;;  %v297_v36 = vor.u32 %v296_v26, %v292_v18  ;;  %v434_v18 = vrot.slane %v432_v8, 1  ;;  %v765_v26 = vrot.slane %v763_v20, 7 }
  0x2d   : > { %5292 = vmatprep.subr.bf16.mxu0 %v5788_v51 }
  0x2e   : > { %5069 = vmatmul.mubr.bf16.gmra.mrb[4].mxu1 %v6055_v56  ;;  %v6134_v55 = vsel %vm6112_vm4, %v297_v36, 0  ;;  %v435_v35 = vor.u32 %v434_v18, %v430_v15  ;;  %v768_v36 = vor.u32 %v766_v21, %v765_v26  ;;  %v898_v15 = vshrl.u32 %v5824_v52, 16  ;;  %v5827_v18 = vld [vmem:[%s6670_s1 + $0x198] sm:$0xff]   ;;  %v5828_v21 = vld [vmem:[%s5979_s18 + $0x40] sm:$0xff]  }
  0x2f   : > { %5261 = vmatmul.mubr.bf16.gmra.mrb[4].mxu0 %v6044_v50  ;;  %5072 = vmatprep.mubr.bf16.mxu1 %v6062_v58 }
  0x30   : > { %5293 = vmatpush3.bf16.msra.mxu0 %v5788_v51  ;;  %5264 = vmatprep.mubr.bf16.mxu0 %v6050_v54  ;;  %v345_v51 = vor.u32 %v344_v41, %v340_v32  ;;  %v6189_v61 = vsel %vm6112_vm4, %v435_v35, 0  ;;  %v6193_v62 = vsel %vm6004_vm2, %v768_v36, 0  ;;  %v5830_v35 = vld [vmem:[%s5979_s18 + $0x48] sm:$0xff]   ;;  %v5831_v36 = vld [vmem:[%s6670_s1 + $0x1a0] sm:$0xff]  }
  0x31   : > { %5294 = vmatprep.subr.bf16.mxu0 %v5789_v57  ;;  %5101 = vmatpush3.bf16.msra.mxu1 %v5793_v49  ;;  %v5812_v49 = vld [vmem:[%s5979_s18 + $0x50] sm:$0xff]  }
  0x32   : > { %5102 = vmatprep.subr.bf16.mxu1 %v5800_v0  ;;  %v718_v60 = vshrl.u32 %v5812_v49, 16  ;;  %v6150_v4 = vsel %vm6112_vm4, %v345_v51, 0  ;;  %v721_v7 = vshll.u32 %v5812_v49, 16  ;;  %v5823_v49 = vld [vmem:[%s5979_s18 + $0x30] sm:$0xff]   ;;  %v524_v51 = vrot.slane %v522_v33, 1 }
  0x33   : > { %v565_v8 = vshrl.u32 %v5823_v49, 16  ;;  %v657_v33 = vshll.u32 %v5828_v21, 16 }
  0x34   : > { %5295 = vmatpush3.bf16.msra.mxu0 %v5789_v57  ;;  %v385_v57 = vshrl.u32 %v5811_v48, 16  ;;  %v720_v5 = vrot.slane %v718_v60, 7  ;;  %v5822_v48 = vld [vmem:[%s5979_s18 + $0x68] sm:$0xff]   ;;  %v5825_v60 = vld [vmem:[%s6670_s1 + $0x78] sm:$0xff]  }
  0x35   : > { %5296 = vmatprep.subr.bf16.mxu0 %v5795_v3  ;;  %5103 = vmatpush3.bf16.msra.mxu1 %v5800_v0  ;;  %v5809_v0 = vld [vmem:[%s6670_s1 + $0x180] sm:$0xff]  }
  0x36   : > { %5073 = vmatmul.mubr.bf16.gmra.mrb[8].mxu1 %v6073_v1  ;;  %5104 = vmatprep.subr.bf16.mxu1 %v5807_v23  ;;  %v723_v32 = vor.u32 %v721_v7, %v720_v5 }
  0x37   : > { %5265 = vmatmul.mubr.bf16.gmra.mrb[8].mxu0 %v6080_v6  ;;  %5076 = vmatprep.mubr.bf16.mxu1 %v6084_v9 }
  0x38   : > { %5297 = vmatpush3.bf16.msra.mxu0 %v5795_v3  ;;  %5268 = vmatprep.mubr.bf16.mxu0 %v6087_v10  ;;  %v389_v3 = vrot.slane %v387_v59, 1  ;;  %v856_v59 = vshll.u32 %v5822_v48, 16 }
  0x39   : > { %5298 = vmatprep.subr.bf16.mxu0 %v5796_v17  ;;  %5105 = vmatpush3.bf16.msra.mxu1 %v5807_v23  ;;  %v477_v23 = vshll.u32 %v5817_v16, 16  ;;  %v5826_v16 = vld [vmem:[%s5979_s18 + $0x38] sm:$0xff]  }
  0x3a   : > { %5106 = vmatprep.subr.bf16.mxu1 %v5813_v53  ;;  %v390_v12 = vor.u32 %v389_v3, %v385_v57  ;;  %v853_v57 = vshrl.u32 %v5822_v48, 16  ;;  %v567_v3 = vshll.u32 %v5823_v49, 16  ;;  %v612_v20 = vshll.u32 %v5826_v16, 16 }
  0x3b   : > { %v702_v48 = vshll.u32 %v5830_v35, 16 }
  0x3c   : > { %5299 = vmatpush3.bf16.msra.mxu0 %v5796_v17  ;;  %v6160_v17 = vsel %vm6112_vm4, %v390_v12, 0  ;;  %v855_v7 = vrot.slane %v853_v57, 7  ;;  %v525_v12 = vor.u32 %v524_v51, %v520_v47  ;;  %v569_v14 = vrot.slane %v567_v3, 1  ;;  %v5835_v57 = vld [vmem:[%s6670_s1 + $0x1a8] sm:$0xff]  }
  0x3d   : > { %5300 = vmatprep.subr.bf16.mxu0 %v5802_v29  ;;  %5107 = vmatpush3.bf16.msra.mxu1 %v5813_v53  ;;  %v6182_v53 = vsel %vm6004_vm2, %v723_v32, 0  ;;  %v614_v32 = vrot.slane %v612_v20, 1  ;;  %v700_v3 = vshrl.u32 %v5830_v35, 16  ;;  %v5838_v35 = vld [vmem:[%s5979_s18 + $0x68] sm:$0xff]  }
  0x3e   : > { %5077 = vmatmul.mubr.bf16.gmra.mrb[12].mxu1 %v6118_v44  ;;  %5108 = vmatprep.subr.bf16.mxu1 %v5819_v25  ;;  %v570_v24 = vor.u32 %v569_v14, %v565_v8  ;;  %v6219_v26 = vsel %vm6112_vm4, %v525_v12, 0  ;;  %v5839_v14 = vld [vmem:[%s6670_s1 + $0x1b0] sm:$0xff]  }
  0x3f   : > { %5269 = vmatmul.mubr.bf16.gmra.mrb[12].mxu0 %v6108_v37  ;;  %5080 = vmatprep.mubr.bf16.mxu1 %v6125_v46 }
  0x40   : > { %5301 = vmatpush3.bf16.msra.mxu0 %v5802_v29  ;;  %5304 = vmatprep.mubr.bf16.mxu0 %v6134_v55  ;;  %v479_v29 = vrot.slane %v477_v23, 1 }
  0x41   : > { %5302 = vmatprep.subr.bf16.mxu0 %v5803_v45  ;;  %5109 = vmatpush3.bf16.msra.mxu1 %v5819_v25  ;;  %v901_v25 = vshll.u32 %v5824_v52, 16 }
  0x42   : > { %v480_v41 = vor.u32 %v479_v29, %v475_v22  ;;  %5110 = vmatprep.subr.bf16.mxu1 %v5825_v60  ;;  %v6211_v22 = vld [vmem:[%s6670_s1 + $0x80] sm:$0xff]   ;;  %v900_v29 = vrot.slane %v898_v15, 7 }
  0x44   : > { %5303 = vmatpush3.bf16.msra.mxu0 %v5803_v45  ;;  %v810_v45 = vrot.slane %v808_v30, 7  ;;  %v610_v30 = vshrl.u32 %v5826_v16, 16  ;;  %v903_v47 = vor.u32 %v901_v25, %v900_v29  ;;  %v5836_v16 = vld [vmem:[%s5979_s18 + $0x60] sm:$0xff]   ;;  %v5843_v29 = vld [vmem:[%s6670_s1 + $0x1b8] sm:$0xff]  }
  0x45   : > { %5336 = vmatprep.subr.bf16.mxu0 %v5809_v0  ;;  %5111 = vmatpush3.bf16.msra.mxu1 %v5825_v60  ;;  %v5834_v60 = vld [vmem:[%s5979_s18 + $0x58] sm:$0xff]  }
  0x46   : > { %5081 = vmatmul.mubr.bf16.gmra.mrb[16].mxu1 %v6142_v63  ;;  %v813_v5 = vor.u32 %v811_v42, %v810_v45  ;;  %5144 = vmatprep.subr.bf16.mxu1 %v6211_v22  ;;  %v655_v42 = vshrl.u32 %v5828_v21, 16  ;;  %v5832_v45 = vld [vmem:[%s5979_s18 + $0x50] sm:$0xff]   ;;  %v615_v49 = vor.u32 %v614_v32, %v610_v30  ;;  %v790_v21 = vshrl.u32 %v5834_v60, 16  ;;  %v5833_v32 = vld [vmem:[%s6670_s1 + $0x88] sm:$0xff]  }
  0x47   : > { %5305 = vmatmul.mubr.bf16.vlgmr.msra.gmra.mrb[0].mxu0 %v6150_v4  ;;  %5084 = vmatprep.mubr.bf16.mxu1 %v6154_v11  ;;  %v747_v51 = vshll.u32 %v5832_v45, 16  ;;  %v745_v8 = vshrl.u32 %v5832_v45, 16  ;;  %v5840_v45 = vld [vmem:[%s5979_s18 + $0x70] sm:$0xff]  }
  0x48   : > { %5337 = vmatpush3.bf16.msra.mxu0 %v5809_v0  ;;  %5308 = vmatprep.mubr.bf16.mxu0 %v6160_v17  ;;  %v6197_v0 = vsel %vm6112_vm4, %v480_v41, 0  ;;  %v6215_v23 = vsel %vm6004_vm2, %v813_v5, 0  ;;  %v6232_v41 = vsel %vm6112_vm4, %v570_v24, 0  ;;  %v704_v5 = vrot.slane %v702_v48, 1  ;;  %v5837_v48 = vld [vmem:[%s6670_s1 + $0x90] sm:$0xff]  }
  0x49   : > { %5338 = vmatprep.subr.bf16.mxu0 %v5815_v19  ;;  %v749_v12 = vrot.slane %v747_v51, 1  ;;  %v837_v24 = vshll.u32 %v5836_v16, 16 }
  0x4b   : > { %v750_v20 = vor.u32 %v749_v12, %v745_v8 }
  0x4c   : > { %5339 = vmatpush3.bf16.msra.mxu0 %v5815_v19  ;;  %v858_v19 = vor.u32 %v856_v59, %v855_v7  ;;  %v6244_v59 = vsel %vm6004_vm2, %v903_v47, 0  ;;  %v6249_v7 = vsel %vm6112_vm4, %v615_v49, 0  ;;  %v882_v49 = vshll.u32 %v5838_v35, 16 }
  0x4d   : > { %5340 = vmatprep.subr.bf16.mxu0 %v5821_v43 }
  0x4e   : > { %5085 = vmatmul.mubr.bf16.gmra.mrb[20].mxu1 %v6182_v53  ;;  %v6223_v28 = vsel %vm6004_vm2, %v858_v19, 0  ;;  %v705_v19 = vor.u32 %v704_v5, %v700_v3  ;;  %v5842_v3 = vld [vmem:[%s5979_s18 + $0x78] sm:$0xff]  }
  0x4f   : > { %5309 = vmatmul.mubr.bf16.gmra.mrb[4].mxu0 %v6189_v61  ;;  %5088 = vmatprep.mubr.bf16.mxu1 %v6193_v62 }
  0x50   : > { %5312 = vmatprep.mubr.bf16.mxu0 %v6197_v0  ;;  %5341 = vmatpush3.bf16.msra.mxu0 %v5821_v43  ;;  %v659_v43 = vrot.slane %v657_v33, 1  ;;  %v6268_v30 = vsel %vm6112_vm4, %v705_v19, 0  ;;  %v835_v33 = vshrl.u32 %v5836_v16, 16  ;;  %v970_v19 = vshrl.u32 %v5842_v3, 16 }
  0x51   : > { %5342 = vmatprep.subr.bf16.mxu0 %v5827_v18 }
  0x52   : > { %v660_v52 = vor.u32 %v659_v43, %v655_v42  ;;  %v6281_v42 = vld [vmem:[%s6670_s1 + $0x1c0] sm:$0xff]   ;;  %v839_v43 = vrot.slane %v837_v24, 1 }
  0x54   : > { %5343 = vmatpush3.bf16.msra.mxu0 %v5827_v18  ;;  %v6256_v15 = vsel %vm6112_vm4, %v660_v52, 0  ;;  %v792_v18 = vshll.u32 %v5834_v60, 16  ;;  %v840_v51 = vor.u32 %v839_v43, %v835_v33  ;;  %v925_v60 = vshrl.u32 %v5840_v45, 16  ;;  %v5854_v33 = vld [vmem:[%s6670_s1 + $0x1d0] sm:$0xff]   ;;  %v6365_v43 = vld [vmem:[%s5979_s18 + $0x58] sm:$0xff]  }
  0x55   : > { %5344 = vmatprep.subr.bf16.mxu0 %v5831_v36 }
  0x56   : > { %5089 = vmatmul.mubr.bf16.gmra.mrb[24].mxu1 %v6215_v23  ;;  %v794_v25 = vrot.slane %v792_v18, 1  ;;  %v6303_v5 = vsel %vm6112_vm4, %v840_v51, 0  ;;  %v5845_v18 = vld [vmem:[%s6670_s1 + $0xa0] sm:$0xff]   ;;  %v5864_v51 = vld [vmem:[%s6670_s1 + $0x1f0] sm:$0xff]  }
  0x57   : > { %5313 = vmatmul.mubr.bf16.gmra.mrb[8].mxu0 %v6219_v26  ;;  %5092 = vmatprep.mubr.bf16.mxu1 %v6223_v28 }
  0x58   : > { %5316 = vmatprep.mubr.bf16.mxu0 %v6232_v41  ;;  %5345 = vmatpush3.bf16.msra.mxu0 %v5831_v36  ;;  %v6276_v36 = vsel %vm6112_vm4, %v750_v20, 0  ;;  %v795_v47 = vor.u32 %v794_v25, %v790_v21  ;;  %v5849_v21 = vld [vmem:[%s6670_s1 + $0xa8] sm:$0xff]   ;;  %v5853_v25 = vld [vmem:[%s6670_s1 + $0xb0] sm:$0xff]  }
  0x59   : > { %5346 = vmatprep.subr.bf16.mxu0 %v5835_v57 }
  0x5a   : > { %v6295_v52 = vsel %vm6112_vm4, %v795_v47, 0  ;;  %v6378_v47 = vld [vmem:[%s5979_s18 + $0x60] sm:$0xff]  }
  0x5c   : > { %5347 = vmatpush3.bf16.msra.mxu0 %v5835_v57  ;;  %v880_v57 = vshrl.u32 %v5838_v35, 16  ;;  %v6362_v35 = vld [vmem:[%s5979_s18 + $0x50] sm:$0xff]  }
  0x5d   : > { %5348 = vmatprep.subr.bf16.mxu0 %v5839_v14 }
  0x5e   : > { %5093 = vmatmul.mubr.bf16.gmra.mrb[28].mxu1 %v6244_v59 }
  0x5f   : > { %5317 = vmatmul.mubr.bf16.gmra.mrb[12].mxu0 %v6249_v7  ;;  %5112 = vmatprep.mubr.bf16.mxu1 %v5903_v2 }
  0x60   : > { %5320 = vmatprep.mubr.bf16.mxu0 %v6256_v15  ;;  %5349 = vmatpush3.bf16.msra.mxu0 %v5839_v14  ;;  %v972_v14 = vshll.u32 %v5842_v3, 16  ;;  %v5863_v3 = vld [vmem:[%s6670_s1 + $0xd0] sm:$0xff]  }
  0x61   : > { %5350 = vmatprep.subr.bf16.mxu0 %v5843_v29 }
  0x64   : > { %5351 = vmatpush3.bf16.msra.mxu0 %v5843_v29 }
  0x65   : > { %5384 = vmatprep.subr.bf16.mxu0 %v6281_v42 }
  0x66   : > { %5113 = vmatmul.mubr.bf16.vlgmr.msra.gmra.mrb[0].mxu1 %v5985_v13  ;;  %v927_v13 = vshll.u32 %v5840_v45, 16  ;;  %v5858_v45 = vld [vmem:[%s6670_s1 + $0x1d8] sm:$0xff]  }
  0x67   : > { %5321 = vmatmul.mubr.bf16.gmra.mrb[16].mxu0 %v6268_v30  ;;  %5145 = vmatpush3.bf16.msra.mxu1 %v6211_v22  ;;  %v884_v22 = vrot.slane %v882_v49, 1  ;;  %v5862_v49 = vld [vmem:[%s6670_s1 + $0x1e8] sm:$0xff]  }
  0x68   : > { %5116 = vmatprep.mubr.bf16.mxu1 %v6012_v31  ;;  %5324 = vmatprep.mubr.bf16.mxu0 %v6276_v36  ;;  %v5841_v31 = vld [vmem:[%s6670_s1 + $0x98] sm:$0xff]   ;;  %v929_v8 = vrot.slane %v927_v13, 1  ;;  %v6394_v13 = vld [vmem:[%s5979_s18 + $0x70] sm:$0xff]  }
  0x69   : > { %5146 = vmatprep.subr.bf16.mxu1 %v5833_v32  ;;  %v885_v12 = vor.u32 %v884_v22, %v880_v57  ;;  %v5867_v57 = vld [vmem:[%s6670_s1 + $0x1f8] sm:$0xff]  }
  0x6a   : > { %v930_v16 = vor.u32 %v929_v8, %v925_v60  ;;  %v5869_v60 = vld [vmem:[%s6670_s1 + $0x200] sm:$0xff]   ;;  %v5865_v22 = vld [vmem:[%s5979_s18 + $0x78] sm:$0xff]  }
  0x6b   : > { %5147 = vmatpush3.bf16.msra.mxu1 %v5833_v32  ;;  %v6314_v20 = vsel %vm6112_vm4, %v885_v12, 0  ;;  %v6348_v32 = vld [vmem:[%s5979_s18 + $0x48] sm:$0xff]   ;;  %v943_v8 = vshrl.u32 %v5865_v22, 16 }
  0x6c   : > { %5148 = vmatprep.subr.bf16.mxu1 %v5837_v48 }
  0x6d   : > { %v945_v12 = vrot.slane %v943_v8, 7 }
  0x6e   : > { %5117 = vmatmul.mubr.bf16.gmra.mrb[4].mxu1 %v6026_v39  ;;  %v974_v39 = vrot.slane %v972_v14, 1  ;;  %v946_v14 = vshll.u32 %v5865_v22, 16  ;;  %v5880_v22 = vld [vmem:[%s6670_s1 + $0x238] sm:$0xff]  }
  0x6f   : > { %5325 = vmatmul.mubr.bf16.gmra.mrb[20].mxu0 %v6295_v52  ;;  %5120 = vmatprep.mubr.bf16.mxu1 %v6044_v50  ;;  %v6318_v50 = vsel %vm6112_vm4, %v930_v16, 0 }
  0x70   : > { %5328 = vmatprep.mubr.bf16.mxu0 %v6303_v5  ;;  %5149 = vmatpush3.bf16.msra.mxu1 %v5837_v48  ;;  %v975_v24 = vor.u32 %v974_v39, %v970_v19  ;;  %v6381_v48 = vld [vmem:[%s5979_s18 + $0x68] sm:$0xff]   ;;  %v948_v16 = vor.u32 %v946_v14, %v945_v12 }
  0x71   : > { %5150 = vmatprep.subr.bf16.mxu1 %v5841_v31  ;;  %v5870_v39 = vld [vmem:[%s6670_s1 + $0xe8] sm:$0xff]  }
  0x72   : > { %v6332_v29 = vsel %vm6112_vm4, %v975_v24, 0  ;;  %v6429_v19 = vsel %vm6004_vm2, %v948_v16, 0  ;;  %v5881_v24 = vld [vmem:[%s5979_s18 + $0x8] sm:$0xff]  }
  0x74   : > { %5151 = vmatpush3.bf16.msra.mxu1 %v5841_v31  ;;  %v5861_v31 = vld [vmem:[%s6670_s1 + $0xc8] sm:$0xff]  }
  0x75   : > { %5152 = vmatprep.subr.bf16.mxu1 %v5845_v18 }
  0x76   : > { %5121 = vmatmul.mubr.bf16.gmra.mrb[8].mxu1 %v6050_v54  ;;  %v5857_v54 = vld [vmem:[%s6670_s1 + $0xb8] sm:$0xff]  }
  0x77   : > { %5329 = vmatmul.mubr.bf16.gmra.mrb[24].mxu0 %v6314_v20  ;;  %5124 = vmatprep.mubr.bf16.mxu1 %v6080_v6  ;;  %v5859_v6 = vld [vmem:[%s6670_s1 + $0xc0] sm:$0xff]  }
  0x78   : > { %5332 = vmatprep.mubr.bf16.mxu0 %v6318_v50  ;;  %5153 = vmatpush3.bf16.msra.mxu1 %v5845_v18  ;;  %v5868_v18 = vld [vmem:[%s6670_s1 + $0xe0] sm:$0xff]  }
  0x79   : > { %5154 = vmatprep.subr.bf16.mxu1 %v5849_v21 }
  0x7c   : > { %5155 = vmatpush3.bf16.msra.mxu1 %v5849_v21  ;;  %v5874_v21 = vld [vmem:[%s6670_s1 + $0xf8] sm:$0xff]  }
  0x7d   : > { %5156 = vmatprep.subr.bf16.mxu1 %v5853_v25 }
  0x7e   : > { %5125 = vmatmul.mubr.bf16.gmra.mrb[12].mxu1 %v6087_v10  ;;  %v5850_v10 = vld [vmem:[%s6670_s1 + $0x1c8] sm:$0xff]  }
  0x7f   : > { %5333 = vmatmul.mubr.bf16.gmra.mrb[28].mxu0 %v6332_v29  ;;  %5128 = vmatprep.mubr.bf16.mxu1 %v6108_v37 }
  0x80   : > { %5352 = vmatprep.mubr.bf16.mxu0 %v6030_v40  ;;  %5157 = vmatpush3.bf16.msra.mxu1 %v5853_v25  ;;  %v5871_v25 = vld [vmem:[%s6670_s1 + $0x208] sm:$0xff]  }
  0x81   : > { %5158 = vmatprep.subr.bf16.mxu1 %v5857_v54 }
  0x84   : > { %5159 = vmatpush3.bf16.msra.mxu1 %v5857_v54  ;;  %v5882_v54 = vld [vmem:[%s6670_s1 + $0x100] sm:$0xff]  }
  0x85   : > { %5192 = vmatprep.subr.bf16.mxu1 %v5859_v6 }
  0x86   : > { %5129 = vmatmul.mubr.bf16.gmra.mrb[16].mxu1 %v6345_v38 }
  0x87   : > { %5353 = vmatmul.mubr.bf16.vlgmr.msra.gmra.mrb[0].mxu0 %v6055_v56  ;;  %5132 = vmatprep.mubr.bf16.mxu1 %v6348_v32 }
  0x88   : > { %5385 = vmatpush3.bf16.msra.mxu0 %v6281_v42  ;;  %5356 = vmatprep.mubr.bf16.mxu0 %v6062_v58  ;;  %v5860_v42 = vld [vmem:[%s6670_s1 + $0x1e0] sm:$0xff]  }
  0x89   : > { %5386 = vmatprep.subr.bf16.mxu0 %v5850_v10 }
  0x8c   : > { %5387 = vmatpush3.bf16.msra.mxu0 %v5850_v10  ;;  %v5884_v10 = vld [vmem:[%s5979_s18 + $0x18] sm:$0xff]  }
  0x8d   : > { %5388 = vmatprep.subr.bf16.mxu0 %v5854_v33 }
  0x8e   : > { %5133 = vmatmul.mubr.bf16.gmra.mrb[20].mxu1 %v6362_v35 }
  0x8f   : > { %5357 = vmatmul.mubr.bf16.gmra.mrb[4].mxu0 %v6073_v1  ;;  %5136 = vmatprep.mubr.bf16.mxu1 %v6365_v43 }
  0x90   : > { %5360 = vmatprep.mubr.bf16.mxu0 %v6084_v9  ;;  %5389 = vmatpush3.bf16.msra.mxu0 %v5854_v33  ;;  %v5873_v33 = vld [vmem:[%s6670_s1 + $0x210] sm:$0xff]  }
  0x91   : > { %5390 = vmatprep.subr.bf16.mxu0 %v5858_v45 }
  0x94   : > { %5391 = vmatpush3.bf16.msra.mxu0 %v5858_v45  ;;  %v5875_v45 = vld [vmem:[%s6670_s1 + $0x218] sm:$0xff]  }
  0x95   : > { %5392 = vmatprep.subr.bf16.mxu0 %v5860_v42 }
  0x96   : > { %5137 = vmatmul.mubr.bf16.gmra.mrb[24].mxu1 %v6378_v47 }
  0x97   : > { %5361 = vmatmul.mubr.bf16.gmra.mrb[8].mxu0 %v6118_v44  ;;  %5140 = vmatprep.mubr.bf16.mxu1 %v6381_v48 }
  0x98   : > { %5364 = vmatprep.mubr.bf16.mxu0 %v6125_v46  ;;  %5393 = vmatpush3.bf16.msra.mxu0 %v5860_v42  ;;  %v5885_v42 = vld [vmem:[%s5979_s18 + $0x20] sm:$0xff]  }
  0x99   : > { %5394 = vmatprep.subr.bf16.mxu0 %v5862_v49 }
  0x9c   : > { %5395 = vmatpush3.bf16.msra.mxu0 %v5862_v49  ;;  %v5886_v49 = vld [vmem:[%s5979_s18 + $0x28] sm:$0xff]  }
  0x9d   : > { %5396 = vmatprep.subr.bf16.mxu0 %v5864_v51 }
  0x9e   : > { %5141 = vmatmul.mubr.bf16.gmra.mrb[28].mxu1 %v6394_v13 }
  0x9f   : > { %5365 = vmatmul.mubr.bf16.gmra.mrb[12].mxu0 %v6142_v63  ;;  %5160 = vmatprep.mubr.bf16.mxu1 %v5903_v2 }
  0xa0   : > { %5368 = vmatprep.mubr.bf16.mxu0 %v6154_v11  ;;  %5397 = vmatpush3.bf16.msra.mxu0 %v5864_v51  ;;  %v5876_v51 = vld [vmem:[%s6670_s1 + $0x220] sm:$0xff]  }
  0xa1   : > { %5398 = vmatprep.subr.bf16.mxu0 %v5867_v57 }
  0xa4   : > { %5399 = vmatpush3.bf16.msra.mxu0 %v5867_v57  ;;  %v5877_v57 = vld [vmem:[%s6670_s1 + $0x228] sm:$0xff]  }
  0xa5   : > { %5432 = vmatprep.subr.bf16.mxu0 %v5869_v60 }
  0xa6   : > { %5161 = vmatmul.mubr.bf16.vlgmr.msra.gmra.mrb[0].mxu1 %v6134_v55  ;;  %v5866_v55 = vld [vmem:[%s6670_s1 + $0xd8] sm:$0xff]  }
  0xa7   : > { %5369 = vmatmul.mubr.bf16.gmra.mrb[16].mxu0 %v6182_v53  ;;  %5193 = vmatpush3.bf16.msra.mxu1 %v5859_v6  ;;  %v5883_v6 = vld [vmem:[%s5979_s18 + $0x10] sm:$0xff]  }
  0xa8   : > { %5164 = vmatprep.mubr.bf16.mxu1 %v6150_v4  ;;  %5372 = vmatprep.mubr.bf16.mxu0 %v6193_v62 }
  0xa9   : > { %5194 = vmatprep.subr.bf16.mxu1 %v5861_v31 }
  0xab   : > { %5195 = vmatpush3.bf16.msra.mxu1 %v5861_v31  ;;  %v5878_v31 = vld [vmem:[%s6670_s1 + $0x230] sm:$0xff]  }
  0xac   : > { %5196 = vmatprep.subr.bf16.mxu1 %v5863_v3 }
  0xae   : > { %5165 = vmatmul.mubr.bf16.gmra.mrb[4].mxu1 %v6160_v17 }
  0xaf   : > { %5373 = vmatmul.mubr.bf16.gmra.mrb[20].mxu0 %v6215_v23  ;;  %5168 = vmatprep.mubr.bf16.mxu1 %v6189_v61 }
  0xb0   : > { %5376 = vmatprep.mubr.bf16.mxu0 %v6223_v28  ;;  %5197 = vmatpush3.bf16.msra.mxu1 %v5863_v3  ;;  %v5891_v3 = vld [vmem:[%s6670_s1 + $0x120] sm:$0xff]  }
  0xb1   : > { %5198 = vmatprep.subr.bf16.mxu1 %v5866_v55 }
  0xb4   : > { %5199 = vmatpush3.bf16.msra.mxu1 %v5866_v55 }
  0xb5   : > { %5200 = vmatprep.subr.bf16.mxu1 %v5868_v18 }
  0xb6   : > { %5169 = vmatmul.mubr.bf16.gmra.mrb[8].mxu1 %v6197_v0 }
  0xb7   : > { %5377 = vmatmul.mubr.bf16.gmra.mrb[24].mxu0 %v6244_v59  ;;  %5172 = vmatprep.mubr.bf16.mxu1 %v6219_v26 }
  0xb8   : > { %5380 = vmatprep.mubr.bf16.mxu0 %v6429_v19  ;;  %5201 = vmatpush3.bf16.msra.mxu1 %v5868_v18 }
  0xb9   : > { %5202 = vmatprep.subr.bf16.mxu1 %v5870_v39 }
  0xbc   : > { %5203 = vmatpush3.bf16.msra.mxu1 %v5870_v39 }
  0xbd   : > { %5204 = vmatprep.subr.bf16.mxu1 %v5872_v27 }
  0xbe   : > { %5173 = vmatmul.mubr.bf16.gmra.mrb[12].mxu1 %v6232_v41 }
  0xbf   : > { %5381 = vmatmul.mubr.bf16.gmra.mrb[28].mxu0 %v5903_v2  ;;  %5176 = vmatprep.mubr.bf16.mxu1 %v6249_v7 }
  0xc0   : > { %5400 = vmatprep.mubr.bf16.mxu0 %v5881_v24  ;;  %5205 = vmatpush3.bf16.msra.mxu1 %v5872_v27 }
  0xc1   : > { %5206 = vmatprep.subr.bf16.mxu1 %v5874_v21 }
  0xc4   : > { %5207 = vmatpush3.bf16.msra.mxu1 %v5874_v21 }
  0xc5   : > { %5480 = vmatprep.subr.bf16.mxu1 %v5882_v54 }
  0xc6   : > { %5177 = vmatmul.mubr.bf16.gmra.mrb[16].mxu1 %v6256_v15 }
  0xc7   : > { %5401 = vmatmul.mubr.bf16.vlgmr.msra.gmra.mrb[0].mxu0 %v5883_v6  ;;  %5180 = vmatprep.mubr.bf16.mxu1 %v6268_v30 }
  0xc8   : > { %5433 = vmatpush3.bf16.msra.mxu0 %v5869_v60  ;;  %5404 = vmatprep.mubr.bf16.mxu0 %v5884_v10  ;;  %v5887_v60 = vld [vmem:[%s5979_s18 + $0x30] sm:$0xff]  }
  0xc9   : > { %5434 = vmatprep.subr.bf16.mxu0 %v5871_v25 }
  0xcc   : > { %5435 = vmatpush3.bf16.msra.mxu0 %v5871_v25 }
  0xcd   : > { %5436 = vmatprep.subr.bf16.mxu0 %v5873_v33 }
  0xce   : > { %5181 = vmatmul.mubr.bf16.gmra.mrb[20].mxu1 %v6276_v36 }
  0xcf   : > { %5405 = vmatmul.mubr.bf16.gmra.mrb[4].mxu0 %v5885_v42  ;;  %5184 = vmatprep.mubr.bf16.mxu1 %v6295_v52 }
  0xd0   : > { %5408 = vmatprep.mubr.bf16.mxu0 %v5886_v49  ;;  %5437 = vmatpush3.bf16.msra.mxu0 %v5873_v33 }
  0xd1   : > { %5438 = vmatprep.subr.bf16.mxu0 %v5875_v45 }
  0xd4   : > { %5439 = vmatpush3.bf16.msra.mxu0 %v5875_v45 }
  0xd5   : > { %5440 = vmatprep.subr.bf16.mxu0 %v5876_v51 }
  0xd6   : > { %5185 = vmatmul.mubr.bf16.gmra.mrb[24].mxu1 %v6303_v5 }
  0xd7   : > { %5409 = vmatmul.mubr.bf16.gmra.mrb[8].mxu0 %v5887_v60  ;;  %5188 = vmatprep.mubr.bf16.mxu1 %v6314_v20 }
  0xd8   : > { %5412 = vmatprep.mubr.bf16.mxu0 %v6108_v37  ;;  %5441 = vmatpush3.bf16.msra.mxu0 %v5876_v51  ;;  %v5888_v37 = vld [vmem:[%s6670_s1 + $0x108] sm:$0xff]  }
  0xd9   : > { %5442 = vmatprep.subr.bf16.mxu0 %v5877_v57 }
  0xdc   : > { %5443 = vmatpush3.bf16.msra.mxu0 %v5877_v57 }
  0xdd   : > { %5444 = vmatprep.subr.bf16.mxu0 %v5878_v31 }
  0xde   : > { %5189 = vmatmul.mubr.bf16.gmra.mrb[28].mxu1 %v6318_v50 }
  0xdf   : > { %5413 = vmatmul.mubr.bf16.gmra.mrb[12].mxu0 %v6345_v38  ;;  %5208 = vmatprep.mubr.bf16.mxu1 %v6019_v34  ;;  %v5889_v34 = vld [vmem:[%s6670_s1 + $0x110] sm:$0xff]  }
  0xe0   : > { %5416 = vmatprep.mubr.bf16.mxu0 %v6348_v32  ;;  %5445 = vmatpush3.bf16.msra.mxu0 %v5878_v31 }
  0xe1   : > { %5446 = vmatprep.subr.bf16.mxu0 %v5880_v22 }
  0xe4   : > { %5447 = vmatpush3.bf16.msra.mxu0 %v5880_v22 }
  0xe6   : > { %5209 = vmatmul.mubr.bf16.vlgmr.msra.gmra.mrb[0].mxu1 %v6030_v40  ;;  %v5890_v40 = vld [vmem:[%s6670_s1 + $0x118] sm:$0xff]  }
  0xe7   : > { %5417 = vmatmul.mubr.bf16.gmra.mrb[16].mxu0 %v6362_v35  ;;  %5488 = vmatpush3.bf16.msra.mxu1 %v5882_v54 }
  0xe8   : > { %5212 = vmatprep.mubr.bf16.mxu1 %v6055_v56  ;;  %5420 = vmatprep.mubr.bf16.mxu0 %v6365_v43  ;;  %v5879_v56 = vld [vmem:[%s5979_s18 + $0x78] sm:$0xff]  }
  0xe9   : > { %5481 = vmatprep.subr.bf16.mxu1 %v5888_v37 }
  0xeb   : > { %5489 = vmatpush3.bf16.msra.mxu1 %v5888_v37 }
  0xec   : > { %5482 = vmatprep.subr.bf16.mxu1 %v5889_v34 }
  0xee   : > { %5213 = vmatmul.mubr.bf16.gmra.mrb[4].mxu1 %v6062_v58  ;;  %v5892_v58 = vld [vmem:[%s6670_s1 + $0x128] sm:$0xff]  }
  0xef   : > { %5421 = vmatmul.mubr.bf16.gmra.mrb[20].mxu0 %v6378_v47  ;;  %5216 = vmatprep.mubr.bf16.mxu1 %v6073_v1  ;;  %v5893_v1 = vld [vmem:[%s6670_s1 + $0x130] sm:$0xff]  }
  0xf0   : > { %5424 = vmatprep.mubr.bf16.mxu0 %v6381_v48  ;;  %5490 = vmatpush3.bf16.msra.mxu1 %v5889_v34 }
  0xf1   : > { %5483 = vmatprep.subr.bf16.mxu1 %v5890_v40 }
  0xf4   : > { %5491 = vmatpush3.bf16.msra.mxu1 %v5890_v40 }
  0xf5   : > { %5484 = vmatprep.subr.bf16.mxu1 %v5891_v3 }
  0xf6   : > { %5217 = vmatmul.mubr.bf16.gmra.mrb[8].mxu1 %v6084_v9  ;;  %v5894_v9 = vld [vmem:[%s6670_s1 + $0x138] sm:$0xff]  }
  0xf7   : > { %5425 = vmatmul.mubr.bf16.gmra.mrb[24].mxu0 %v6394_v13  ;;  %5220 = vmatprep.mubr.bf16.mxu1 %v6118_v44 }
  0xf8   : > { %5428 = vmatprep.mubr.bf16.mxu0 %v5879_v56  ;;  %5492 = vmatpush3.bf16.msra.mxu1 %v5891_v3 }
  0xf9   : > { %5485 = vmatprep.subr.bf16.mxu1 %v5892_v58 }
  0xfc   : > { %5493 = vmatpush3.bf16.msra.mxu1 %v5892_v58 }
  0xfd   : > { %5486 = vmatprep.subr.bf16.mxu1 %v5893_v1 }
  0xfe   : > { %5221 = vmatmul.mubr.bf16.gmra.mrb[12].mxu1 %v6125_v46 }
  0xff   : > { %5429 = vmatmul.mubr.bf16.gmra.mrb[28].mxu0 %v5903_v2  ;;  %5224 = vmatprep.mubr.bf16.mxu1 %v6142_v63 }
 0x100   : > { %5448 = vmatprep.mubr.bf16.mxu0 %v6150_v4  ;;  %5494 = vmatpush3.bf16.msra.mxu1 %v5893_v1 }
 0x101   : > { %5487 = vmatprep.subr.bf16.mxu1 %v5894_v9 }
 0x104   : > { %5495 = vmatpush3.bf16.msra.mxu1 %v5894_v9 }
 0x106   : > { %5225 = vmatmul.mubr.bf16.gmra.mrb[16].mxu1 %v6154_v11 }
 0x107   : > { %5449 = vmatmul.mubr.bf16.vlgmr.msra.gmra.mrb[0].mxu0 %v6160_v17  ;;  %5228 = vmatprep.mubr.bf16.mxu1 %v6182_v53 }
 0x108   : > { %5452 = vmatprep.mubr.bf16.mxu0 %v6189_v61 }
 0x10e   : > { %5229 = vmatmul.mubr.bf16.gmra.mrb[20].mxu1 %v6193_v62 }
 0x10f   : > { %5453 = vmatmul.mubr.bf16.gmra.mrb[4].mxu0 %v6197_v0  ;;  %5232 = vmatprep.mubr.bf16.mxu1 %v6215_v23 }
 0x110   : > { %5456 = vmatprep.mubr.bf16.mxu0 %v6219_v26 }
 0x116   : > { %5233 = vmatmul.mubr.bf16.gmra.mrb[24].mxu1 %v6223_v28 }
 0x117   : > { %5457 = vmatmul.mubr.bf16.gmra.mrb[8].mxu0 %v6232_v41  ;;  %5236 = vmatprep.mubr.bf16.mxu1 %v6244_v59 }
 0x118   : > { %5460 = vmatprep.mubr.bf16.mxu0 %v6249_v7 }
 0x11e   : > { %5237 = vmatmul.mubr.bf16.gmra.mrb[28].mxu1 %v6429_v19 }
 0x11f   : > { %5461 = vmatmul.mubr.bf16.gmra.mrb[12].mxu0 %v6256_v15  ;;  %5272 = vmatprep.mubr.bf16.mxu1 %v6345_v38  ;;  %v6567_v15 = vld [vmem:[%s6671_s2] ss:$0 sm:$0xff] }
 0x120   : > { %5464 = vmatprep.mubr.bf16.mxu0 %v6268_v30 }
 0x126   : > { %5273 = vmatmul.mubr.bf16.vlgmr.msra.gmra.mrb[16].mxu1 %v6348_v32 }
 0x127   : > { %5465 = vmatmul.mubr.bf16.gmra.mrb[16].mxu0 %v6276_v36  ;;  %5276 = vmatprep.mubr.bf16.mxu1 %v6362_v35 }
 0x128   : > { %5468 = vmatprep.mubr.bf16.mxu0 %v6295_v52  ;;  %v6572_v52 = vld [vmem:[%s6672_s3] ss:$0 sm:$0xff] }
 0x12e   : > { %5277 = vmatmul.mubr.bf16.gmra.mrb[20].mxu1 %v6365_v43 }
 0x12f   : > { %5469 = vmatmul.mubr.bf16.gmra.mrb[20].mxu0 %v6303_v5  ;;  %5280 = vmatprep.mubr.bf16.mxu1 %v6378_v47 }
 0x130   : > { %5472 = vmatprep.mubr.bf16.mxu0 %v6314_v20 }
 0x136   : > { %5281 = vmatmul.mubr.bf16.gmra.mrb[24].mxu1 %v6381_v48 }
 0x137   : > { %5473 = vmatmul.mubr.bf16.gmra.mrb[24].mxu0 %v6318_v50  ;;  %5284 = vmatprep.mubr.bf16.mxu1 %v6394_v13 }
 0x138   : > { %5476 = vmatprep.mubr.bf16.mxu0 %v6332_v29 }
 0x13e   : > { %5285 = vmatmul.mubr.bf16.gmra.mrb[28].mxu1 %v5879_v56 }
 0x13f   : > { %5477 = vmatmul.mubr.bf16.gmra.mrb[28].mxu0 %v5903_v2 }
 0x1b9   : > { %v5210_v44 = vpop.f32.mrb[0].mxu1 }
 0x1ba   : > { %v2172_v46 = vpop.f32.mrb[1].mxu1 }
 0x1bb   : > { %v5211_v63 = vpop.f32.mrb[2].mxu1 }
 0x1bc   : > { %v2175_v4 = vpop.f32.mrb[3].mxu1 }
 0x1c1   : > { %v5214_v11 = vpop.f32.mrb[4].mxu1 }
 0x1c2   : > { %v2188_v17 = vpop.f32.mrb[5].mxu1 }
 0x1c3   : > { %v5215_v53 = vpop.f32.mrb[6].mxu1 }
 0x1c4   : > { %v2191_v61 = vpop.f32.mrb[7].mxu1 }
 0x1c9   : > { %v5218_v62 = vpop.f32.mrb[8].mxu1 }
 0x1ca   : > { %v2204_v0 = vpop.f32.mrb[9].mxu1 }
 0x1cb   : > { %v5219_v23 = vpop.f32.mrb[10].mxu1 }
 0x1cc   : > { %v6554_v26 = vpop.f32.mrb[11].mxu1 }
 0x1d1   : > { %v6556_v28 = vpop.f32.mrb[12].mxu1 }
 0x1d2   : > { %v6558_v41 = vpop.f32.mrb[13].mxu1 }
 0x1d3   : > { %v6560_v59 = vpop.f32.mrb[14].mxu1 }
 0x1d4   : > { %v6562_v2 = vpop.f32.mrb[15].mxu1 }
 0x1da   : > { %v5450_v7 = vpop.f32.mrb[0].mxu0 }
 0x1db   : > { %v5496_v30 = vadd.f32 %v5450_v7, %v5210_v44  ;;  %v3862_v36 = vpop.f32.mrb[1].mxu0 }
 0x1dc   : > { %v5497_v5 = vadd.f32 %v3862_v36, %v2172_v46  ;;  %v5451_v20 = vpop.f32.mrb[2].mxu0 }
 0x1dd   : > { %v4094_v50 = vmul.f32 %v5496_v30, %v6567_v15  ;;  %v5498_v29 = vadd.f32 %v5451_v20, %v5211_v63  ;;  %v3865_v38 = vpop.f32.mrb[3].mxu0 }
 0x1de   : > { %v4092_v32 = vmul.f32 %v5497_v5, %v6567_v15  ;;  %v5499_v35 = vadd.f32 %v3865_v38, %v2175_v4 }
 0x1df   : > { %v4133_v43 = vadd.f32 %v6572_v52, %v4094_v50  ;;  %v4095_v47 = vmul.f32 %v5498_v29, %v6567_v15 }
 0x1e0   : > { %v4131_v48 = vadd.f32 %v6572_v52, %v4092_v32  ;;  %v4093_v13 = vmul.f32 %v5499_v35, %v6567_v15 }
 0x1e1   : > { %v4134_v8 = vadd.f32 %v6572_v52, %v4095_v47  ;;  %v4165_v55 = vmax.f32 %v4133_v43, 0.0 }
 0x1e2   : > { %v4132_v12 = vadd.f32 %v6572_v52, %v4093_v13  ;;  %v5454_v14 = vpop.f32.mrb[4].mxu0  ;;  %v4163_v39 = vmax.f32 %v4131_v48, 0.0 }
 0x1e3   : > { %v4166_v16 = vmax.f32 %v4134_v8, 0.0  ;;  %v5500_v18 = vadd.f32 %v5454_v14, %v5214_v11  ;;  %v3878_v19 = vpop.f32.mrb[5].mxu0 }
 0x1e4   : > { %v4164_v27 = vmax.f32 %v4132_v12, 0.0  ;;  %v5501_v21 = vadd.f32 %v3878_v19, %v2188_v17  ;;  %v5455_v24 = vpop.f32.mrb[6].mxu0 }
 0x1e5   : > { %v4745_v25 = vpack.c.bf16 %v4166_v16, %v4165_v55  ;;  %v4098_v54 = vmul.f32 %v5500_v18, %v6567_v15  ;;  %v5502_v6 = vadd.f32 %v5455_v24, %v5215_v53  ;;  %v3881_v10 = vpop.f32.mrb[7].mxu0 }
 0x1e6   : > { %v4740_v33 = vpack.c.bf16 %v4164_v27, %v4163_v39  ;;  %v4096_v45 = vmul.f32 %v5501_v21, %v6567_v15  ;;  %v5503_v42 = vadd.f32 %v3881_v10, %v2191_v61 }
 0x1e7   : > { %4817 = vst [vmem:[%s6587_s30 + $0x8] sm:$0xff] %v4745_v25   ;;  %v4137_v49 = vadd.f32 %v6572_v52, %v4098_v54  ;;  %v4099_v51 = vmul.f32 %v5502_v6, %v6567_v15 }
 0x1e8   : > { %4741 = vst [vmem:[%s6587_s30] sm:$0xff] %v4740_v33   ;;  %v4135_v57 = vadd.f32 %v6572_v52, %v4096_v45  ;;  %v4097_v60 = vmul.f32 %v5503_v42, %v6567_v15 }
 0x1e9   : > { %v4138_v31 = vadd.f32 %v6572_v52, %v4099_v51  ;;  %v4169_v34 = vmax.f32 %v4137_v49, 0.0 }
 0x1ea   : > { %v4136_v22 = vadd.f32 %v6572_v52, %v4097_v60  ;;  %v5458_v37 = vpop.f32.mrb[8].mxu0  ;;  %v4167_v58 = vmax.f32 %v4135_v57, 0.0 }
 0x1eb   : > { %v4170_v40 = vmax.f32 %v4138_v31, 0.0  ;;  %v5504_v56 = vadd.f32 %v5458_v37, %v5218_v62  ;;  %v3894_v3 = vpop.f32.mrb[9].mxu0 }
 0x1ec   : > { %v4168_v1 = vmax.f32 %v4136_v22, 0.0  ;;  %v5505_v9 = vadd.f32 %v3894_v3, %v2204_v0  ;;  %v5459_v44 = vpop.f32.mrb[10].mxu0 }
 0x1ed   : > { %v4755_v46 = vpack.c.bf16 %v4170_v40, %v4169_v34  ;;  %v4102_v63 = vmul.f32 %v5504_v56, %v6567_v15  ;;  %v5506_v4 = vadd.f32 %v5459_v44, %v5219_v23  ;;  %v3897_v11 = vpop.f32.mrb[11].mxu0 }
 0x1ee   : > { %v4750_v17 = vpack.c.bf16 %v4168_v1, %v4167_v58  ;;  %v4100_v53 = vmul.f32 %v5505_v9, %v6567_v15  ;;  %v5507_v61 = vadd.f32 %v3897_v11, %v6554_v26 }
 0x1ef   : > { %4819 = vst [vmem:[%s6587_s30 + $0x18] sm:$0xff] %v4755_v46   ;;  %v4141_v7 = vadd.f32 %v6572_v52, %v4102_v63  ;;  %v4103_v62 = vmul.f32 %v5506_v4, %v6567_v15 }
 0x1f0   : > { %4818 = vst [vmem:[%s6587_s30 + $0x10] sm:$0xff] %v4750_v17   ;;  %v4139_v30 = vadd.f32 %v6572_v52, %v4100_v53  ;;  %v4101_v0 = vmul.f32 %v5507_v61, %v6567_v15 }
 0x1f1   : > { %v4142_v36 = vadd.f32 %v6572_v52, %v4103_v62  ;;  %v4173_v20 = vmax.f32 %v4141_v7, 0.0 }
 0x1f2   : > { %v4140_v23 = vadd.f32 %v6572_v52, %v4101_v0  ;;  %v5462_v5 = vpop.f32.mrb[12].mxu0  ;;  %v4171_v38 = vmax.f32 %v4139_v30, 0.0 }
 0x1f3   : > { %v4174_v50 = vmax.f32 %v4142_v36, 0.0  ;;  %v5508_v26 = vadd.f32 %v5462_v5, %v6556_v28  ;;  %v3910_v29 = vpop.f32.mrb[13].mxu0 }
 0x1f4   : > { %v4172_v32 = vmax.f32 %v4140_v23, 0.0  ;;  %v5509_v35 = vadd.f32 %v3910_v29, %v6558_v41  ;;  %v5463_v43 = vpop.f32.mrb[14].mxu0 }
 0x1f5   : > { %v4765_v47 = vpack.c.bf16 %v4174_v50, %v4173_v20  ;;  %v4106_v48 = vmul.f32 %v5508_v26, %v6567_v15  ;;  %v5510_v13 = vadd.f32 %v5463_v43, %v6560_v59  ;;  %v3913_v8 = vpop.f32.mrb[15].mxu0 }
 0x1f6   : > { %v4760_v12 = vpack.c.bf16 %v4172_v32, %v4171_v38  ;;  %v4104_v14 = vmul.f32 %v5509_v35, %v6567_v15  ;;  %v5511_v55 = vadd.f32 %v3913_v8, %v6562_v2 }
 0x1f7   : > { %4821 = vst [vmem:[%s6587_s30 + $0x28] sm:$0xff] %v4765_v47   ;;  %v4145_v28 = vadd.f32 %v6572_v52, %v4106_v48  ;;  %v4107_v16 = vmul.f32 %v5510_v13, %v6567_v15 }
 0x1f8   : > { %4820 = vst [vmem:[%s6587_s30 + $0x20] sm:$0xff] %v4760_v12   ;;  %v4143_v41 = vadd.f32 %v6572_v52, %v4104_v14  ;;  %v4105_v18 = vmul.f32 %v5511_v55, %v6567_v15 }
 0x1f9   : > { %v4146_v19 = vadd.f32 %v6572_v52, %v4107_v16  ;;  %v5274_v39 = vpop.f32.mrb[16].mxu1  ;;  %v4177_v24 = vmax.f32 %v4145_v28, 0.0 }
 0x1fa   : > { %v4144_v59 = vadd.f32 %v6572_v52, %v4105_v18  ;;  %v5466_v27 = vpop.f32.mrb[16].mxu0  ;;  %v2574_v21 = vpop.f32.mrb[17].mxu1  ;;  %v4175_v10 = vmax.f32 %v4143_v41, 0.0 }
 0x1fb   : > { %v4178_v25 = vmax.f32 %v4146_v19, 0.0  ;;  %v5512_v2 = vadd.f32 %v5466_v27, %v5274_v39  ;;  %v3926_v54 = vpop.f32.mrb[17].mxu0  ;;  %v5275_v6 = vpop.f32.mrb[18].mxu1 }
 0x1fc   : > { %v4176_v33 = vmax.f32 %v4144_v59, 0.0  ;;  %v5513_v45 = vadd.f32 %v3926_v54, %v2574_v21  ;;  %v5467_v42 = vpop.f32.mrb[18].mxu0  ;;  %v2577_v49 = vpop.f32.mrb[19].mxu1 }
 0x1fd   : > { %v4775_v51 = vpack.c.bf16 %v4178_v25, %v4177_v24  ;;  %v4110_v57 = vmul.f32 %v5512_v2, %v6567_v15  ;;  %v5514_v60 = vadd.f32 %v5467_v42, %v5275_v6  ;;  %v3929_v31 = vpop.f32.mrb[19].mxu0 }
 0x1fe   : > { %v4770_v22 = vpack.c.bf16 %v4176_v33, %v4175_v10  ;;  %v4108_v37 = vmul.f32 %v5513_v45, %v6567_v15  ;;  %v5515_v34 = vadd.f32 %v3929_v31, %v2577_v49 }
 0x1ff   : > { %4823 = vst [vmem:[%s6587_s30 + $0x38] sm:$0xff] %v4775_v51   ;;  %v4149_v40 = vadd.f32 %v6572_v52, %v4110_v57  ;;  %v4111_v56 = vmul.f32 %v5514_v60, %v6567_v15 }
 0x200   : > { %4822 = vst [vmem:[%s6587_s30 + $0x30] sm:$0xff] %v4770_v22   ;;  %v4147_v3 = vadd.f32 %v6572_v52, %v4108_v37  ;;  %v4109_v58 = vmul.f32 %v5515_v34, %v6567_v15 }
 0x201   : > { %v4150_v1 = vadd.f32 %v6572_v52, %v4111_v56  ;;  %v5278_v9 = vpop.f32.mrb[20].mxu1  ;;  %v4181_v4 = vmax.f32 %v4149_v40, 0.0 }
 0x202   : > { %v4148_v44 = vadd.f32 %v6572_v52, %v4109_v58  ;;  %v5470_v46 = vpop.f32.mrb[20].mxu0  ;;  %v2590_v63 = vpop.f32.mrb[21].mxu1  ;;  %v4179_v7 = vmax.f32 %v4147_v3, 0.0 }
 0x203   : > { %v4182_v11 = vmax.f32 %v4150_v1, 0.0  ;;  %v5516_v17 = vadd.f32 %v5470_v46, %v5278_v9  ;;  %v3942_v53 = vpop.f32.mrb[21].mxu0  ;;  %v5279_v61 = vpop.f32.mrb[22].mxu1 }
 0x204   : > { %v4180_v62 = vmax.f32 %v4148_v44, 0.0  ;;  %v5517_v30 = vadd.f32 %v3942_v53, %v2590_v63  ;;  %v5471_v0 = vpop.f32.mrb[22].mxu0  ;;  %v2593_v36 = vpop.f32.mrb[23].mxu1 }
 0x205   : > { %v4785_v23 = vpack.c.bf16 %v4182_v11, %v4181_v4  ;;  %v4114_v5 = vmul.f32 %v5516_v17, %v6567_v15  ;;  %v5518_v20 = vadd.f32 %v5471_v0, %v5279_v61  ;;  %v3945_v50 = vpop.f32.mrb[23].mxu0 }
 0x206   : > { %v4780_v26 = vpack.c.bf16 %v4180_v62, %v4179_v7  ;;  %v4112_v29 = vmul.f32 %v5517_v30, %v6567_v15  ;;  %v5519_v38 = vadd.f32 %v3945_v50, %v2593_v36 }
 0x207   : > { %4825 = vst [vmem:[%s6587_s30 + $0x48] sm:$0xff] %v4785_v23   ;;  %v4153_v32 = vadd.f32 %v6572_v52, %v4114_v5  ;;  %v4115_v35 = vmul.f32 %v5518_v20, %v6567_v15 }
 0x208   : > { %4824 = vst [vmem:[%s6587_s30 + $0x40] sm:$0xff] %v4780_v26   ;;  %v4151_v43 = vadd.f32 %v6572_v52, %v4112_v29  ;;  %v4113_v47 = vmul.f32 %v5519_v38, %v6567_v15 }
 0x209   : > { %v4154_v48 = vadd.f32 %v6572_v52, %v4115_v35  ;;  %v5282_v13 = vpop.f32.mrb[24].mxu1  ;;  %v4185_v55 = vmax.f32 %v4153_v32, 0.0 }
 0x20a   : > { %v4152_v8 = vadd.f32 %v6572_v52, %v4113_v47  ;;  %v5474_v12 = vpop.f32.mrb[24].mxu0  ;;  %v2606_v14 = vpop.f32.mrb[25].mxu1  ;;  %v4183_v19 = vmax.f32 %v4151_v43, 0.0 }
 0x20b   : > { %v4186_v28 = vmax.f32 %v4154_v48, 0.0  ;;  %v5520_v16 = vadd.f32 %v5474_v12, %v5282_v13  ;;  %v3958_v41 = vpop.f32.mrb[25].mxu0  ;;  %v5283_v18 = vpop.f32.mrb[26].mxu1 }
 0x20c   : > { %v4184_v39 = vmax.f32 %v4152_v8, 0.0  ;;  %v5521_v59 = vadd.f32 %v3958_v41, %v2606_v14  ;;  %v5475_v27 = vpop.f32.mrb[26].mxu0  ;;  %v2609_v21 = vpop.f32.mrb[27].mxu1 }
 0x20d   : > { %v4795_v24 = vpack.c.bf16 %v4186_v28, %v4185_v55  ;;  %v4118_v25 = vmul.f32 %v5520_v16, %v6567_v15  ;;  %v5522_v2 = vadd.f32 %v5475_v27, %v5283_v18  ;;  %v3961_v54 = vpop.f32.mrb[27].mxu0 }
 0x20e   : > { %v4790_v6 = vpack.c.bf16 %v4184_v39, %v4183_v19  ;;  %v4116_v10 = vmul.f32 %v5521_v59, %v6567_v15  ;;  %v5523_v33 = vadd.f32 %v3961_v54, %v2609_v21 }
 0x20f   : > { %4827 = vst [vmem:[%s6587_s30 + $0x58] sm:$0xff] %v4795_v24   ;;  %v4157_v45 = vadd.f32 %v6572_v52, %v4118_v25  ;;  %v4119_v42 = vmul.f32 %v5522_v2, %v6567_v15 }
 0x210   : > { %4826 = vst [vmem:[%s6587_s30 + $0x50] sm:$0xff] %v4790_v6   ;;  %v4155_v49 = vadd.f32 %v6572_v52, %v4116_v10  ;;  %v4117_v51 = vmul.f32 %v5523_v33, %v6567_v15 }
 0x211   : > { %v4158_v57 = vadd.f32 %v6572_v52, %v4119_v42  ;;  %v5286_v60 = vpop.f32.mrb[28].mxu1  ;;  %v4189_v34 = vmax.f32 %v4157_v45, 0.0 }
 0x212   : > { %v4156_v31 = vadd.f32 %v6572_v52, %v4117_v51  ;;  %v5478_v22 = vpop.f32.mrb[28].mxu0  ;;  %v2622_v37 = vpop.f32.mrb[29].mxu1  ;;  %v4187_v1 = vmax.f32 %v4155_v49, 0.0 }
 0x213   : > { %v4190_v40 = vmax.f32 %v4158_v57, 0.0  ;;  %v5524_v56 = vadd.f32 %v5478_v22, %v5286_v60  ;;  %v3974_v3 = vpop.f32.mrb[29].mxu0  ;;  %v5287_v58 = vpop.f32.mrb[30].mxu1 }
 0x214   : > { %v4188_v9 = vmax.f32 %v4156_v31, 0.0  ;;  %v5525_v44 = vadd.f32 %v3974_v3, %v2622_v37  ;;  %v5479_v46 = vpop.f32.mrb[30].mxu0  ;;  %v2625_v63 = vpop.f32.mrb[31].mxu1 }
 0x215   : > { %v4805_v4 = vpack.c.bf16 %v4190_v40, %v4189_v34  ;;  %v4122_v11 = vmul.f32 %v5524_v56, %v6567_v15  ;;  %v5526_v17 = vadd.f32 %v5479_v46, %v5287_v58  ;;  %v3977_v53 = vpop.f32.mrb[31].mxu0 }
 0x216   : > { %v4800_v61 = vpack.c.bf16 %v4188_v9, %v4187_v1  ;;  %v4120_v7 = vmul.f32 %v5525_v44, %v6567_v15  ;;  %v5527_v62 = vadd.f32 %v3977_v53, %v2625_v63 }
 0x217   : > { %4829 = vst [vmem:[%s6587_s30 + $0x68] sm:$0xff] %v4805_v4   ;;  %v4161_v30 = vadd.f32 %v6572_v52, %v4122_v11  ;;  %v4123_v0 = vmul.f32 %v5526_v17, %v6567_v15 }
 0x218   : > { %4828 = vst [vmem:[%s6587_s30 + $0x60] sm:$0xff] %v4800_v61   ;;  %v4159_v36 = vadd.f32 %v6572_v52, %v4120_v7  ;;  %v4121_v23 = vmul.f32 %v5527_v62, %v6567_v15 }
 0x219   : > { %v4162_v5 = vadd.f32 %v6572_v52, %v4123_v0  ;;  %v4193_v50 = vmax.f32 %v4161_v30, 0.0 }
 0x21a   : > { %v4160_v20 = vadd.f32 %v6572_v52, %v4121_v23  ;;  %v4191_v29 = vmax.f32 %v4159_v36, 0.0 }
 0x21b   : > { %v4194_v26 = vmax.f32 %v4162_v5, 0.0 }
 0x21c   : > { %v4192_v38 = vmax.f32 %v4160_v20, 0.0 }
 0x21d   : > { %v4815_v32 = vpack.c.bf16 %v4194_v26, %v4193_v50 }
 0x21e   : > { %v4810_v35 = vpack.c.bf16 %v4192_v38, %v4191_v29 }
 0x21f   : > { %4831 = vst [vmem:[%s6587_s30 + $0x78] sm:$0xff] %v4815_v32  }
 0x220   : > { %4830 = vst [vmem:[%s6587_s30 + $0x70] sm:$0xff] %v4810_v35  }
 0x221 PF: > { %s14_s15 = sadd.s32 1, %s5901_s15  }
 0x222   : > { %p11_p4 = scmp.ge.s32.totalorder %s14_s15, 4  }
 0x224   :  { %13 = sbr.rel (!%p11_p4) target bundleno = 1 (0x1), region = 76 }

</bundles_post_ra>
